<compile_context>
chip_gen: v7x
topology: tpu7x:2x2x1
jax: 0.10.0
libtpu: 0.0.40
codegen_flags: <defaults>
</compile_context>

<pallas_src>
import jax
import jax.numpy as jnp
from jax import lax
from jax.experimental import pallas as pl
from jax.experimental.pallas import tpu as pltpu


LANE = 128
NEG_INF = -1e30


def _round_up(x, m):
    return ((x + m - 1) // m) * m


def _pad_to(x, rows=None, cols=None):
    r, c = x.shape
    pr = 0 if rows is None else rows - r
    pc = 0 if cols is None else cols - c
    return jnp.pad(x, ((0, pr), (0, pc)))


# ------------------------- Fused whole-forward kernel ------------------------

def _make_fused_gat_kernel(cfgs):
    """cfgs: per-layer static config dicts (H, D, HD_pad, has_res_w, has_norm)."""

    def kernel(*refs):
        adj_ref, feat_ref = refs[0], refs[1]
        o_ref = refs[-1]
        idx = 2

        # Additive attention mask, built once and reused by every layer & head.
        # adj carries self-loops, so every dst row has >=1 unmasked entry: the row max
        # stays finite and exp(-1e30 - m) underflows to exactly 0.0 in f32.
        mask_bias = jnp.where(adj_ref[...] > 0.0, 0.0, NEG_INF)        # (N_dst, N_src)

        h = feat_ref[...]                                              # f32 activation, stays in VMEM

        for cfg in cfgs:
            H, D, HD_pad = cfg["H"], cfg["D"], cfg["HD_pad"]
            w_ref, ar_ref, al_ref, bias_ref = (refs[idx], refs[idx + 1],
                                               refs[idx + 2], refs[idx + 3])
            idx += 4
            norm_ref = None
            if cfg["has_norm"]:
                norm_ref = refs[idx]
                idx += 1

            # --- projection (+ residual projection fused into the same dot), bf16 MXU ---
            proj = jnp.dot(h.astype(jnp.bfloat16), w_ref[...],
                           preferred_element_type=jnp.float32)         # (N, HD_pad[*2])
            wh = proj[:, :HD_pad]                                      # lane-tile-aligned slice
            res = proj[:, HD_pad:2 * HD_pad] if cfg["has_res_w"] else h
            wh_b = wh.astype(jnp.bfloat16)

            # --- attention scores for ALL heads in two MXU ops (no per-head broadcasts) ---
            er_all = jnp.dot(wh_b, ar_ref[...],
                             preferred_element_type=jnp.float32)       # (N, H)  dst scores
            el_all = lax.dot_general(al_ref[...], wh_b,
                                     dimension_numbers=(((1,), (1,)), ((), ())),
                                     preferred_element_type=jnp.float32)  # (H, N) src scores

            col = lax.broadcasted_iota(jnp.int32, (1, HD_pad), 1)      # head-column selector

            out = None
            for hh in range(H):                                        # static unroll over heads
                e = er_all[:, hh:hh + 1] + el_all[hh:hh + 1, :]        # (N_dst, N_src)
                e = jnp.maximum(e, 0.2 * e)                            # LeakyReLU(0.2)
                e = e + mask_bias                                      # additive mask
                m = jnp.max(e, axis=-1, keepdims=True)                 # finite via self-loops
                p = jnp.exp(e - m)                                     # masked entries underflow to 0
                denom = jnp.sum(p, axis=-1, keepdims=True)             # >= 1 thanks to self-loops
                alpha = p * pl.reciprocal(denom, approx=True)          # EUP reciprocal
                # Aggregate on the MXU over the full padded width, then select this head's
                # column block — avoids sub-lane-tile slices and per-head concatenates.
                agg = jnp.dot(alpha.astype(jnp.bfloat16), wh_b,
                              preferred_element_type=jnp.float32)      # (N, HD_pad)
                head_cols = (col >= hh * D) & (col < (hh + 1) * D)
                contrib = jnp.where(head_cols, agg, 0.0)
                out = contrib if out is None else out + contrib

            out = out + res + bias_ref[...]                            # residual + GATConv bias
            if norm_ref is not None:                                   # pre-folded BN + ReLU
                out = jnp.maximum(out * norm_ref[0:1, :] + norm_ref[1:2, :], 0.0)
            h = out                                                    # next layer's input (VMEM)

        o_ref[...] = h                                                 # lane-dense (N, 128) store

    return kernel


# --------------------- Host-side parameter packing / padding ------------------

def build_fused_inputs(params, in_feats):
    """Pad/fold all parameters once on the host; all padding is zero -> benign."""
    convs, norms = params["convs"], params["norms"]
    n_layers = params["n_layers"]
    assert convs[-1]["num_heads"] == 1, "last layer must have 1 head (mean over heads == identity)"

    cfgs, tensors = [], []
    fin_pad = in_feats                      # layer-0 input is the raw (unpadded) feature matrix
    for i, p in enumerate(convs):
        H, D = p["num_heads"], p["out_feats"]
        HD = H * D
        HD_pad = _round_up(HD, LANE)
        fin = p["fc_w"].shape[0]
        has_res_w = p["res_w"] is not None
        if not has_res_w:
            # identity residual silently assumes in_feats == heads*out_feats — make it explicit
            assert fin == HD, "identity residual requires in_feats == heads*out_feats"

        fc_w = _pad_to(p["fc_w"], rows=fin_pad, cols=HD_pad)
        if has_res_w:
            res_w = _pad_to(p["res_w"], rows=fin_pad, cols=HD_pad)
            w_cat = jnp.concatenate([fc_w, res_w], axis=1)
        else:
            w_cat = fc_w
        w_cat = w_cat.astype(jnp.bfloat16)                      # bf16 weights: half the DMA, 1 MXU pass

        # per-head attention vectors laid out block-diagonally:
        #   ar_mat (HD_pad, H): wh @ ar_mat -> per-dst scores;  al_mat (H, HD_pad): al_mat @ wh^T -> per-src
        ar_mat = jnp.zeros((HD_pad, H), jnp.float32)
        al_mat = jnp.zeros((H, HD_pad), jnp.float32)
        for hh in range(H):
            ar_mat = ar_mat.at[hh * D:(hh + 1) * D, hh].set(p["attn_r"][hh])
            al_mat = al_mat.at[hh, hh * D:(hh + 1) * D].set(p["attn_l"][hh])
        ar_mat = ar_mat.astype(jnp.bfloat16)
        al_mat = al_mat.astype(jnp.bfloat16)

        is_last = (i == n_layers - 1)
        bias = p["bias"]
        if is_last:
            bias = bias + params["bias_last"]                   # fold ElementWiseLinear bias (1 head)
        bias2d = _pad_to(bias.reshape(1, HD), cols=HD_pad)

        layer_tensors = [w_cat, ar_mat, al_mat, bias2d]
        has_norm = not is_last
        if has_norm:                                            # pre-fold eval-mode BatchNorm1d
            nm = norms[i]
            scale = nm["gamma"] * lax.rsqrt(nm["var"] + 1e-5)
            shift = nm["beta"] - nm["mean"] * scale
            layer_tensors.append(_pad_to(jnp.stack([scale, shift], axis=0), cols=HD_pad))

        tensors.extend(layer_tensors)
        cfgs.append(dict(H=H, D=D, HD_pad=HD_pad, has_res_w=has_res_w, has_norm=has_norm))
        fin_pad = HD_pad
    return cfgs, tensors


# --------------------------------- Forward -----------------------------------

def gatdgl_forward_fused(adj, feat, cfgs, tensors, n_classes):
    """Whole GATDGL forward = exactly one pallas_call (+ a trailing un-pad slice)."""
    N = feat.shape[0]
    HD_pad_last = cfgs[-1]["HD_pad"]
    inputs = [adj, feat] + list(tensors)
    assert all(t.ndim == 2 for t in inputs)

    out = pl.pallas_call(
        _make_fused_gat_kernel(cfgs),
        out_shape=jax.ShapeDtypeStruct((N, HD_pad_last), jnp.float32),
        grid=(1,),
        in_specs=[pl.BlockSpec(t.shape, lambda i: (0, 0)) for t in inputs],
        out_specs=pl.BlockSpec((N, HD_pad_last), lambda i: (0, 0)),
        compiler_params=pltpu.CompilerParams(dimension_semantics=("arbitrary",)),
    )(*inputs)
    return out[:, :n_classes]


# ----------------------------- Parameter init --------------------------------

def init_params(key, in_feats, n_hidden, n_classes, n_layers, n_heads):
    convs, norms = [], []
    layer_keys = jax.random.split(key, n_layers)
    for i in range(n_layers):
        in_hidden = n_heads * n_hidden if i > 0 else in_feats
        out_hidden = n_hidden if i < n_layers - 1 else n_classes
        num_heads = n_heads if i < n_layers - 1 else 1
        kfc, kal, kar, kres = jax.random.split(layer_keys[i], 4)
        gain = 1.4142135623730951  # sqrt(2), xavier-ish gain
        fc_w = gain * jax.random.normal(kfc, (in_hidden, num_heads * out_hidden),
                                        dtype=jnp.float32) / jnp.sqrt(float(in_hidden))
        attn_l = gain * jax.random.normal(kal, (num_heads, out_hidden),
                                          dtype=jnp.float32) / jnp.sqrt(float(out_hidden))
        attn_r = gain * jax.random.normal(kar, (num_heads, out_hidden),
                                          dtype=jnp.float32) / jnp.sqrt(float(out_hidden))
        if in_hidden != num_heads * out_hidden:
            res_w = jax.random.normal(kres, (in_hidden, num_heads * out_hidden),
                                      dtype=jnp.float32) / jnp.sqrt(float(in_hidden))
        else:
            res_w = None
        bias = jnp.zeros((num_heads * out_hidden,), jnp.float32)
        convs.append(dict(fc_w=fc_w, attn_l=attn_l, attn_r=attn_r, res_w=res_w,
                          bias=bias, num_heads=num_heads, out_feats=out_hidden))
        if i < n_layers - 1:
            c = n_heads * out_hidden
            norms.append(dict(gamma=jnp.ones((c,), jnp.float32),
                              beta=jnp.zeros((c,), jnp.float32),
                              mean=jnp.zeros((c,), jnp.float32),
                              var=jnp.ones((c,), jnp.float32)))
    return dict(convs=convs, norms=norms,
                bias_last=jnp.zeros((n_classes,), jnp.float32),
                n_layers=n_layers)


# ------------------------------------ Main -----------------------------------

if __name__ == "__main__":
    key = jax.random.PRNGKey(0)
    N = 64            # number of graph nodes
    in_feats = 32
    n_hidden = 32
    n_classes = 8
    n_layers = 3
    n_heads = 3

    k_adj, k_feat, k_par = jax.random.split(key, 3)
    adj = (jax.random.uniform(k_adj, (N, N)) < 0.1).astype(jnp.float32)
    adj = jnp.maximum(adj, jnp.eye(N, dtype=jnp.float32))   # add self-loops (softmax denom >= 1)
    feat = jax.random.normal(k_feat, (N, in_feats), dtype=jnp.float32)

    params = init_params(k_par, in_feats, n_hidden, n_classes, n_layers, n_heads)
    cfgs, packed = build_fused_inputs(params, in_feats)      # one-time host-side packing

    out = gatdgl_forward_fused(adj, feat, cfgs, packed, n_classes)
    out = jax.block_until_ready(out)
    assert out.shape == (N, n_classes), out.shape
    assert bool(jnp.all(jnp.isfinite(out)))
    print("KERNEL_OK")
</pallas_src>

<mosaic_0001>
module attributes {stable_mosaic.version = 11 : i64} {
  func.func @kernel(%arg0: i32, %arg1: memref<64x64xf32, #tpu.memory_space<vmem>>, %arg2: memref<64x32xf32, #tpu.memory_space<vmem>>, %arg3: memref<32x256xbf16, #tpu.memory_space<vmem>>, %arg4: memref<128x3xbf16, #tpu.memory_space<vmem>>, %arg5: memref<3x128xbf16, #tpu.memory_space<vmem>>, %arg6: memref<1x128xf32, #tpu.memory_space<vmem>>, %arg7: memref<2x128xf32, #tpu.memory_space<vmem>>, %arg8: memref<128x128xbf16, #tpu.memory_space<vmem>>, %arg9: memref<128x3xbf16, #tpu.memory_space<vmem>>, %arg10: memref<3x128xbf16, #tpu.memory_space<vmem>>, %arg11: memref<1x128xf32, #tpu.memory_space<vmem>>, %arg12: memref<2x128xf32, #tpu.memory_space<vmem>>, %arg13: memref<128x256xbf16, #tpu.memory_space<vmem>>, %arg14: memref<128x1xbf16, #tpu.memory_space<vmem>>, %arg15: memref<1x128xbf16, #tpu.memory_space<vmem>>, %arg16: memref<1x128xf32, #tpu.memory_space<vmem>>, %arg17: memref<64x128xf32, #tpu.memory_space<vmem>>) attributes {dimension_semantics = [#tpu.dimension_semantics<arbitrary>], iteration_bounds = array<i64: 1>, scalar_prefetch = 0 : i64, scratch_operands = 0 : i64, tpu.core_type = #tpu.core_type<tc>, window_params = [{pipeline_mode = #tpu.pipeline_mode<synchronous>, transform_indices = @transform_0, window_bounds = array<i64: 64, 64>}, {pipeline_mode = #tpu.pipeline_mode<synchronous>, transform_indices = @transform_1, window_bounds = array<i64: 64, 32>}, {pipeline_mode = #tpu.pipeline_mode<synchronous>, transform_indices = @transform_2, window_bounds = array<i64: 32, 256>}, {pipeline_mode = #tpu.pipeline_mode<synchronous>, transform_indices = @transform_3, window_bounds = array<i64: 128, 3>}, {pipeline_mode = #tpu.pipeline_mode<synchronous>, transform_indices = @transform_4, window_bounds = array<i64: 3, 128>}, {pipeline_mode = #tpu.pipeline_mode<synchronous>, transform_indices = @transform_5, window_bounds = array<i64: 1, 128>}, {pipeline_mode = #tpu.pipeline_mode<synchronous>, transform_indices = @transform_6, window_bounds = array<i64: 2, 128>}, {pipeline_mode = #tpu.pipeline_mode<synchronous>, transform_indices = @transform_7, window_bounds = array<i64: 128, 128>}, {pipeline_mode = #tpu.pipeline_mode<synchronous>, transform_indices = @transform_8, window_bounds = array<i64: 128, 3>}, {pipeline_mode = #tpu.pipeline_mode<synchronous>, transform_indices = @transform_9, window_bounds = array<i64: 3, 128>}, {pipeline_mode = #tpu.pipeline_mode<synchronous>, transform_indices = @transform_10, window_bounds = array<i64: 1, 128>}, {pipeline_mode = #tpu.pipeline_mode<synchronous>, transform_indices = @transform_11, window_bounds = array<i64: 2, 128>}, {pipeline_mode = #tpu.pipeline_mode<synchronous>, transform_indices = @transform_12, window_bounds = array<i64: 128, 256>}, {pipeline_mode = #tpu.pipeline_mode<synchronous>, transform_indices = @transform_13, window_bounds = array<i64: 128, 1>}, {pipeline_mode = #tpu.pipeline_mode<synchronous>, transform_indices = @transform_14, window_bounds = array<i64: 1, 128>}, {pipeline_mode = #tpu.pipeline_mode<synchronous>, transform_indices = @transform_15, window_bounds = array<i64: 1, 128>}, {pipeline_mode = #tpu.pipeline_mode<synchronous>, transform_indices = @transform_16, window_bounds = array<i64: 64, 128>}]} {
    %c0 = arith.constant 0 : index
    %c0_0 = arith.constant 0 : index
    %0 = vector.load %arg1[%c0, %c0_0] : memref<64x64xf32, #tpu.memory_space<vmem>>, vector<64x64xf32>
    %cst = arith.constant 0.000000e+00 : f32
    %1 = vector.broadcast %cst : f32 to vector<64x64xf32>
    %2 = arith.cmpf ogt, %0, %1 : vector<64x64xf32>
    %cst_1 = arith.constant 0.000000e+00 : f32
    %cst_2 = arith.constant -1.000000e+30 : f32
    %3 = vector.broadcast %cst_1 : f32 to vector<64x64xf32>
    %4 = vector.broadcast %cst_2 : f32 to vector<64x64xf32>
    %5 = arith.select %2, %3, %4 : vector<64x64xi1>, vector<64x64xf32>
    %c0_3 = arith.constant 0 : index
    %c0_4 = arith.constant 0 : index
    %6 = vector.load %arg2[%c0_3, %c0_4] : memref<64x32xf32, #tpu.memory_space<vmem>>, vector<64x32xf32>
    %7 = arith.truncf %6 : vector<64x32xf32> to vector<64x32xbf16>
    %c0_5 = arith.constant 0 : index
    %c0_6 = arith.constant 0 : index
    %8 = vector.load %arg3[%c0_5, %c0_6] : memref<32x256xbf16, #tpu.memory_space<vmem>>, vector<32x256xbf16>
    %cst_7 = arith.constant dense<0.000000e+00> : vector<64x256xf32>
    %9 = tpu.matmul %7, %8, %cst_7 {dimension_numbers = #tpu.dot_dimension_numbers<[1], [0], [0], [1], [0, 0, 1, 1], [], []>} : vector<64x32xbf16>, vector<32x256xbf16>, vector<64x256xf32> -> vector<64x256xf32>
    %10 = vector.extract_strided_slice %9 {offsets = [0, 0], sizes = [64, 128], strides = [1, 1]} : vector<64x256xf32> to vector<64x128xf32>
    %11 = vector.extract_strided_slice %9 {offsets = [0, 128], sizes = [64, 128], strides = [1, 1]} : vector<64x256xf32> to vector<64x128xf32>
    %12 = arith.truncf %10 : vector<64x128xf32> to vector<64x128xbf16>
    %c0_8 = arith.constant 0 : index
    %c0_9 = arith.constant 0 : index
    %13 = vector.load %arg4[%c0_8, %c0_9] : memref<128x3xbf16, #tpu.memory_space<vmem>>, vector<128x3xbf16>
    %cst_10 = arith.constant dense<0.000000e+00> : vector<64x3xf32>
    %14 = tpu.matmul %12, %13, %cst_10 {dimension_numbers = #tpu.dot_dimension_numbers<[1], [0], [0], [1], [0, 0, 1, 1], [], []>} : vector<64x128xbf16>, vector<128x3xbf16>, vector<64x3xf32> -> vector<64x3xf32>
    %c0_11 = arith.constant 0 : index
    %c0_12 = arith.constant 0 : index
    %15 = vector.load %arg5[%c0_11, %c0_12] : memref<3x128xbf16, #tpu.memory_space<vmem>>, vector<3x128xbf16>
    %cst_13 = arith.constant dense<0.000000e+00> : vector<3x64xf32>
    %16 = tpu.matmul %15, %12, %cst_13 {dimension_numbers = #tpu.dot_dimension_numbers<[1], [1], [0], [0], [0, 0, 1, 0], [], []>} : vector<3x128xbf16>, vector<64x128xbf16>, vector<3x64xf32> -> vector<3x64xf32>
    %17 = tpu.iota {dimensions = array<i32: 1>} : vector<1x128xi32>
    %18 = vector.extract_strided_slice %14 {offsets = [0, 0], sizes = [64, 1], strides = [1, 1]} : vector<64x3xf32> to vector<64x1xf32>
    %19 = vector.extract_strided_slice %16 {offsets = [0, 0], sizes = [1, 64], strides = [1, 1]} : vector<3x64xf32> to vector<1x64xf32>
    %20 = vector.broadcast %18 : vector<64x1xf32> to vector<64x64xf32>
    %21 = vector.broadcast %19 : vector<1x64xf32> to vector<64x64xf32>
    %22 = arith.addf %20, %21 : vector<64x64xf32>
    %cst_14 = arith.constant 2.000000e-01 : f32
    %23 = vector.broadcast %cst_14 : f32 to vector<64x64xf32>
    %24 = arith.mulf %23, %22 : vector<64x64xf32>
    %25 = arith.maximumf %22, %24 : vector<64x64xf32>
    %26 = arith.addf %25, %5 : vector<64x64xf32>
    %cst_15 = arith.constant dense<0xFF800000> : vector<64xf32>
    %27 = vector.multi_reduction <maximumf>, %26, %cst_15 [1] : vector<64x64xf32> to vector<64xf32>
    %28 = vector.shape_cast %27 : vector<64xf32> to vector<64x1xf32>
    %29 = vector.broadcast %28 : vector<64x1xf32> to vector<64x64xf32>
    %30 = arith.subf %26, %29 : vector<64x64xf32>
    %31 = math.exp %30 : vector<64x64xf32>
    %cst_16 = arith.constant dense<0.000000e+00> : vector<64xf32>
    %32 = vector.multi_reduction <add>, %31, %cst_16 [1] : vector<64x64xf32> to vector<64xf32>
    %33 = vector.shape_cast %32 : vector<64xf32> to vector<64x1xf32>
    %34 = tpu.reciprocal %33 {approx = true} : vector<64x1xf32> -> vector<64x1xf32>
    %35 = vector.broadcast %34 : vector<64x1xf32> to vector<64x64xf32>
    %36 = arith.mulf %31, %35 : vector<64x64xf32>
    %37 = arith.truncf %36 : vector<64x64xf32> to vector<64x64xbf16>
    %cst_17 = arith.constant dense<0.000000e+00> : vector<64x128xf32>
    %38 = tpu.matmul %37, %12, %cst_17 {dimension_numbers = #tpu.dot_dimension_numbers<[1], [0], [0], [1], [0, 0, 1, 1], [], []>} : vector<64x64xbf16>, vector<64x128xbf16>, vector<64x128xf32> -> vector<64x128xf32>
    %c0_i32 = arith.constant 0 : i32
    %39 = vector.broadcast %c0_i32 : i32 to vector<1x128xi32>
    %40 = arith.cmpi sge, %17, %39 : vector<1x128xi32>
    %c32_i32 = arith.constant 32 : i32
    %41 = vector.broadcast %c32_i32 : i32 to vector<1x128xi32>
    %42 = arith.cmpi slt, %17, %41 : vector<1x128xi32>
    %43 = arith.andi %40, %42 : vector<1x128xi1>
    %cst_18 = arith.constant 0.000000e+00 : f32
    %44 = vector.shape_cast %43 : vector<1x128xi1> to vector<1x128xi1>
    %45 = vector.broadcast %44 : vector<1x128xi1> to vector<64x128xi1>
    %46 = vector.broadcast %cst_18 : f32 to vector<64x128xf32>
    %47 = arith.select %45, %38, %46 : vector<64x128xi1>, vector<64x128xf32>
    %48 = vector.extract_strided_slice %14 {offsets = [0, 1], sizes = [64, 1], strides = [1, 1]} : vector<64x3xf32> to vector<64x1xf32>
    %49 = vector.extract_strided_slice %16 {offsets = [1, 0], sizes = [1, 64], strides = [1, 1]} : vector<3x64xf32> to vector<1x64xf32>
    %50 = vector.broadcast %48 : vector<64x1xf32> to vector<64x64xf32>
    %51 = vector.broadcast %49 : vector<1x64xf32> to vector<64x64xf32>
    %52 = arith.addf %50, %51 : vector<64x64xf32>
    %cst_19 = arith.constant 2.000000e-01 : f32
    %53 = vector.broadcast %cst_19 : f32 to vector<64x64xf32>
    %54 = arith.mulf %53, %52 : vector<64x64xf32>
    %55 = arith.maximumf %52, %54 : vector<64x64xf32>
    %56 = arith.addf %55, %5 : vector<64x64xf32>
    %cst_20 = arith.constant dense<0xFF800000> : vector<64xf32>
    %57 = vector.multi_reduction <maximumf>, %56, %cst_20 [1] : vector<64x64xf32> to vector<64xf32>
    %58 = vector.shape_cast %57 : vector<64xf32> to vector<64x1xf32>
    %59 = vector.broadcast %58 : vector<64x1xf32> to vector<64x64xf32>
    %60 = arith.subf %56, %59 : vector<64x64xf32>
    %61 = math.exp %60 : vector<64x64xf32>
    %cst_21 = arith.constant dense<0.000000e+00> : vector<64xf32>
    %62 = vector.multi_reduction <add>, %61, %cst_21 [1] : vector<64x64xf32> to vector<64xf32>
    %63 = vector.shape_cast %62 : vector<64xf32> to vector<64x1xf32>
    %64 = tpu.reciprocal %63 {approx = true} : vector<64x1xf32> -> vector<64x1xf32>
    %65 = vector.broadcast %64 : vector<64x1xf32> to vector<64x64xf32>
    %66 = arith.mulf %61, %65 : vector<64x64xf32>
    %67 = arith.truncf %66 : vector<64x64xf32> to vector<64x64xbf16>
    %cst_22 = arith.constant dense<0.000000e+00> : vector<64x128xf32>
    %68 = tpu.matmul %67, %12, %cst_22 {dimension_numbers = #tpu.dot_dimension_numbers<[1], [0], [0], [1], [0, 0, 1, 1], [], []>} : vector<64x64xbf16>, vector<64x128xbf16>, vector<64x128xf32> -> vector<64x128xf32>
    %c32_i32_23 = arith.constant 32 : i32
    %69 = vector.broadcast %c32_i32_23 : i32 to vector<1x128xi32>
    %70 = arith.cmpi sge, %17, %69 : vector<1x128xi32>
    %c64_i32 = arith.constant 64 : i32
    %71 = vector.broadcast %c64_i32 : i32 to vector<1x128xi32>
    %72 = arith.cmpi slt, %17, %71 : vector<1x128xi32>
    %73 = arith.andi %70, %72 : vector<1x128xi1>
    %cst_24 = arith.constant 0.000000e+00 : f32
    %74 = vector.shape_cast %73 : vector<1x128xi1> to vector<1x128xi1>
    %75 = vector.broadcast %74 : vector<1x128xi1> to vector<64x128xi1>
    %76 = vector.broadcast %cst_24 : f32 to vector<64x128xf32>
    %77 = arith.select %75, %68, %76 : vector<64x128xi1>, vector<64x128xf32>
    %78 = arith.addf %47, %77 : vector<64x128xf32>
    %79 = vector.extract_strided_slice %14 {offsets = [0, 2], sizes = [64, 1], strides = [1, 1]} : vector<64x3xf32> to vector<64x1xf32>
    %80 = vector.extract_strided_slice %16 {offsets = [2, 0], sizes = [1, 64], strides = [1, 1]} : vector<3x64xf32> to vector<1x64xf32>
    %81 = vector.broadcast %79 : vector<64x1xf32> to vector<64x64xf32>
    %82 = vector.broadcast %80 : vector<1x64xf32> to vector<64x64xf32>
    %83 = arith.addf %81, %82 : vector<64x64xf32>
    %cst_25 = arith.constant 2.000000e-01 : f32
    %84 = vector.broadcast %cst_25 : f32 to vector<64x64xf32>
    %85 = arith.mulf %84, %83 : vector<64x64xf32>
    %86 = arith.maximumf %83, %85 : vector<64x64xf32>
    %87 = arith.addf %86, %5 : vector<64x64xf32>
    %cst_26 = arith.constant dense<0xFF800000> : vector<64xf32>
    %88 = vector.multi_reduction <maximumf>, %87, %cst_26 [1] : vector<64x64xf32> to vector<64xf32>
    %89 = vector.shape_cast %88 : vector<64xf32> to vector<64x1xf32>
    %90 = vector.broadcast %89 : vector<64x1xf32> to vector<64x64xf32>
    %91 = arith.subf %87, %90 : vector<64x64xf32>
    %92 = math.exp %91 : vector<64x64xf32>
    %cst_27 = arith.constant dense<0.000000e+00> : vector<64xf32>
    %93 = vector.multi_reduction <add>, %92, %cst_27 [1] : vector<64x64xf32> to vector<64xf32>
    %94 = vector.shape_cast %93 : vector<64xf32> to vector<64x1xf32>
    %95 = tpu.reciprocal %94 {approx = true} : vector<64x1xf32> -> vector<64x1xf32>
    %96 = vector.broadcast %95 : vector<64x1xf32> to vector<64x64xf32>
    %97 = arith.mulf %92, %96 : vector<64x64xf32>
    %98 = arith.truncf %97 : vector<64x64xf32> to vector<64x64xbf16>
    %cst_28 = arith.constant dense<0.000000e+00> : vector<64x128xf32>
    %99 = tpu.matmul %98, %12, %cst_28 {dimension_numbers = #tpu.dot_dimension_numbers<[1], [0], [0], [1], [0, 0, 1, 1], [], []>} : vector<64x64xbf16>, vector<64x128xbf16>, vector<64x128xf32> -> vector<64x128xf32>
    %c64_i32_29 = arith.constant 64 : i32
    %100 = vector.broadcast %c64_i32_29 : i32 to vector<1x128xi32>
    %101 = arith.cmpi sge, %17, %100 : vector<1x128xi32>
    %c96_i32 = arith.constant 96 : i32
    %102 = vector.broadcast %c96_i32 : i32 to vector<1x128xi32>
    %103 = arith.cmpi slt, %17, %102 : vector<1x128xi32>
    %104 = arith.andi %101, %103 : vector<1x128xi1>
    %cst_30 = arith.constant 0.000000e+00 : f32
    %105 = vector.shape_cast %104 : vector<1x128xi1> to vector<1x128xi1>
    %106 = vector.broadcast %105 : vector<1x128xi1> to vector<64x128xi1>
    %107 = vector.broadcast %cst_30 : f32 to vector<64x128xf32>
    %108 = arith.select %106, %99, %107 : vector<64x128xi1>, vector<64x128xf32>
    %109 = arith.addf %78, %108 : vector<64x128xf32>
    %110 = arith.addf %109, %11 : vector<64x128xf32>
    %c0_31 = arith.constant 0 : index
    %c0_32 = arith.constant 0 : index
    %111 = vector.load %arg6[%c0_31, %c0_32] : memref<1x128xf32, #tpu.memory_space<vmem>>, vector<1x128xf32>
    %112 = vector.broadcast %111 : vector<1x128xf32> to vector<64x128xf32>
    %113 = arith.addf %110, %112 : vector<64x128xf32>
    %c0_33 = arith.constant 0 : index
    %c0_34 = arith.constant 0 : index
    %114 = vector.load %arg7[%c0_33, %c0_34] : memref<2x128xf32, #tpu.memory_space<vmem>>, vector<1x128xf32>
    %115 = vector.broadcast %114 : vector<1x128xf32> to vector<64x128xf32>
    %116 = arith.mulf %113, %115 : vector<64x128xf32>
    %c1 = arith.constant 1 : index
    %c0_35 = arith.constant 0 : index
    %117 = vector.load %arg7[%c1, %c0_35] : memref<2x128xf32, #tpu.memory_space<vmem>>, vector<1x128xf32>
    %118 = vector.broadcast %117 : vector<1x128xf32> to vector<64x128xf32>
    %119 = arith.addf %116, %118 : vector<64x128xf32>
    %cst_36 = arith.constant 0.000000e+00 : f32
    %120 = vector.broadcast %cst_36 : f32 to vector<64x128xf32>
    %121 = arith.maximumf %119, %120 : vector<64x128xf32>
    %122 = arith.truncf %121 : vector<64x128xf32> to vector<64x128xbf16>
    %c0_37 = arith.constant 0 : index
    %c0_38 = arith.constant 0 : index
    %123 = vector.load %arg8[%c0_37, %c0_38] : memref<128x128xbf16, #tpu.memory_space<vmem>>, vector<128x128xbf16>
    %cst_39 = arith.constant dense<0.000000e+00> : vector<64x128xf32>
    %124 = tpu.matmul %122, %123, %cst_39 {dimension_numbers = #tpu.dot_dimension_numbers<[1], [0], [0], [1], [0, 0, 1, 1], [], []>} : vector<64x128xbf16>, vector<128x128xbf16>, vector<64x128xf32> -> vector<64x128xf32>
    %125 = arith.truncf %124 : vector<64x128xf32> to vector<64x128xbf16>
    %c0_40 = arith.constant 0 : index
    %c0_41 = arith.constant 0 : index
    %126 = vector.load %arg9[%c0_40, %c0_41] : memref<128x3xbf16, #tpu.memory_space<vmem>>, vector<128x3xbf16>
    %cst_42 = arith.constant dense<0.000000e+00> : vector<64x3xf32>
    %127 = tpu.matmul %125, %126, %cst_42 {dimension_numbers = #tpu.dot_dimension_numbers<[1], [0], [0], [1], [0, 0, 1, 1], [], []>} : vector<64x128xbf16>, vector<128x3xbf16>, vector<64x3xf32> -> vector<64x3xf32>
    %c0_43 = arith.constant 0 : index
    %c0_44 = arith.constant 0 : index
    %128 = vector.load %arg10[%c0_43, %c0_44] : memref<3x128xbf16, #tpu.memory_space<vmem>>, vector<3x128xbf16>
    %cst_45 = arith.constant dense<0.000000e+00> : vector<3x64xf32>
    %129 = tpu.matmul %128, %125, %cst_45 {dimension_numbers = #tpu.dot_dimension_numbers<[1], [1], [0], [0], [0, 0, 1, 0], [], []>} : vector<3x128xbf16>, vector<64x128xbf16>, vector<3x64xf32> -> vector<3x64xf32>
    %130 = tpu.iota {dimensions = array<i32: 1>} : vector<1x128xi32>
    %131 = vector.extract_strided_slice %127 {offsets = [0, 0], sizes = [64, 1], strides = [1, 1]} : vector<64x3xf32> to vector<64x1xf32>
    %132 = vector.extract_strided_slice %129 {offsets = [0, 0], sizes = [1, 64], strides = [1, 1]} : vector<3x64xf32> to vector<1x64xf32>
    %133 = vector.broadcast %131 : vector<64x1xf32> to vector<64x64xf32>
    %134 = vector.broadcast %132 : vector<1x64xf32> to vector<64x64xf32>
    %135 = arith.addf %133, %134 : vector<64x64xf32>
    %cst_46 = arith.constant 2.000000e-01 : f32
    %136 = vector.broadcast %cst_46 : f32 to vector<64x64xf32>
    %137 = arith.mulf %136, %135 : vector<64x64xf32>
    %138 = arith.maximumf %135, %137 : vector<64x64xf32>
    %139 = arith.addf %138, %5 : vector<64x64xf32>
    %cst_47 = arith.constant dense<0xFF800000> : vector<64xf32>
    %140 = vector.multi_reduction <maximumf>, %139, %cst_47 [1] : vector<64x64xf32> to vector<64xf32>
    %141 = vector.shape_cast %140 : vector<64xf32> to vector<64x1xf32>
    %142 = vector.broadcast %141 : vector<64x1xf32> to vector<64x64xf32>
    %143 = arith.subf %139, %142 : vector<64x64xf32>
    %144 = math.exp %143 : vector<64x64xf32>
    %cst_48 = arith.constant dense<0.000000e+00> : vector<64xf32>
    %145 = vector.multi_reduction <add>, %144, %cst_48 [1] : vector<64x64xf32> to vector<64xf32>
    %146 = vector.shape_cast %145 : vector<64xf32> to vector<64x1xf32>
    %147 = tpu.reciprocal %146 {approx = true} : vector<64x1xf32> -> vector<64x1xf32>
    %148 = vector.broadcast %147 : vector<64x1xf32> to vector<64x64xf32>
    %149 = arith.mulf %144, %148 : vector<64x64xf32>
    %150 = arith.truncf %149 : vector<64x64xf32> to vector<64x64xbf16>
    %cst_49 = arith.constant dense<0.000000e+00> : vector<64x128xf32>
    %151 = tpu.matmul %150, %125, %cst_49 {dimension_numbers = #tpu.dot_dimension_numbers<[1], [0], [0], [1], [0, 0, 1, 1], [], []>} : vector<64x64xbf16>, vector<64x128xbf16>, vector<64x128xf32> -> vector<64x128xf32>
    %c0_i32_50 = arith.constant 0 : i32
    %152 = vector.broadcast %c0_i32_50 : i32 to vector<1x128xi32>
    %153 = arith.cmpi sge, %130, %152 : vector<1x128xi32>
    %c32_i32_51 = arith.constant 32 : i32
    %154 = vector.broadcast %c32_i32_51 : i32 to vector<1x128xi32>
    %155 = arith.cmpi slt, %130, %154 : vector<1x128xi32>
    %156 = arith.andi %153, %155 : vector<1x128xi1>
    %cst_52 = arith.constant 0.000000e+00 : f32
    %157 = vector.shape_cast %156 : vector<1x128xi1> to vector<1x128xi1>
    %158 = vector.broadcast %157 : vector<1x128xi1> to vector<64x128xi1>
    %159 = vector.broadcast %cst_52 : f32 to vector<64x128xf32>
    %160 = arith.select %158, %151, %159 : vector<64x128xi1>, vector<64x128xf32>
    %161 = vector.extract_strided_slice %127 {offsets = [0, 1], sizes = [64, 1], strides = [1, 1]} : vector<64x3xf32> to vector<64x1xf32>
    %162 = vector.extract_strided_slice %129 {offsets = [1, 0], sizes = [1, 64], strides = [1, 1]} : vector<3x64xf32> to vector<1x64xf32>
    %163 = vector.broadcast %161 : vector<64x1xf32> to vector<64x64xf32>
    %164 = vector.broadcast %162 : vector<1x64xf32> to vector<64x64xf32>
    %165 = arith.addf %163, %164 : vector<64x64xf32>
    %cst_53 = arith.constant 2.000000e-01 : f32
    %166 = vector.broadcast %cst_53 : f32 to vector<64x64xf32>
    %167 = arith.mulf %166, %165 : vector<64x64xf32>
    %168 = arith.maximumf %165, %167 : vector<64x64xf32>
    %169 = arith.addf %168, %5 : vector<64x64xf32>
    %cst_54 = arith.constant dense<0xFF800000> : vector<64xf32>
    %170 = vector.multi_reduction <maximumf>, %169, %cst_54 [1] : vector<64x64xf32> to vector<64xf32>
    %171 = vector.shape_cast %170 : vector<64xf32> to vector<64x1xf32>
    %172 = vector.broadcast %171 : vector<64x1xf32> to vector<64x64xf32>
    %173 = arith.subf %169, %172 : vector<64x64xf32>
    %174 = math.exp %173 : vector<64x64xf32>
    %cst_55 = arith.constant dense<0.000000e+00> : vector<64xf32>
    %175 = vector.multi_reduction <add>, %174, %cst_55 [1] : vector<64x64xf32> to vector<64xf32>
    %176 = vector.shape_cast %175 : vector<64xf32> to vector<64x1xf32>
    %177 = tpu.reciprocal %176 {approx = true} : vector<64x1xf32> -> vector<64x1xf32>
    %178 = vector.broadcast %177 : vector<64x1xf32> to vector<64x64xf32>
    %179 = arith.mulf %174, %178 : vector<64x64xf32>
    %180 = arith.truncf %179 : vector<64x64xf32> to vector<64x64xbf16>
    %cst_56 = arith.constant dense<0.000000e+00> : vector<64x128xf32>
    %181 = tpu.matmul %180, %125, %cst_56 {dimension_numbers = #tpu.dot_dimension_numbers<[1], [0], [0], [1], [0, 0, 1, 1], [], []>} : vector<64x64xbf16>, vector<64x128xbf16>, vector<64x128xf32> -> vector<64x128xf32>
    %c32_i32_57 = arith.constant 32 : i32
    %182 = vector.broadcast %c32_i32_57 : i32 to vector<1x128xi32>
    %183 = arith.cmpi sge, %130, %182 : vector<1x128xi32>
    %c64_i32_58 = arith.constant 64 : i32
    %184 = vector.broadcast %c64_i32_58 : i32 to vector<1x128xi32>
    %185 = arith.cmpi slt, %130, %184 : vector<1x128xi32>
    %186 = arith.andi %183, %185 : vector<1x128xi1>
    %cst_59 = arith.constant 0.000000e+00 : f32
    %187 = vector.shape_cast %186 : vector<1x128xi1> to vector<1x128xi1>
    %188 = vector.broadcast %187 : vector<1x128xi1> to vector<64x128xi1>
    %189 = vector.broadcast %cst_59 : f32 to vector<64x128xf32>
    %190 = arith.select %188, %181, %189 : vector<64x128xi1>, vector<64x128xf32>
    %191 = arith.addf %160, %190 : vector<64x128xf32>
    %192 = vector.extract_strided_slice %127 {offsets = [0, 2], sizes = [64, 1], strides = [1, 1]} : vector<64x3xf32> to vector<64x1xf32>
    %193 = vector.extract_strided_slice %129 {offsets = [2, 0], sizes = [1, 64], strides = [1, 1]} : vector<3x64xf32> to vector<1x64xf32>
    %194 = vector.broadcast %192 : vector<64x1xf32> to vector<64x64xf32>
    %195 = vector.broadcast %193 : vector<1x64xf32> to vector<64x64xf32>
    %196 = arith.addf %194, %195 : vector<64x64xf32>
    %cst_60 = arith.constant 2.000000e-01 : f32
    %197 = vector.broadcast %cst_60 : f32 to vector<64x64xf32>
    %198 = arith.mulf %197, %196 : vector<64x64xf32>
    %199 = arith.maximumf %196, %198 : vector<64x64xf32>
    %200 = arith.addf %199, %5 : vector<64x64xf32>
    %cst_61 = arith.constant dense<0xFF800000> : vector<64xf32>
    %201 = vector.multi_reduction <maximumf>, %200, %cst_61 [1] : vector<64x64xf32> to vector<64xf32>
    %202 = vector.shape_cast %201 : vector<64xf32> to vector<64x1xf32>
    %203 = vector.broadcast %202 : vector<64x1xf32> to vector<64x64xf32>
    %204 = arith.subf %200, %203 : vector<64x64xf32>
    %205 = math.exp %204 : vector<64x64xf32>
    %cst_62 = arith.constant dense<0.000000e+00> : vector<64xf32>
    %206 = vector.multi_reduction <add>, %205, %cst_62 [1] : vector<64x64xf32> to vector<64xf32>
    %207 = vector.shape_cast %206 : vector<64xf32> to vector<64x1xf32>
    %208 = tpu.reciprocal %207 {approx = true} : vector<64x1xf32> -> vector<64x1xf32>
    %209 = vector.broadcast %208 : vector<64x1xf32> to vector<64x64xf32>
    %210 = arith.mulf %205, %209 : vector<64x64xf32>
    %211 = arith.truncf %210 : vector<64x64xf32> to vector<64x64xbf16>
    %cst_63 = arith.constant dense<0.000000e+00> : vector<64x128xf32>
    %212 = tpu.matmul %211, %125, %cst_63 {dimension_numbers = #tpu.dot_dimension_numbers<[1], [0], [0], [1], [0, 0, 1, 1], [], []>} : vector<64x64xbf16>, vector<64x128xbf16>, vector<64x128xf32> -> vector<64x128xf32>
    %c64_i32_64 = arith.constant 64 : i32
    %213 = vector.broadcast %c64_i32_64 : i32 to vector<1x128xi32>
    %214 = arith.cmpi sge, %130, %213 : vector<1x128xi32>
    %c96_i32_65 = arith.constant 96 : i32
    %215 = vector.broadcast %c96_i32_65 : i32 to vector<1x128xi32>
    %216 = arith.cmpi slt, %130, %215 : vector<1x128xi32>
    %217 = arith.andi %214, %216 : vector<1x128xi1>
    %cst_66 = arith.constant 0.000000e+00 : f32
    %218 = vector.shape_cast %217 : vector<1x128xi1> to vector<1x128xi1>
    %219 = vector.broadcast %218 : vector<1x128xi1> to vector<64x128xi1>
    %220 = vector.broadcast %cst_66 : f32 to vector<64x128xf32>
    %221 = arith.select %219, %212, %220 : vector<64x128xi1>, vector<64x128xf32>
    %222 = arith.addf %191, %221 : vector<64x128xf32>
    %223 = arith.addf %222, %121 : vector<64x128xf32>
    %c0_67 = arith.constant 0 : index
    %c0_68 = arith.constant 0 : index
    %224 = vector.load %arg11[%c0_67, %c0_68] : memref<1x128xf32, #tpu.memory_space<vmem>>, vector<1x128xf32>
    %225 = vector.broadcast %224 : vector<1x128xf32> to vector<64x128xf32>
    %226 = arith.addf %223, %225 : vector<64x128xf32>
    %c0_69 = arith.constant 0 : index
    %c0_70 = arith.constant 0 : index
    %227 = vector.load %arg12[%c0_69, %c0_70] : memref<2x128xf32, #tpu.memory_space<vmem>>, vector<1x128xf32>
    %228 = vector.broadcast %227 : vector<1x128xf32> to vector<64x128xf32>
    %229 = arith.mulf %226, %228 : vector<64x128xf32>
    %c1_71 = arith.constant 1 : index
    %c0_72 = arith.constant 0 : index
    %230 = vector.load %arg12[%c1_71, %c0_72] : memref<2x128xf32, #tpu.memory_space<vmem>>, vector<1x128xf32>
    %231 = vector.broadcast %230 : vector<1x128xf32> to vector<64x128xf32>
    %232 = arith.addf %229, %231 : vector<64x128xf32>
    %cst_73 = arith.constant 0.000000e+00 : f32
    %233 = vector.broadcast %cst_73 : f32 to vector<64x128xf32>
    %234 = arith.maximumf %232, %233 : vector<64x128xf32>
    %235 = arith.truncf %234 : vector<64x128xf32> to vector<64x128xbf16>
    %c0_74 = arith.constant 0 : index
    %c0_75 = arith.constant 0 : index
    %236 = vector.load %arg13[%c0_74, %c0_75] : memref<128x256xbf16, #tpu.memory_space<vmem>>, vector<128x256xbf16>
    %cst_76 = arith.constant dense<0.000000e+00> : vector<64x256xf32>
    %237 = tpu.matmul %235, %236, %cst_76 {dimension_numbers = #tpu.dot_dimension_numbers<[1], [0], [0], [1], [0, 0, 1, 1], [], []>} : vector<64x128xbf16>, vector<128x256xbf16>, vector<64x256xf32> -> vector<64x256xf32>
    %238 = vector.extract_strided_slice %237 {offsets = [0, 0], sizes = [64, 128], strides = [1, 1]} : vector<64x256xf32> to vector<64x128xf32>
    %239 = vector.extract_strided_slice %237 {offsets = [0, 128], sizes = [64, 128], strides = [1, 1]} : vector<64x256xf32> to vector<64x128xf32>
    %240 = arith.truncf %238 : vector<64x128xf32> to vector<64x128xbf16>
    %c0_77 = arith.constant 0 : index
    %c0_78 = arith.constant 0 : index
    %241 = vector.load %arg14[%c0_77, %c0_78] : memref<128x1xbf16, #tpu.memory_space<vmem>>, vector<128x1xbf16>
    %cst_79 = arith.constant dense<0.000000e+00> : vector<64x1xf32>
    %242 = tpu.matmul %240, %241, %cst_79 {dimension_numbers = #tpu.dot_dimension_numbers<[1], [0], [0], [1], [0, 0, 1, 1], [], []>} : vector<64x128xbf16>, vector<128x1xbf16>, vector<64x1xf32> -> vector<64x1xf32>
    %c0_80 = arith.constant 0 : index
    %c0_81 = arith.constant 0 : index
    %243 = vector.load %arg15[%c0_80, %c0_81] : memref<1x128xbf16, #tpu.memory_space<vmem>>, vector<1x128xbf16>
    %cst_82 = arith.constant dense<0.000000e+00> : vector<1x64xf32>
    %244 = tpu.matmul %243, %240, %cst_82 {dimension_numbers = #tpu.dot_dimension_numbers<[1], [1], [0], [0], [0, 0, 1, 0], [], []>} : vector<1x128xbf16>, vector<64x128xbf16>, vector<1x64xf32> -> vector<1x64xf32>
    %245 = tpu.iota {dimensions = array<i32: 1>} : vector<1x128xi32>
    %246 = vector.broadcast %242 : vector<64x1xf32> to vector<64x64xf32>
    %247 = vector.broadcast %244 : vector<1x64xf32> to vector<64x64xf32>
    %248 = arith.addf %246, %247 : vector<64x64xf32>
    %cst_83 = arith.constant 2.000000e-01 : f32
    %249 = vector.broadcast %cst_83 : f32 to vector<64x64xf32>
    %250 = arith.mulf %249, %248 : vector<64x64xf32>
    %251 = arith.maximumf %248, %250 : vector<64x64xf32>
    %252 = arith.addf %251, %5 : vector<64x64xf32>
    %cst_84 = arith.constant dense<0xFF800000> : vector<64xf32>
    %253 = vector.multi_reduction <maximumf>, %252, %cst_84 [1] : vector<64x64xf32> to vector<64xf32>
    %254 = vector.shape_cast %253 : vector<64xf32> to vector<64x1xf32>
    %255 = vector.broadcast %254 : vector<64x1xf32> to vector<64x64xf32>
    %256 = arith.subf %252, %255 : vector<64x64xf32>
    %257 = math.exp %256 : vector<64x64xf32>
    %cst_85 = arith.constant dense<0.000000e+00> : vector<64xf32>
    %258 = vector.multi_reduction <add>, %257, %cst_85 [1] : vector<64x64xf32> to vector<64xf32>
    %259 = vector.shape_cast %258 : vector<64xf32> to vector<64x1xf32>
    %260 = tpu.reciprocal %259 {approx = true} : vector<64x1xf32> -> vector<64x1xf32>
    %261 = vector.broadcast %260 : vector<64x1xf32> to vector<64x64xf32>
    %262 = arith.mulf %257, %261 : vector<64x64xf32>
    %263 = arith.truncf %262 : vector<64x64xf32> to vector<64x64xbf16>
    %cst_86 = arith.constant dense<0.000000e+00> : vector<64x128xf32>
    %264 = tpu.matmul %263, %240, %cst_86 {dimension_numbers = #tpu.dot_dimension_numbers<[1], [0], [0], [1], [0, 0, 1, 1], [], []>} : vector<64x64xbf16>, vector<64x128xbf16>, vector<64x128xf32> -> vector<64x128xf32>
    %c0_i32_87 = arith.constant 0 : i32
    %265 = vector.broadcast %c0_i32_87 : i32 to vector<1x128xi32>
    %266 = arith.cmpi sge, %245, %265 : vector<1x128xi32>
    %c8_i32 = arith.constant 8 : i32
    %267 = vector.broadcast %c8_i32 : i32 to vector<1x128xi32>
    %268 = arith.cmpi slt, %245, %267 : vector<1x128xi32>
    %269 = arith.andi %266, %268 : vector<1x128xi1>
    %cst_88 = arith.constant 0.000000e+00 : f32
    %270 = vector.shape_cast %269 : vector<1x128xi1> to vector<1x128xi1>
    %271 = vector.broadcast %270 : vector<1x128xi1> to vector<64x128xi1>
    %272 = vector.broadcast %cst_88 : f32 to vector<64x128xf32>
    %273 = arith.select %271, %264, %272 : vector<64x128xi1>, vector<64x128xf32>
    %274 = arith.addf %273, %239 : vector<64x128xf32>
    %c0_89 = arith.constant 0 : index
    %c0_90 = arith.constant 0 : index
    %275 = vector.load %arg16[%c0_89, %c0_90] : memref<1x128xf32, #tpu.memory_space<vmem>>, vector<1x128xf32>
    %276 = vector.broadcast %275 : vector<1x128xf32> to vector<64x128xf32>
    %277 = arith.addf %274, %276 : vector<64x128xf32>
    %c0_91 = arith.constant 0 : index
    %c0_92 = arith.constant 0 : index
    %278 = vector.load %arg17[%c0_91, %c0_92] : memref<64x128xf32, #tpu.memory_space<vmem>>, vector<64x128xf32>
    tpu.vector_store %arg17[%c0_91, %c0_92], %277 {strides = array<i32>} : memref<64x128xf32, #tpu.memory_space<vmem>>, vector<64x128xf32>,
    return
  }
  func.func @transform_0(%arg0: i32) -> (i32, i32) {
    %c0_i32 = arith.constant 0 : i32
    %c0_i32_0 = arith.constant 0 : i32
    %c0_i32_1 = arith.constant 0 : i32
    return %c0_i32, %c0_i32_0 : i32, i32
  }
  func.func @transform_1(%arg0: i32) -> (i32, i32) {
    %c0_i32 = arith.constant 0 : i32
    %c0_i32_0 = arith.constant 0 : i32
    %c0_i32_1 = arith.constant 0 : i32
    return %c0_i32, %c0_i32_0 : i32, i32
  }
  func.func @transform_2(%arg0: i32) -> (i32, i32) {
    %c0_i32 = arith.constant 0 : i32
    %c0_i32_0 = arith.constant 0 : i32
    %c0_i32_1 = arith.constant 0 : i32
    return %c0_i32, %c0_i32_0 : i32, i32
  }
  func.func @transform_3(%arg0: i32) -> (i32, i32) {
    %c0_i32 = arith.constant 0 : i32
    %c0_i32_0 = arith.constant 0 : i32
    %c0_i32_1 = arith.constant 0 : i32
    return %c0_i32, %c0_i32_0 : i32, i32
  }
  func.func @transform_4(%arg0: i32) -> (i32, i32) {
    %c0_i32 = arith.constant 0 : i32
    %c0_i32_0 = arith.constant 0 : i32
    %c0_i32_1 = arith.constant 0 : i32
    return %c0_i32, %c0_i32_0 : i32, i32
  }
  func.func @transform_5(%arg0: i32) -> (i32, i32) {
    %c0_i32 = arith.constant 0 : i32
    %c0_i32_0 = arith.constant 0 : i32
    %c0_i32_1 = arith.constant 0 : i32
    return %c0_i32, %c0_i32_0 : i32, i32
  }
  func.func @transform_6(%arg0: i32) -> (i32, i32) {
    %c0_i32 = arith.constant 0 : i32
    %c0_i32_0 = arith.constant 0 : i32
    %c0_i32_1 = arith.constant 0 : i32
    return %c0_i32, %c0_i32_0 : i32, i32
  }
  func.func @transform_7(%arg0: i32) -> (i32, i32) {
    %c0_i32 = arith.constant 0 : i32
    %c0_i32_0 = arith.constant 0 : i32
    %c0_i32_1 = arith.constant 0 : i32
    return %c0_i32, %c0_i32_0 : i32, i32
  }
  func.func @transform_8(%arg0: i32) -> (i32, i32) {
    %c0_i32 = arith.constant 0 : i32
    %c0_i32_0 = arith.constant 0 : i32
    %c0_i32_1 = arith.constant 0 : i32
    return %c0_i32, %c0_i32_0 : i32, i32
  }
  func.func @transform_9(%arg0: i32) -> (i32, i32) {
    %c0_i32 = arith.constant 0 : i32
    %c0_i32_0 = arith.constant 0 : i32
    %c0_i32_1 = arith.constant 0 : i32
    return %c0_i32, %c0_i32_0 : i32, i32
  }
  func.func @transform_10(%arg0: i32) -> (i32, i32) {
    %c0_i32 = arith.constant 0 : i32
    %c0_i32_0 = arith.constant 0 : i32
    %c0_i32_1 = arith.constant 0 : i32
    return %c0_i32, %c0_i32_0 : i32, i32
  }
  func.func @transform_11(%arg0: i32) -> (i32, i32) {
    %c0_i32 = arith.constant 0 : i32
    %c0_i32_0 = arith.constant 0 : i32
    %c0_i32_1 = arith.constant 0 : i32
    return %c0_i32, %c0_i32_0 : i32, i32
  }
  func.func @transform_12(%arg0: i32) -> (i32, i32) {
    %c0_i32 = arith.constant 0 : i32
    %c0_i32_0 = arith.constant 0 : i32
    %c0_i32_1 = arith.constant 0 : i32
    return %c0_i32, %c0_i32_0 : i32, i32
  }
  func.func @transform_13(%arg0: i32) -> (i32, i32) {
    %c0_i32 = arith.constant 0 : i32
    %c0_i32_0 = arith.constant 0 : i32
    %c0_i32_1 = arith.constant 0 : i32
    return %c0_i32, %c0_i32_0 : i32, i32
  }
  func.func @transform_14(%arg0: i32) -> (i32, i32) {
    %c0_i32 = arith.constant 0 : i32
    %c0_i32_0 = arith.constant 0 : i32
    %c0_i32_1 = arith.constant 0 : i32
    return %c0_i32, %c0_i32_0 : i32, i32
  }
  func.func @transform_15(%arg0: i32) -> (i32, i32) {
    %c0_i32 = arith.constant 0 : i32
    %c0_i32_0 = arith.constant 0 : i32
    %c0_i32_1 = arith.constant 0 : i32
    return %c0_i32, %c0_i32_0 : i32, i32
  }
  func.func @transform_16(%arg0: i32) -> (i32, i32) {
    %c0_i32 = arith.constant 0 : i32
    %c0_i32_0 = arith.constant 0 : i32
    %c0_i32_1 = arith.constant 0 : i32
    return %c0_i32, %c0_i32_0 : i32, i32
  }
}

</mosaic_0001>

<bundles_post_ra>
// kernel: tpu_custom_call.1
= control target key start
LH: loop header
LB: loop body
LE: loop exit
PB: predicated region body
PF: predicated region fallthrough
CT: control target
= control target key end

     0   :  { %s5244_s0 = inlined_call_operand.vmem [shape: f32[64,64], index: 0, kind: input, shape index: {}]   ;;  %s5245_s1 = inlined_call_operand.vmem [shape: f32[64,32], index: 1, kind: input, shape index: {}]   ;;  %s5246_s2 = inlined_call_operand.vmem [shape: bf16[32,256], index: 2, kind: input, shape index: {}]   ;;  %s5247_s3 = inlined_call_operand.vmem [shape: bf16[128,3], index: 3, kind: input, shape index: {}]   ;;  %s5248_s4 = inlined_call_operand.vmem [shape: bf16[3,128], index: 4, kind: input, shape index: {}]   ;;  %s5249_s5 = inlined_call_operand.vmem [shape: f32[1,128], index: 5, kind: input, shape index: {}]   ;;  %s5250_s6 = inlined_call_operand.vmem [shape: f32[2,128], index: 6, kind: input, shape index: {}]   ;;  %s5251_s7 = inlined_call_operand.vmem [shape: bf16[128,128], index: 7, kind: input, shape index: {}]   ;;  %s5252_s8 = inlined_call_operand.vmem [shape: bf16[128,3], index: 8, kind: input, shape index: {}]   ;;  %s5253_s9 = inlined_call_operand.vmem [shape: bf16[3,128], index: 9, kind: input, shape index: {}]   ;;  %s5254_s10 = inlined_call_operand.vmem [shape: f32[1,128], index: 10, kind: input, shape index: {}]   ;;  %s5255_s11 = inlined_call_operand.vmem [shape: f32[2,128], index: 11, kind: input, shape index: {}]   ;;  %s5256_s12 = inlined_call_operand.vmem [shape: bf16[128,256], index: 12, kind: input, shape index: {}]   ;;  %s5257_s13 = inlined_call_operand.vmem [shape: bf16[128,1], index: 13, kind: input, shape index: {}]   ;;  %s5258_s14 = inlined_call_operand.vmem [shape: bf16[1,128], index: 14, kind: input, shape index: {}]   ;;  %s5259_s15 = inlined_call_operand.vmem [shape: f32[1,128], index: 15, kind: input, shape index: {}]   ;;  %s5260_s16 = inlined_call_operand.hbm [shape: f32[64,128], index: 16, kind: output, shape index: {}]  }
   0x1   :  { %5288 = sst [smem:[#allocation8_spill]] %s5244_s0 }
   0x2   :  { %v3479_v0 = vld [vmem:[%s5246_s2 + $0x4] ss:$8 sps:$4 sm:$0xff]   ;;  %v3481_v1 = vld [vmem:[%s5246_s2] ss:$8 sps:$4 sm:$0xff]   ;;  %v5268_v2 = vmov 0   ;;  %vm115_vm0 = vcmask 261120  }
   0x3   :  { %160 = vmatprep.mubr.bf16.mxu0 %v5268_v2  ;;  %3446 = vset.pattern.permute.xlu1 %v5268_v2  ;;  %v3482_v3 = vld [vmem:[%s5246_s2 + $0x14] ss:$8 sps:$4 sm:$0xff]   ;;  %v3484_v4 = vld [vmem:[%s5246_s2 + $0x10] ss:$8 sps:$4 sm:$0xff]   ;;  %v79_v5 = vld [vmem:[%s5245_s1] sm:$0xff] }
   0x4   :  { %128 = vmatprep.subr.bf16.mxu0 %v3479_v0  ;;  %3449 = vset.pattern.permute.xlu0 %v5268_v2  ;;  %v80_v6 = vld [vmem:[%s5245_s1 + $0x8] sm:$0xff]  ;;  %v3485_v8 = vld [vmem:[%s5247_s3] sm:$0xff]   ;;  %v81_v10 = vld [vmem:[%s5245_s1 + $0x10] sm:$0xff] }
   0x5   :  { %129 = vmatpush1.bf16.msra.mxu0 %v3481_v1  ;;  %v87_v7 = vpack.c.bf16 %v80_v6, %v79_v5  ;;  %v3486_v9 = vld [vmem:[%s5247_s3 + $0x8] sm:$0xff]   ;;  %3193 = vmatprep.subr.bf16.mxu1 %v3485_v8  ;;  %v3487_v11 = vld [vmem:[%s5247_s3 + $0x10] sm:$0xff]   ;;  %v82_v12 = vld [vmem:[%s5245_s1 + $0x18] sm:$0xff] }
   0x6   :  { %130 = vmatprep.subr.bf16.mxu0 %v3482_v3  ;;  %3194 = vmatpush3.bf16.msra.mxu1 %v3485_v8  ;;  %v3488_v13 = vld [vmem:[%s5247_s3 + $0x18] sm:$0xff]   ;;  %v88_v14 = vpack.c.bf16 %v82_v12, %v81_v10  ;;  %v3489_v15 = vld [vmem:[%s5247_s3 + $0x20] sm:$0xff]   ;;  %v84_v17 = vld [vmem:[%s5245_s1 + $0x28] sm:$0xff] }
   0x7   :  { %3195 = vmatprep.subr.bf16.mxu1 %v3486_v9  ;;  %v83_v16 = vld [vmem:[%s5245_s1 + $0x20] sm:$0xff]  ;;  %v3490_v18 = vld [vmem:[%s5247_s3 + $0x28] sm:$0xff]   ;;  %v3491_v20 = vld [vmem:[%s5247_s3 + $0x30] sm:$0xff]  }
   0x8   :  { %v89_v19 = vpack.c.bf16 %v84_v17, %v83_v16  ;;  %v85_v21 = vld [vmem:[%s5245_s1 + $0x30] sm:$0xff]  ;;  %v86_v22 = vld [vmem:[%s5245_s1 + $0x38] sm:$0xff] }
   0x9   :  { %131 = vmatpush1.bf16.msra.mxu0 %v3484_v4  ;;  %v90_v23 = vpack.c.bf16 %v86_v22, %v85_v21 }
   0xa   :  { %3196 = vmatpush3.bf16.msra.mxu1 %v3486_v9 }
   0xb   :  { %3197 = vmatprep.subr.bf16.mxu1 %v3487_v11 }
   0xc   :  { %2987 = vmatmul.mubr.msk.bf16.vlgmr.msra.gmra.mrb[0].mxu0 %vm115_vm0, %v87_v7 }
   0xd   :  { %170 = vmatprep.mubr.bf16.mxu0 %v5268_v2 }
   0xe   :  { %3198 = vmatpush3.bf16.msra.mxu1 %v3487_v11 }
   0xf   :  { %3199 = vmatprep.subr.bf16.mxu1 %v3488_v13 }
  0x12   :  { %3200 = vmatpush3.bf16.msra.mxu1 %v3488_v13 }
  0x13   :  { %3201 = vmatprep.subr.bf16.mxu1 %v3489_v15 }
  0x14   :  { %2988 = vmatmul.mubr.msk.bf16.gmra.mrb[4].mxu0 %vm115_vm0, %v88_v14 }
  0x15   :  { %180 = vmatprep.mubr.bf16.mxu0 %v5268_v2 }
  0x16   :  { %3202 = vmatpush3.bf16.msra.mxu1 %v3489_v15 }
  0x17   :  { %3203 = vmatprep.subr.bf16.mxu1 %v3490_v18 }
  0x1a   :  { %3204 = vmatpush3.bf16.msra.mxu1 %v3490_v18 }
  0x1b   :  { %3205 = vmatprep.subr.bf16.mxu1 %v3491_v20 }
  0x1c   :  { %2989 = vmatmul.mubr.msk.bf16.gmra.mrb[8].mxu0 %vm115_vm0, %v89_v19 }
  0x1d   :  { %190 = vmatprep.mubr.bf16.mxu0 %v5268_v2 }
  0x1e   :  { %3206 = vmatpush3.bf16.msra.mxu1 %v3491_v20 }
  0x24   :  { %2990 = vmatmul.mubr.msk.bf16.gmra.mrb[12].mxu0 %vm115_vm0, %v90_v23 }
  0x25   :  { %21 = vsyncpa [#allocation3], 0  ;;  %v3492_v24 = vld [vmem:[%s5247_s3 + $0x38] sm:$0xff]   ;;  %v5271_v25 = vmov 0.0   ;;  %vm3791_vm1 = vmmov 0   ;;  %v5266_v51 = vmov 1   ;;  %v5270_v61 = vlaneseq }
  0x26   :  { %3207 = vmatprep.subr.bf16.mxu1 %v3492_v24  ;;  %3217 = vmatprep.subr.bf16.mxu0 %v5271_v25  ;;  %v334_v46 = vld [vmem:[%s5248_s4] sm:$0x3]  ;;  %v5264_v52 = vmov 2   ;;  %s5289_s30 = sld [smem:[#allocation8_spill]]  ;;  %v3794_v12 = vmov -1e+30  }
  0x27   :  { %3208 = vmatpush3.bf16.msra.mxu1 %v3492_v24  ;;  %3225 = vmatprep.mubr.msk.bf16.mxu0 %vm3791_vm1, %v5271_v25  ;;  %v4030_v62 = vshrl.u32 %v5270_v61, 7  ;;  %vm453_vm4 = vcmask 523264  }
  0x29   :  { %v4033_v63 = vsub.s32 0, %v4030_v62  ;;  %v5263_v1 = vsub.s32 1, %v4030_v62  ;;  %v5262_v23 = vsub.s32 2, %v4030_v62 }
  0x2c   :  { %v57_v3 = vld [vmem:[%s5289_s30 + $0x10] sm:$0xff]  ;;  %v55_v5 = vld [vmem:[%s5289_s30] sm:$0xff] }
  0x2d   :  { %vm65_vm2 = vcmp.gt.f32.partialorder %v57_v3, 0.0  ;;  %vm63_vm3 = vcmp.gt.f32.partialorder %v55_v5, 0.0 }
  0x2e   :  { %v4054_v13 = vsel %vm65_vm2, 0.0, %v3794_v12  ;;  %v4058_v19 = vsel %vm63_vm3, 0.0, %v3794_v12 }
  0xdf   :  { %v162_v26 = vpop.f32.mrb[0].mxu0 }
  0xe0   :  { %v3956_v27 = vpop.f32.mrb[1].mxu0 }
  0xe1   :  { %v166_v28 = vpop.f32.mrb[2].mxu0 }
  0xe2   :  { %v3958_v29 = vpack.c.bf16 %v166_v28, %v162_v26  ;;  %v3960_v30 = vpop.f32.mrb[3].mxu0 }
  0xe4   :  { %3209 = vmatprep.mubr.bf16.mxu1 %v3958_v29  ;;  %3218 = vmatpush3.bf16.xpose.msra.mxu0 %v3958_v29 }
  0xe5   :  { %3229 = vmatprep.subr.bf16.mxu1 %v3958_v29  ;;  %3219 = vmatprep.subr.bf16.mxu0 %v5271_v25 }
  0xe7   :  { %v172_v31 = vpop.f32.mrb[4].mxu0 }
  0xe8   :  { %v3966_v32 = vpop.f32.mrb[5].mxu0 }
  0xe9   :  { %v176_v33 = vpop.f32.mrb[6].mxu0 }
  0xea   :  { %v3968_v34 = vpack.c.bf16 %v176_v33, %v172_v31  ;;  %v3970_v35 = vpop.f32.mrb[7].mxu0 }
  0xec   :  { %3210 = vmatmul.mubr.bf16.vlgmr.msra.gmra.mrb[0].mxu1 %v3968_v34  ;;  %3220 = vmatpush3.bf16.xpose.msra.mxu0 %v3968_v34 }
  0xed   :  { %3230 = vmatpush3.bf16.msra.mxu1 %v3958_v29  ;;  %3221 = vmatprep.subr.bf16.mxu0 %v5271_v25 }
  0xee   :  { %3231 = vmatprep.subr.bf16.mxu1 %v3968_v34 }
  0xef   :  { %v182_v36 = vpop.f32.mrb[8].mxu0 }
  0xf0   :  { %v3977_v37 = vpop.f32.mrb[9].mxu0 }
  0xf1   :  { %3232 = vmatpush3.bf16.msra.mxu1 %v3968_v34  ;;  %v186_v38 = vpop.f32.mrb[10].mxu0 }
  0xf2   :  { %v3980_v39 = vpack.c.bf16 %v186_v38, %v182_v36  ;;  %v3982_v40 = vpop.f32.mrb[11].mxu0 }
  0xf4   :  { %3222 = vmatpush3.bf16.xpose.msra.mxu0 %v3980_v39  ;;  %3233 = vmatprep.subr.bf16.mxu1 %v3980_v39 }
  0xf5   :  { %3213 = vmatprep.mubr.bf16.mxu1 %v3980_v39  ;;  %3234 = vmatpush3.bf16.msra.mxu1 %v3980_v39 }
  0xf6   :  { %3223 = vmatprep.subr.bf16.mxu0 %v5271_v25 }
  0xf7   :  { %v192_v41 = vpop.f32.mrb[12].mxu0 }
  0xf8   :  { %v3989_v42 = vpop.f32.mrb[13].mxu0 }
  0xf9   :  { %v196_v43 = vpop.f32.mrb[14].mxu0 }
  0xfa   :  { %v3991_v44 = vpack.c.bf16 %v196_v43, %v192_v41  ;;  %v3993_v45 = vpop.f32.mrb[15].mxu0 }
  0xfc   :  { %3214 = vmatmul.mubr.bf16.gmra.mrb[4].mxu1 %v3991_v44  ;;  %3224 = vmatpush3.bf16.xpose.msra.mxu0 %v3991_v44 }
  0xfd   :  { %3235 = vmatprep.subr.bf16.mxu1 %v3991_v44  ;;  %3245 = vmatprep.subr.bf16.mxu0 %v3958_v29 }
  0xfe   :  { %3236 = vmatpush3.bf16.msra.mxu1 %v3991_v44 }
  0xff   :  { %3261 = vmatprep.subr.bf16.mxu1 %v3958_v29 }
 0x103   :  { %3226 = vmatmul.mubr.bf16.vlgmr.msra.gmra.mrb[16].mxu0 %v334_v46 }
 0x104   :  { %3246 = vmatpush3.bf16.msra.mxu0 %v3958_v29 }
 0x105   :  { %3247 = vmatprep.subr.bf16.mxu0 %v3968_v34 }
 0x108   :  { %3248 = vmatpush3.bf16.msra.mxu0 %v3968_v34 }
 0x109   :  { %3249 = vmatprep.subr.bf16.mxu0 %v3980_v39 }
 0x10c   :  { %3250 = vmatpush3.bf16.msra.mxu0 %v3980_v39 }
 0x10d   :  { %3251 = vmatprep.subr.bf16.mxu0 %v3991_v44 }
 0x110   :  { %3252 = vmatpush3.bf16.msra.mxu0 %v3991_v44 }
 0x1bf   :  { %v3211_v47 = vpop.f32.mrb[0].mxu1 }
 0x1c0   :  { %389 = vperm.xlu1 %3446, %v3211_v47   ;;  %v303_v48 = vpop.f32.mrb[1].mxu1 }
 0x1c1   :  { %379 = vperm.xlu0 %3449, %v303_v48   ;;  %v3212_v49 = vpop.f32.mrb[2].mxu1 }
 0x1c2   :  { %v306_v50 = vpop.f32.mrb[3].mxu1 }
 0x1c4   :  { %3447 = vset.pattern.permute.xlu1 %v5266_v51 }
 0x1c5   :  { %645 = vperm.xlu1 %3447, %v3211_v47   ;;  %3450 = vset.pattern.permute.xlu0 %v5266_v51 }
 0x1c6   :  { %637 = vperm.xlu0 %3450, %v303_v48  }
 0x1c9   :  { %3448 = vset.pattern.permute.xlu1 %v5264_v52 }
 0x1ca   :  { %903 = vperm.xlu1 %3448, %v3211_v47   ;;  %649 = vperm.xlu0 %3450, %v3212_v49   ;;  %v56_v47 = vld [vmem:[%s5289_s30 + $0x8] sm:$0xff] }
 0x1cb   :  { %vm64_vm5 = vcmp.gt.f32.partialorder %v56_v47, 0.0 }
 0x1ce   :  { %895 = vperm.xlu1 %3448, %v303_v48   ;;  %3453 = vset.pattern.permute.xlu0 %v5268_v2 }
 0x1cf   :  { %384 = vperm.xlu0 %3453, %v306_v50   ;;  %v3215_v53 = vpop.f32.mrb[4].mxu1 }
 0x1d0   :  { %v319_v54 = vpop.f32.mrb[5].mxu1 }
 0x1d1   :  { %v3216_v55 = vpop.f32.mrb[6].mxu1 }
 0x1d2   :  { %3451 = vset.pattern.permute.xlu1 %v5268_v2  ;;  %v322_v56 = vpop.f32.mrb[7].mxu1 }
 0x1d3   :  { %394 = vperm.xlu1 %3451, %v3212_v49   ;;  %409 = vperm.xlu0 %3453, %v3215_v53  }
 0x1d6   :  { %v4016_v57 = vpop.f32.mrb[16].mxu0 }
 0x1d7   :  { %3452 = vset.pattern.permute.xlu1 %v5264_v52  ;;  %399 = vperm.xlu0 %3453, %v319_v54   ;;  %v3227_v58 = vpop.f32.mrb[17].mxu0  ;;  %v4037_v0 = vrot.slane %v4016_v57, %v4033_v63  ;;  %v4050_v8 = vrot.slane %v4016_v57, %v5263_v1  ;;  %v4076_v43 = vrot.slane %v4016_v57, %v5262_v23  ;;  %v61_v57 = vld [vmem:[%s5289_s30 + $0x30] sm:$0xff] }
 0x1d8   :  { %907 = vperm.xlu1 %3452, %v3212_v49   ;;  %v372_v59 = vpop.f32.mrb[18].mxu0  ;;  %vm69_vm6 = vcmp.gt.f32.partialorder %v61_v57, 0.0 }
 0x1d9   :  { %v3228_v60 = vpop.f32.mrb[19].mxu0 }
 0x1db   :  { %3455 = vset.pattern.permute.xlu0 %v5266_v51 }
 0x1dc   :  { %3454 = vset.pattern.permute.xlu1 %v5266_v51  ;;  %653 = vperm.xlu0 %3455, %v319_v54  }
 0x1dd   :  { %641 = vperm.xlu1 %3454, %v306_v50  }
 0x1e0   :  { %665 = vperm.xlu0 %3455, %v3216_v55  }
 0x1e1   :  { %3456 = vset.pattern.permute.xlu1 %v5268_v2 }
 0x1e2   :  { %414 = vperm.xlu1 %3456, %v3216_v55  }
 0x1e4   :  { %3458 = vset.pattern.permute.xlu0 %v5264_v52 }
 0x1e5   :  { %899 = vperm.xlu0 %3458, %v306_v50  }
 0x1e6   :  { %404 = vperm.xlu1 %3456, %v322_v56  }
 0x1e9   :  { %915 = vperm.xlu0 %3458, %v322_v56  }
 0x1ea   :  { %3457 = vset.pattern.permute.xlu1 %v5266_v51 }
 0x1eb   :  { %661 = vperm.xlu1 %3457, %v3215_v53  }
 0x1ed   :  { %3463 = vset.pattern.permute.xlu0 %v5266_v51 }
 0x1ef   :  { %3459 = vset.pattern.permute.xlu1 %v5264_v52 }
 0x1f0   :  { %911 = vperm.xlu1 %3459, %v319_v54  }
 0x1f4   :  { %919 = vperm.xlu1 %3459, %v3215_v53  }
 0x1f8   :  { %3460 = vset.pattern.permute.xlu1 %v5266_v51 }
 0x1f9   :  { %657 = vperm.xlu1 %3460, %v322_v56  }
 0x1fd   :  { %3461 = vset.pattern.permute.xlu1 %v5264_v52 }
 0x1fe   :  { %923 = vperm.xlu1 %3461, %v3216_v55  }
 0x202   :  { %3462 = vset.pattern.permute.xlu1 %v5268_v2 }
 0x23f   :  { %v390_v4 = vpop.permute.xlu1 %389 }
 0x240   :  { %v423_v6 = vadd.f32 %v4037_v0, %v390_v4  ;;  %v380_v7 = vpop.permute.xlu0 %379 }
 0x241   :  { %v421_v9 = vadd.f32 %v4037_v0, %v380_v7  ;;  %v58_v7 = vld [vmem:[%s5289_s30 + $0x18] sm:$0xff] }
 0x242   :  { %v431_v10 = vmul.f32 0.2, %v423_v6  ;;  %vm66_vm7 = vcmp.gt.f32.partialorder %v58_v7, 0.0 }
 0x243   :  { %v429_v11 = vmul.f32 0.2, %v421_v9 }
 0x244   :  { %v439_v14 = vmax.f32 %v423_v6, %v431_v10  ;;  %v646_v15 = vpop.permute.xlu1 %645  ;;  %v4097_v6 = vsel %vm64_vm5, 0.0, %v3794_v12 }
 0x245   :  { %v437_v16 = vmax.f32 %v421_v9, %v429_v11  ;;  %v674_v17 = vadd.f32 %v4050_v8, %v646_v15  ;;  %v638_v18 = vpop.permute.xlu0 %637 }
 0x246   :  { %v672_v20 = vadd.f32 %v4050_v8, %v638_v18  ;;  %v4062_v21 = vadd.f32 %v439_v14, %v4054_v13  ;;  %v59_v18 = vld [vmem:[%s5289_s30 + $0x20] sm:$0xff] }
 0x247   :  { %v682_v22 = vmul.f32 0.2, %v674_v17  ;;  %v4068_v28 = vadd.f32 %v437_v16, %v4058_v19  ;;  %vm67_vm8 = vcmp.gt.f32.partialorder %v59_v18, 0.0 }
 0x248   :  { %v680_v24 = vmul.f32 0.2, %v672_v20  ;;  %v460_v26 = vsel %vm453_vm4, %v4062_v21, -inf }
 0x249   :  { %v690_v31 = vmax.f32 %v674_v17, %v682_v22  ;;  %v904_v33 = vpop.permute.xlu1 %903  ;;  %v650_v36 = vpop.permute.xlu0 %649  ;;  %461 = vmax.xlane.f32.xlu0 %v460_v26  ;;  %v454_v46 = vsel %vm453_vm4, %v4068_v28, -inf }
 0x24a   :  { %v688_v38 = vmax.f32 %v672_v20, %v680_v24  ;;  %v675_v55 = vadd.f32 %v4050_v8, %v650_v36  ;;  %v932_v20 = vadd.f32 %v4076_v43, %v904_v33 }
 0x24b   :  { %v4071_v41 = vadd.f32 %v690_v31, %v4054_v13  ;;  %v4117_v31 = vsel %vm69_vm6, 0.0, %v3794_v12 }
 0x24c   :  { %v4086_v50 = vadd.f32 %v688_v38, %v4058_v19  ;;  %v683_v9 = vmul.f32 0.2, %v675_v55 }
 0x24d   :  { %v896_v48 = vpop.permute.xlu1 %895  ;;  %455 = vmax.xlane.f32.xlu0 %v454_v46  ;;  %v710_v49 = vsel %vm453_vm4, %v4071_v41, -inf }
 0x24e   :  { %v930_v53 = vadd.f32 %v4076_v43, %v896_v48  ;;  %v385_v54 = vpop.permute.xlu0 %384  ;;  %711 = vmax.xlane.f32.xlu1 %v710_v49  ;;  %v704_v60 = vsel %vm453_vm4, %v4086_v50, -inf  ;;  %v691_v36 = vmax.f32 %v675_v55, %v683_v9  ;;  %v4121_v49 = vsel %vm66_vm7, 0.0, %v3794_v12 }
 0x24f   :  { %v422_v56 = vadd.f32 %v4037_v0, %v385_v54  ;;  %v940_v54 = vmul.f32 0.2, %v932_v20 }
 0x250   :  { %v938_v58 = vmul.f32 0.2, %v930_v53 }
 0x251   :  { %v430_v59 = vmul.f32 0.2, %v422_v56  ;;  %v948_v9 = vmax.f32 %v932_v20, %v940_v54 }
 0x252   :  { %v946_v3 = vmax.f32 %v930_v53, %v938_v58  ;;  %v395_v4 = vpop.permute.xlu1 %394  ;;  %v410_v5 = vpop.permute.xlu0 %409  ;;  %705 = vmax.xlane.f32.xlu1 %v704_v60  ;;  %v4134_v60 = vadd.f32 %v691_v36, %v4121_v49 }
 0x253   :  { %v438_v10 = vmax.f32 %v422_v56, %v430_v59  ;;  %v424_v11 = vadd.f32 %v4037_v0, %v395_v4  ;;  %v427_v14 = vadd.f32 %v4037_v0, %v410_v5 }
 0x254   :  { %v4105_v15 = vadd.f32 %v946_v3, %v4058_v19  ;;  %v4137_v3 = vsel %vm67_vm8, 0.0, %v3794_v12  ;;  %v713_v18 = vsel %vm453_vm4, %v4134_v60, -inf }
 0x255   :  { %v432_v16 = vmul.f32 0.2, %v424_v11  ;;  %v435_v17 = vmul.f32 0.2, %v427_v14  ;;  %v4114_v26 = vadd.f32 %v438_v10, %v4097_v6  ;;  %5290 = vst [vmem:[#allocation5_spill] sm:$0xff] %v4137_v3 }
 0x256   :  { %v400_v22 = vpop.permute.xlu0 %399  ;;  %v962_v24 = vsel %vm453_vm4, %v4105_v15, -inf }
 0x257   :  { %v440_v38 = vmax.f32 %v424_v11, %v432_v16  ;;  %v443_v46 = vmax.f32 %v427_v14, %v435_v17  ;;  %v425_v47 = vadd.f32 %v4037_v0, %v400_v22  ;;  %v908_v48 = vpop.permute.xlu1 %907  ;;  %963 = vmax.xlane.f32.xlu1 %v962_v24  ;;  %v457_v56 = vsel %vm453_vm4, %v4114_v26, -inf }
 0x259   :  { %v433_v33 = vmul.f32 0.2, %v425_v47  ;;  %v4124_v53 = vadd.f32 %v440_v38, %v4121_v49  ;;  %v4129_v55 = vadd.f32 %v443_v46, %v4117_v31  ;;  %v4152_v46 = vadd.f32 %v948_v9, %v4054_v13 }
 0x25b   :  { %v441_v57 = vmax.f32 %v425_v47, %v433_v33  ;;  %v654_v58 = vpop.permute.xlu0 %653  ;;  %458 = vmax.xlane.f32.xlu1 %v457_v56  ;;  %v463_v59 = vsel %vm453_vm4, %v4124_v53, -inf  ;;  %v472_v11 = vsel %vm453_vm4, %v4129_v55, -inf }
 0x25c   :  { %v676_v4 = vadd.f32 %v4050_v8, %v654_v58  ;;  %v642_v5 = vpop.permute.xlu1 %641  ;;  %464 = vmax.xlane.f32.xlu0 %v463_v59 }
 0x25d   :  { %v673_v7 = vadd.f32 %v4050_v8, %v642_v5  ;;  %v4144_v14 = vadd.f32 %v441_v57, %v4137_v3 }
 0x25e   :  { %v684_v10 = vmul.f32 0.2, %v676_v4 }
 0x25f   :  { %v681_v16 = vmul.f32 0.2, %v673_v7  ;;  %v666_v17 = vpop.permute.xlu0 %665  ;;  %473 = vmax.xlane.f32.xlu1 %v472_v11  ;;  %v466_v20 = vsel %vm453_vm4, %v4144_v14, -inf  ;;  %v60_v11 = vld [vmem:[%s5289_s30 + $0x28] sm:$0xff] }
 0x260   :  { %714 = vmax.xlane.f32.xlu0 %v713_v18  ;;  %v692_v36 = vmax.f32 %v676_v4, %v684_v10  ;;  %v968_v4 = vsel %vm453_vm4, %v4152_v46, -inf  ;;  %v933_v10 = vadd.f32 %v4076_v43, %v908_v48  ;;  %vm68_vm10 = vcmp.gt.f32.partialorder %v60_v11, 0.0 }
 0x261   :  { %v689_v22 = vmax.f32 %v673_v7, %v681_v16  ;;  %v415_v24 = vpop.permute.xlu1 %414  ;;  %v62_v7 = vld [vmem:[%s5289_s30 + $0x38] sm:$0xff] }
 0x262   :  { %v428_v38 = vadd.f32 %v4037_v0, %v415_v24  ;;  %v4164_v5 = vadd.f32 %v692_v36, %v4137_v3  ;;  %vm70_vm9 = vcmp.gt.f32.partialorder %v62_v7, 0.0  ;;  %v941_v48 = vmul.f32 0.2, %v933_v10 }
 0x263   :  { %467 = vmax.xlane.f32.xlu1 %v466_v20  ;;  %v4155_v47 = vadd.f32 %v689_v22, %v4097_v6 }
 0x264   :  { %v900_v33 = vpop.permute.xlu0 %899  ;;  %v436_v54 = vmul.f32 0.2, %v428_v38  ;;  %v716_v24 = vsel %vm453_vm4, %v4164_v5, -inf  ;;  %v949_v11 = vmax.f32 %v933_v10, %v941_v48 }
 0x265   :  { %v931_v56 = vadd.f32 %v4076_v43, %v900_v33  ;;  %v405_v57 = vpop.permute.xlu1 %404  ;;  %v707_v58 = vsel %vm453_vm4, %v4155_v47, -inf  ;;  %v679_v33 = vadd.f32 %v4050_v8, %v666_v17 }
 0x266   :  { %v426_v59 = vadd.f32 %v4037_v0, %v405_v57  ;;  %708 = vmax.xlane.f32.xlu0 %v707_v58  ;;  %v444_v0 = vmax.f32 %v428_v38, %v436_v54  ;;  %v4181_v57 = vsel %vm70_vm9, 0.0, %v3794_v12 }
 0x267   :  { %v939_v9 = vmul.f32 0.2, %v931_v56  ;;  %969 = vmax.xlane.f32.xlu1 %v968_v4  ;;  %5291 = vst [vmem:[#allocation6_spill] sm:$0xff] %v4181_v57  ;;  %v4189_v4 = vsel %vm68_vm10, 0.0, %v3794_v12 }
 0x268   :  { %v434_v18 = vmul.f32 0.2, %v426_v59  ;;  %v4186_v58 = vadd.f32 %v444_v0, %v4181_v57  ;;  %5292 = vst [vmem:[#allocation7_spill] sm:$0xff] %v4189_v4  ;;  %v916_v0 = vpop.permute.xlu0 %915 }
 0x269   :  { %v947_v16 = vmax.f32 %v931_v56, %v939_v9 }
 0x26a   :  { %v662_v22 = vpop.permute.xlu1 %661  ;;  %v442_v38 = vmax.f32 %v426_v59, %v434_v18  ;;  %v475_v59 = vsel %vm453_vm4, %v4186_v58, -inf }
 0x26b   :  { %v678_v36 = vadd.f32 %v4050_v8, %v662_v22  ;;  %717 = vmax.xlane.f32.xlu1 %v716_v24  ;;  %v4177_v20 = vadd.f32 %v947_v16, %v4097_v6  ;;  %v687_v16 = vmul.f32 0.2, %v679_v33 }
 0x26c   :  { %v4198_v22 = vadd.f32 %v442_v38, %v4189_v4  ;;  %v4207_v38 = vadd.f32 %v949_v11, %v4121_v49 }
 0x26d   :  { %v686_v54 = vmul.f32 0.2, %v678_v36  ;;  %v965_v56 = vsel %vm453_vm4, %v4177_v20, -inf }
 0x26e   :  { %966 = vmax.xlane.f32.xlu0 %v965_v56  ;;  %v935_v56 = vadd.f32 %v4076_v43, %v916_v0 }
 0x26f   :  { %v694_v7 = vmax.f32 %v678_v36, %v686_v54  ;;  %v912_v9 = vpop.permute.xlu1 %911  ;;  %v695_v54 = vmax.f32 %v679_v33, %v687_v16  ;;  %v971_v16 = vsel %vm453_vm4, %v4207_v38, -inf }
 0x270   :  { %v934_v17 = vadd.f32 %v4076_v43, %v912_v9 }
 0x271   :  { %v4195_v18 = vadd.f32 %v694_v7, %v4117_v31  ;;  %v469_v7 = vsel %vm453_vm4, %v4198_v22, -inf  ;;  %v4218_v11 = vadd.f32 %v695_v54, %v4181_v57 }
 0x272   :  { %v942_v24 = vmul.f32 0.2, %v934_v17  ;;  %476 = vmax.xlane.f32.xlu0 %v475_v59 }
 0x273   :  { %v920_v12 = vpop.permute.xlu1 %919  ;;  %v722_v36 = vsel %vm453_vm4, %v4195_v18, -inf }
 0x274   :  { %v950_v10 = vmax.f32 %v934_v17, %v942_v24  ;;  %v936_v48 = vadd.f32 %v4076_v43, %v920_v12  ;;  %723 = vmax.xlane.f32.xlu1 %v722_v36  ;;  %v943_v24 = vmul.f32 0.2, %v935_v56 }
 0x276   :  { %v944_v9 = vmul.f32 0.2, %v936_v48  ;;  %470 = vmax.xlane.f32.xlu0 %v469_v7  ;;  %v4210_v59 = vadd.f32 %v950_v10, %v4137_v3  ;;  %v951_v10 = vmax.f32 %v935_v56, %v943_v24 }
 0x278   :  { %v952_v23 = vmax.f32 %v936_v48, %v944_v9  ;;  %v658_v1 = vpop.permute.xlu1 %657  ;;  %v974_v17 = vsel %vm453_vm4, %v4210_v59, -inf }
 0x279   :  { %v677_v33 = vadd.f32 %v4050_v8, %v658_v1  ;;  %975 = vmax.xlane.f32.xlu1 %v974_v17  ;;  %v725_v1 = vsel %vm453_vm4, %v4218_v11, -inf  ;;  %v4234_v17 = vadd.f32 %v951_v10, %v4189_v4 }
 0x27a   :  { %972 = vmax.xlane.f32.xlu0 %v971_v16  ;;  %v4221_v0 = vadd.f32 %v952_v23, %v4117_v31 }
 0x27b   :  { %v685_v12 = vmul.f32 0.2, %v677_v33  ;;  %v977_v24 = vsel %vm453_vm4, %v4234_v17, -inf }
 0x27c   :  { %v980_v36 = vsel %vm453_vm4, %v4221_v0, -inf }
 0x27d   :  { %v693_v48 = vmax.f32 %v677_v33, %v685_v12  ;;  %v924_v7 = vpop.permute.xlu1 %923  ;;  %981 = vmax.xlane.f32.xlu1 %v980_v36 }
 0x27e   :  { %v937_v8 = vadd.f32 %v4076_v43, %v924_v7  ;;  %726 = vmax.xlane.f32.xlu0 %v725_v1 }
 0x27f   :  { %v4229_v54 = vadd.f32 %v693_v48, %v4189_v4 }
 0x280   :  { %v945_v9 = vmul.f32 0.2, %v937_v8 }
 0x281   :  { %v719_v23 = vsel %vm453_vm4, %v4229_v54, -inf }
 0x282   :  { %v953_v56 = vmax.f32 %v937_v8, %v945_v9  ;;  %720 = vmax.xlane.f32.xlu0 %v719_v23 }
 0x284   :  { %v4239_v33 = vadd.f32 %v953_v56, %v4181_v57 }
 0x286   :  { %978 = vmax.xlane.f32.xlu0 %v977_v24  ;;  %v983_v43 = vsel %vm453_vm4, %v4239_v33, -inf }
 0x28a   :  { %984 = vmax.xlane.f32.xlu0 %v983_v43 }
 0x2d6   :  { %v462_v16 = vpop.xlane.xlu0 %461 }
 0x2d7   :  { %v480_v12 = vsub.f32 %v4062_v21, %v462_v16 }
 0x2d9   :  { %v490_v36 = vmul.f32 1.442695, %v480_v12 }
 0x2da   :  { %v456_v48 = vpop.xlane.xlu0 %455 }
 0x2db   :  { %3541 = vpow2.f32 %v490_v36  ;;  %v478_v10 = vsub.f32 %v4068_v28, %v456_v48  ;;  %v712_v7 = vpop.xlane.xlu1 %711 }
 0x2dc   :  { %v730_v1 = vsub.f32 %v4071_v41, %v712_v7 }
 0x2dd   :  { %v486_v8 = vmul.f32 1.442695, %v478_v10 }
 0x2de   :  { %v740_v9 = vmul.f32 1.442695, %v730_v1 }
 0x2df   :  { %v706_v23 = vpop.xlane.xlu1 %705 }
 0x2e0   :  { %3543 = vpow2.f32 %v740_v9  ;;  %v728_v56 = vsub.f32 %v4086_v50, %v706_v23 }
 0x2e1   :  { %3545 = vpow2.f32 %v486_v8 }
 0x2e2   :  { %v736_v24 = vmul.f32 1.442695, %v728_v56 }
 0x2e4   :  { %v964_v43 = vpop.xlane.xlu1 %963  ;;  %3547 = vpow2.f32 %v736_v24 }
 0x2e5   :  { %v4247_v52 = vpop.eup %3541  ;;  %v986_v21 = vsub.f32 %v4105_v15, %v964_v43 }
 0x2e6   :  { %v508_v28 = vsel %vm453_vm4, %v4247_v52, 0.0 }
 0x2e7   :  { %v994_v16 = vmul.f32 1.442695, %v986_v21  ;;  %509 = vadd.xlane.f32.xlu1 %v508_v28 }
 0x2e8   :  { %v459_v41 = vpop.xlane.xlu1 %458 }
 0x2e9   :  { %v465_v12 = vpop.xlane.xlu0 %464  ;;  %3549 = vpow2.f32 %v994_v16  ;;  %v479_v15 = vsub.f32 %v4114_v26, %v459_v41 }
 0x2ea   :  { %v4252_v36 = vpop.eup %3543  ;;  %v481_v50 = vsub.f32 %v4124_v53, %v465_v12 }
 0x2eb   :  { %v758_v48 = vsel %vm453_vm4, %v4252_v36, 0.0  ;;  %v4257_v10 = vpop.eup %3545  ;;  %v488_v43 = vmul.f32 1.442695, %v479_v15 }
 0x2ec   :  { %v492_v7 = vmul.f32 1.442695, %v481_v50  ;;  %759 = vadd.xlane.f32.xlu1 %v758_v48  ;;  %v474_v1 = vpop.xlane.xlu1 %473  ;;  %v502_v53 = vsel %vm453_vm4, %v4257_v10, 0.0 }
 0x2ed   :  { %v484_v8 = vsub.f32 %v4129_v55, %v474_v1  ;;  %v715_v9 = vpop.xlane.xlu0 %714 }
 0x2ee   :  { %3551 = vpow2.f32 %v492_v7  ;;  %v731_v23 = vsub.f32 %v4134_v60, %v715_v9  ;;  %v4264_v24 = vpop.eup %3547 }
 0x2ef   :  { %v498_v56 = vmul.f32 1.442695, %v484_v8  ;;  %v752_v41 = vsel %vm453_vm4, %v4264_v24, 0.0 }
 0x2f0   :  { %v742_v21 = vmul.f32 1.442695, %v731_v23  ;;  %v468_v28 = vpop.xlane.xlu1 %467  ;;  %503 = vadd.xlane.f32.xlu1 %v502_v53 }
 0x2f1   :  { %3553 = vpow2.f32 %v498_v56  ;;  %v482_v26 = vsub.f32 %v4144_v14, %v468_v28 }
 0x2f2   :  { %3555 = vpow2.f32 %v742_v21 }
 0x2f3   :  { %v494_v16 = vmul.f32 1.442695, %v482_v26  ;;  %v709_v55 = vpop.xlane.xlu0 %708  ;;  %v4269_v60 = vpop.eup %3549  ;;  %3557 = vpow2.f32 %v488_v43 }
 0x2f4   :  { %v729_v12 = vsub.f32 %v4155_v47, %v709_v55  ;;  %v970_v50 = vpop.xlane.xlu1 %969  ;;  %753 = vadd.xlane.f32.xlu1 %v752_v41  ;;  %v1010_v14 = vsel %vm453_vm4, %v4269_v60, 0.0 }
 0x2f5   :  { %3559 = vpow2.f32 %v494_v16  ;;  %v988_v48 = vsub.f32 %v4152_v46, %v970_v50 }
 0x2f6   :  { %v738_v15 = vmul.f32 1.442695, %v729_v12 }
 0x2f7   :  { %v998_v7 = vmul.f32 1.442695, %v988_v48 }
 0x2f8   :  { %v4275_v1 = vpop.eup %3551  ;;  %3561 = vpow2.f32 %v738_v15  ;;  %v718_v8 = vpop.xlane.xlu1 %717  ;;  %1011 = vadd.xlane.f32.xlu1 %v1010_v14 }
 0x2f9   :  { %3563 = vpow2.f32 %v998_v7  ;;  %v732_v9 = vsub.f32 %v4164_v5, %v718_v8  ;;  %v511_v47 = vsel %vm453_vm4, %v4275_v1, 0.0 }
 0x2fa   :  { %512 = vadd.xlane.f32.xlu0 %v511_v47 }
 0x2fb   :  { %v4280_v23 = vpop.eup %3553  ;;  %v744_v46 = vmul.f32 1.442695, %v732_v9  ;;  %v967_v56 = vpop.xlane.xlu0 %966 }
 0x2fc   :  { %v4282_v53 = vpop.eup %3555  ;;  %v987_v43 = vsub.f32 %v4177_v20, %v967_v56  ;;  %v520_v21 = vsel %vm453_vm4, %v4280_v23, 0.0 }
 0x2fd   :  { %3565 = vpow2.f32 %v744_v46  ;;  %521 = vadd.xlane.f32.xlu1 %v520_v21  ;;  %v761_v5 = vsel %vm453_vm4, %v4282_v53, 0.0  ;;  %v4289_v28 = vpop.eup %3557 }
 0x2fe   :  { %v996_v26 = vmul.f32 1.442695, %v987_v43  ;;  %762 = vadd.xlane.f32.xlu0 %v761_v5  ;;  %v505_v50 = vsel %vm453_vm4, %v4289_v28, 0.0 }
 0x2ff   :  { %v4291_v16 = vpop.eup %3559  ;;  %v477_v55 = vpop.xlane.xlu0 %476 }
 0x300   :  { %3567 = vpow2.f32 %v996_v26  ;;  %v485_v41 = vsub.f32 %v4186_v58, %v477_v55  ;;  %v514_v20 = vsel %vm453_vm4, %v4291_v16, 0.0 }
 0x301   :  { %v724_v12 = vpop.xlane.xlu1 %723  ;;  %515 = vadd.xlane.f32.xlu1 %v514_v20 }
 0x302   :  { %v4298_v48 = vpop.eup %3561  ;;  %v500_v15 = vmul.f32 1.442695, %v485_v41  ;;  %v734_v7 = vsub.f32 %v4195_v18, %v724_v12  ;;  %506 = vadd.xlane.f32.xlu0 %v505_v50 }
 0x303   :  { %v4301_v14 = vpop.eup %3563  ;;  %v471_v8 = vpop.xlane.xlu0 %470  ;;  %v755_v46 = vsel %vm453_vm4, %v4298_v48, 0.0 }
 0x304   :  { %3569 = vpow2.f32 %v500_v15  ;;  %v748_v9 = vmul.f32 1.442695, %v734_v7  ;;  %v483_v58 = vsub.f32 %v4198_v22, %v471_v8  ;;  %v1016_v47 = vsel %vm453_vm4, %v4301_v14, 0.0 }
 0x305   :  { %1017 = vadd.xlane.f32.xlu1 %v1016_v47 }
 0x306   :  { %3571 = vpow2.f32 %v748_v9  ;;  %v496_v56 = vmul.f32 1.442695, %v483_v58  ;;  %v976_v43 = vpop.xlane.xlu1 %975  ;;  %756 = vadd.xlane.f32.xlu0 %v755_v46 }
 0x307   :  { %v4308_v18 = vpop.eup %3565  ;;  %v990_v21 = vsub.f32 %v4210_v59, %v976_v43  ;;  %v973_v5 = vpop.xlane.xlu0 %972 }
 0x308   :  { %3573 = vpow2.f32 %v496_v56  ;;  %v989_v26 = vsub.f32 %v4207_v38, %v973_v5  ;;  %v764_v22 = vsel %vm453_vm4, %v4308_v18, 0.0 }
 0x309   :  { %v1002_v55 = vmul.f32 1.442695, %v990_v21  ;;  %765 = vadd.xlane.f32.xlu1 %v764_v22 }
 0x30a   :  { %v4314_v41 = vpop.eup %3567  ;;  %v1000_v20 = vmul.f32 1.442695, %v989_v26  ;;  %v982_v12 = vpop.xlane.xlu1 %981 }
 0x30b   :  { %3575 = vpow2.f32 %v1002_v55  ;;  %v992_v50 = vsub.f32 %v4221_v0, %v982_v12  ;;  %v727_v15 = vpop.xlane.xlu0 %726  ;;  %v1013_v59 = vsel %vm453_vm4, %v4314_v41, 0.0 }
 0x30c   :  { %3577 = vpow2.f32 %v1000_v20  ;;  %v735_v7 = vsub.f32 %v4218_v11, %v727_v15  ;;  %1014 = vadd.xlane.f32.xlu0 %v1013_v59 }
 0x30d   :  { %v1006_v38 = vmul.f32 1.442695, %v992_v50 }
 0x30e   :  { %v4320_v8 = vpop.eup %3569  ;;  %v750_v9 = vmul.f32 1.442695, %v735_v7 }
 0x30f   :  { %3579 = vpow2.f32 %v1006_v38  ;;  %v721_v58 = vpop.xlane.xlu0 %720  ;;  %v523_v47 = vsel %vm453_vm4, %v4320_v8, 0.0 }
 0x310   :  { %v4324_v46 = vpop.eup %3571  ;;  %3581 = vpow2.f32 %v750_v9  ;;  %v733_v0 = vsub.f32 %v4229_v54, %v721_v58  ;;  %524 = vadd.xlane.f32.xlu0 %v523_v47 }
 0x311   :  { %v770_v56 = vsel %vm453_vm4, %v4324_v46, 0.0 }
 0x312   :  { %v4329_v11 = vpop.eup %3573  ;;  %v746_v43 = vmul.f32 1.442695, %v733_v0  ;;  %771 = vadd.xlane.f32.xlu1 %v770_v56 }
 0x313   :  { %v979_v21 = vpop.xlane.xlu0 %978  ;;  %v517_v5 = vsel %vm453_vm4, %v4329_v11, 0.0 }
 0x314   :  { %3583 = vpow2.f32 %v746_v43  ;;  %v991_v26 = vsub.f32 %v4234_v17, %v979_v21  ;;  %518 = vadd.xlane.f32.xlu0 %v517_v5 }
 0x315   :  { %v4334_v22 = vpop.eup %3575 }
 0x316   :  { %v4336_v55 = vpop.eup %3577  ;;  %v1004_v54 = vmul.f32 1.442695, %v991_v26  ;;  %v1022_v20 = vsel %vm453_vm4, %v4334_v22, 0.0 }
 0x317   :  { %1023 = vadd.xlane.f32.xlu1 %v1022_v20  ;;  %v985_v12 = vpop.xlane.xlu0 %984  ;;  %v1019_v50 = vsel %vm453_vm4, %v4336_v55, 0.0 }
 0x318   :  { %3585 = vpow2.f32 %v1004_v54  ;;  %v993_v15 = vsub.f32 %v4239_v33, %v985_v12  ;;  %1020 = vadd.xlane.f32.xlu0 %v1019_v50 }
 0x319   :  { %v4343_v59 = vpop.eup %3579 }
 0x31a   :  { %v4345_v17 = vpop.eup %3581  ;;  %v1008_v7 = vmul.f32 1.442695, %v993_v15  ;;  %v1028_v38 = vsel %vm453_vm4, %v4343_v59, 0.0 }
 0x31b   :  { %1029 = vadd.xlane.f32.xlu1 %v1028_v38  ;;  %v773_v9 = vsel %vm453_vm4, %v4345_v17, 0.0 }
 0x31c   :  { %3587 = vpow2.f32 %v1008_v7  ;;  %774 = vadd.xlane.f32.xlu0 %v773_v9 }
 0x31e   :  { %v4351_v58 = vpop.eup %3583 }
 0x31f   :  { %v767_v33 = vsel %vm453_vm4, %v4351_v58, 0.0 }
 0x320   :  { %768 = vadd.xlane.f32.xlu0 %v767_v33 }
 0x322   :  { %v4355_v47 = vpop.eup %3585 }
 0x323   :  { %v1025_v0 = vsel %vm453_vm4, %v4355_v47, 0.0 }
 0x324   :  { %1026 = vadd.xlane.f32.xlu0 %v1025_v0 }
 0x326   :  { %v4359_v56 = vpop.eup %3587 }
 0x327   :  { %v1031_v43 = vsel %vm453_vm4, %v4359_v56, 0.0 }
 0x328   :  { %1032 = vadd.xlane.f32.xlu0 %v1031_v43 }
 0x374   :  { %v510_v21 = vpop.xlane.xlu1 %509 }
 0x379   :  { %v760_v5 = vpop.xlane.xlu1 %759 }
 0x37d   :  { %v504_v26 = vpop.xlane.xlu1 %503 }
 0x381   :  { %v754_v54 = vpop.xlane.xlu1 %753 }
 0x385   :  { %v1012_v12 = vpop.xlane.xlu1 %1011 }
 0x387   :  { %v513_v20 = vpop.xlane.xlu0 %512 }
 0x388   :  { %3589 = vrcp.f32 %v513_v20 }
 0x389   :  { %3591 = vrcp.f32 %v504_v26 }
 0x38a   :  { %3593 = vrcp.f32 %v510_v21  ;;  %v522_v15 = vpop.xlane.xlu1 %521 }
 0x38b   :  { %v763_v50 = vpop.xlane.xlu0 %762 }
 0x38e   :  { %v516_v9 = vpop.xlane.xlu1 %515 }
 0x38f   :  { %v507_v7 = vpop.xlane.xlu0 %506 }
 0x390   :  { %3595 = vrcp.f32 %v507_v7 }
 0x391   :  { %3597 = vrcp.f32 %v763_v50 }
 0x392   :  { %3599 = vrcp.f32 %v754_v54  ;;  %v3590_v33 = vpop.eup %3589  ;;  %v1018_v20 = vpop.xlane.xlu1 %1017 }
 0x393   :  { %3601 = vrcp.f32 %v760_v5  ;;  %v757_v38 = vpop.xlane.xlu0 %756  ;;  %v3592_v0 = vpop.eup %3591  ;;  %v537_v61 = vmul.f32 %v3590_v33, %v4275_v1 }
 0x394   :  { %3603 = vrcp.f32 %v757_v38  ;;  %v3594_v43 = vpop.eup %3593  ;;  %v534_v21 = vmul.f32 %v3592_v0, %v4257_v10 }
 0x395   :  { %v536_v54 = vmul.f32 %v3594_v43, %v4247_v52  ;;  %3605 = vrcp.f32 %v1012_v12 }
 0x396   :  { %3607 = vrcp.f32 %v516_v9  ;;  %v766_v52 = vpop.xlane.xlu1 %765 }
 0x397   :  { %v543_v57 = vpack.c.bf16 %v537_v61, %v536_v54 }
 0x399   :  { %v1015_v51 = vpop.xlane.xlu0 %1014 }
 0x39a   :  { %v3596_v2 = vpop.eup %3595 }
 0x39b   :  { %v3598_v25 = vpop.eup %3597  ;;  %v535_v26 = vmul.f32 %v3596_v2, %v4289_v28 }
 0x39c   :  { %v3600_v7 = vpop.eup %3599  ;;  %v787_v3 = vmul.f32 %v3598_v25, %v4282_v53 }
 0x39d   :  { %v3602_v5 = vpop.eup %3601  ;;  %v525_v50 = vpop.xlane.xlu0 %524  ;;  %v542_v38 = vpack.c.bf16 %v535_v26, %v534_v21  ;;  %v784_v1 = vmul.f32 %v3600_v7, %v4264_v24 }
 0x39e   :  { %v3604_v4 = vpop.eup %3603  ;;  %3609 = vrcp.f32 %v525_v50  ;;  %v786_v2 = vmul.f32 %v3602_v5, %v4252_v36 }
 0x39f   :  { %3237 = vmatprep.mubr.msk.bf16.mxu1 %vm453_vm4, %v542_v38  ;;  %v785_v10 = vmul.f32 %v3604_v4, %v4298_v48  ;;  %3611 = vrcp.f32 %v1015_v51  ;;  %v772_v4 = vpop.xlane.xlu1 %771 }
 0x3a0   :  { %3238 = vmatmul.mubr.msk.bf16.vlgmr.msra.gmra.mrb[8].mxu1 %vm453_vm4, %v543_v57  ;;  %3613 = vrcp.f32 %v522_v15  ;;  %v793_v25 = vpack.c.bf16 %v787_v3, %v786_v2  ;;  %v3606_v57 = vpop.eup %3605 }
 0x3a1   :  { %3262 = vmatpush3.bf16.msra.mxu1 %v3958_v29  ;;  %v519_v61 = vpop.xlane.xlu0 %518  ;;  %v792_v28 = vpack.c.bf16 %v785_v10, %v784_v1  ;;  %v3608_v36 = vpop.eup %3607 }
 0x3a2   :  { %3263 = vmatprep.subr.bf16.mxu1 %v3968_v34  ;;  %3615 = vrcp.f32 %v519_v61  ;;  %v538_v9 = vmul.f32 %v3608_v36, %v4291_v16  ;;  %v3497_v36 = vld [vmem:[%s5251_s7 + $0x20] sm:$0xff]  }
 0x3a3   :  { %3253 = vmatprep.mubr.msk.bf16.mxu0 %vm453_vm4, %v792_v28 }
 0x3a4   :  { %3254 = vmatmul.mubr.msk.bf16.vlgmr.msra.gmra.mrb[20].mxu0 %vm453_vm4, %v793_v25  ;;  %v1024_v48 = vpop.xlane.xlu1 %1023 }
 0x3a5   :  { %3264 = vmatpush3.bf16.msra.mxu1 %v3968_v34  ;;  %v1021_v51 = vpop.xlane.xlu0 %1020 }
 0x3a6   :  { %3265 = vmatprep.subr.bf16.mxu1 %v3980_v39  ;;  %3617 = vrcp.f32 %v1021_v51 }
 0x3a7   :  { %3619 = vrcp.f32 %v1018_v20  ;;  %v1042_v20 = vmul.f32 %v3606_v57, %v4269_v60 }
 0x3a8   :  { %v3610_v29 = vpop.eup %3609 }
 0x3a9   :  { %3266 = vmatpush3.bf16.msra.mxu1 %v3980_v39  ;;  %v775_v24 = vpop.xlane.xlu0 %774  ;;  %v3612_v53 = vpop.eup %3611  ;;  %v541_v34 = vmul.f32 %v3610_v29, %v4320_v8  ;;  %v3498_v29 = vld [vmem:[%s5251_s7 + $0x28] sm:$0xff]  }
 0x3aa   :  { %3267 = vmatprep.subr.bf16.mxu1 %v3991_v44  ;;  %v3614_v3 = vpop.eup %3613  ;;  %3621 = vrcp.f32 %v775_v24  ;;  %v1043_v39 = vmul.f32 %v3612_v53, %v4314_v41  ;;  %v1030_v8 = vpop.xlane.xlu1 %1029  ;;  %v3499_v24 = vld [vmem:[%s5251_s7 + $0x30] sm:$0xff]   ;;  %v3500_v53 = vld [vmem:[%s5251_s7 + $0x38] sm:$0xff]  }
 0x3ab   :  { %3623 = vrcp.f32 %v766_v52  ;;  %v540_v0 = vmul.f32 %v3614_v3, %v4280_v23  ;;  %v5293_v3 = vmov 0.0  }
 0x3ac   :  { %v3616_v12 = vpop.eup %3615  ;;  %3625 = vrcp.f32 %v772_v4  ;;  %v1050_v7 = vpack.c.bf16 %v1043_v39, %v1042_v20  ;;  %v3507_v39 = vld [vmem:[%s5252_s8 + $0x30] sm:$0xff]  }
 0x3ad   :  { %3268 = vmatpush3.bf16.msra.mxu1 %v3991_v44  ;;  %v769_v15 = vpop.xlane.xlu0 %768  ;;  %v539_v33 = vmul.f32 %v3616_v12, %v4329_v11  ;;  %v545_v21 = vpack.c.bf16 %v541_v34, %v540_v0  ;;  %v3502_v12 = vld [vmem:[%s5252_s8 + $0x8] sm:$0xff]   ;;  %v3503_v34 = vld [vmem:[%s5252_s8 + $0x10] sm:$0xff]   ;;  %v5294_v0 = vlaneseq }
 0x3ae   :  { %3627 = vrcp.f32 %v769_v15  ;;  %v3504_v15 = vld [vmem:[%s5252_s8 + $0x18] sm:$0xff]  }
 0x3af   :  { %v544_v43 = vpack.c.bf16 %v539_v33, %v538_v9  ;;  %3629 = vrcp.f32 %v1024_v48  ;;  %v3501_v48 = vld [vmem:[%s5252_s8] sm:$0xff]   ;;  %v3506_v33 = vld [vmem:[%s5252_s8 + $0x28] sm:$0xff]  }
 0x3b0   :  { %v3618_v26 = vpop.eup %3617  ;;  %3301 = vmatprep.subr.bf16.mxu1 %v3501_v48  ;;  %v3505_v9 = vld [vmem:[%s5252_s8 + $0x20] sm:$0xff]  }
 0x3b1   :  { %3241 = vmatprep.mubr.msk.bf16.mxu1 %vm453_vm4, %v544_v43  ;;  %v1027_v44 = vpop.xlane.xlu0 %1026  ;;  %v3620_v16 = vpop.eup %3619  ;;  %v1045_v41 = vmul.f32 %v3618_v26, %v4336_v55  ;;  %v4453_v43 = vand.u32 127, %v5294_v0 }
 0x3b2   :  { %3631 = vrcp.f32 %v1027_v44  ;;  %3242 = vmatmul.mubr.msk.bf16.gmra.mrb[12].mxu1 %vm453_vm4, %v545_v21  ;;  %v1044_v54 = vmul.f32 %v3620_v16, %v4301_v14 }
 0x3b3   :  { %3269 = vmatprep.mubr.msk.bf16.mxu1 %vm453_vm4, %v1050_v7  ;;  %3633 = vrcp.f32 %v1030_v8  ;;  %vm873_vm11 = vcmp.ge.s32.totalorder %v4453_v43, 32  ;;  %vm874_vm12 = vcmp.lt.s32.totalorder %v4453_v43, 64  ;;  %vm624_vm13 = vcmp.lt.s32.totalorder %v4453_v43, 32 }
 0x3b4   :  { %v3622_v23 = vpop.eup %3621  ;;  %v1051_v38 = vpack.c.bf16 %v1045_v41, %v1044_v54  ;;  %vm4458_vm14 = vmand %vm873_vm11, %vm874_vm12  ;;  %vm1131_vm15 = vcmp.ge.s32.totalorder %v4453_v43, 64  ;;  %vm1132_vm0 = vcmp.lt.s32.totalorder %v4453_v43, 96 }
 0x3b5   :  { %v1033_v11 = vpop.xlane.xlu0 %1032  ;;  %v3624_v60 = vpop.eup %3623  ;;  %v791_v1 = vmul.f32 %v3622_v23, %v4345_v17  ;;  %vm4480_vm2 = vmand %vm1131_vm15, %vm1132_vm0 }
 0x3b6   :  { %3635 = vrcp.f32 %v1033_v11  ;;  %v3626_v5 = vpop.eup %3625  ;;  %v788_v10 = vmul.f32 %v3624_v60, %v4308_v18 }
 0x3b7   :  { %v790_v55 = vmul.f32 %v3626_v5, %v4324_v46 }
 0x3b8   :  { %v3628_v50 = vpop.eup %3627 }
 0x3b9   :  { %v789_v2 = vmul.f32 %v3628_v50, %v4351_v58  ;;  %v3630_v52 = vpop.eup %3629  ;;  %v795_v25 = vpack.c.bf16 %v791_v1, %v790_v55 }
 0x3ba   :  { %3270 = vmatmul.mubr.msk.bf16.vlgmr.msra.gmra.mrb[16].mxu1 %vm453_vm4, %v1051_v38  ;;  %v1046_v14 = vmul.f32 %v3630_v52, %v4334_v22  ;;  %v3493_v22 = vld [vmem:[%s5251_s7] sm:$0xff]  }
 0x3bb   :  { %v794_v61 = vpack.c.bf16 %v789_v2, %v788_v10  ;;  %3277 = vmatprep.subr.bf16.mxu0 %v3493_v22  ;;  %3302 = vmatpush3.bf16.msra.mxu1 %v3501_v48 }
 0x3bc   :  { %v3632_v28 = vpop.eup %3631  ;;  %3278 = vmatpush3.bf16.msra.mxu0 %v3493_v22  ;;  %3303 = vmatprep.subr.bf16.mxu1 %v3502_v12 }
 0x3bd   :  { %3257 = vmatprep.mubr.msk.bf16.mxu0 %vm453_vm4, %v794_v61  ;;  %v1047_v4 = vmul.f32 %v3632_v28, %v4355_v47  ;;  %v3634_v51 = vpop.eup %3633  ;;  %v3494_v47 = vld [vmem:[%s5251_s7 + $0x8] sm:$0xff]  }
 0x3be   :  { %3258 = vmatmul.mubr.msk.bf16.gmra.mrb[24].mxu0 %vm453_vm4, %v795_v25  ;;  %v1048_v58 = vmul.f32 %v3634_v51, %v4343_v59  ;;  %3279 = vmatprep.subr.bf16.mxu0 %v3494_v47  ;;  %v3495_v59 = vld [vmem:[%s5251_s7 + $0x10] sm:$0xff]  }
 0x3bf   :  { %v1052_v18 = vpack.c.bf16 %v1047_v4, %v1046_v14  ;;  %3304 = vmatpush3.bf16.msra.mxu1 %v3502_v12 }
 0x3c0   :  { %v3636_v17 = vpop.eup %3635  ;;  %3280 = vmatpush3.bf16.msra.mxu0 %v3494_v47  ;;  %3305 = vmatprep.subr.bf16.mxu1 %v3503_v34 }
 0x3c1   :  { %3273 = vmatprep.mubr.msk.bf16.mxu1 %vm453_vm4, %v1052_v18  ;;  %v1049_v46 = vmul.f32 %v3636_v17, %v4359_v56  ;;  %3281 = vmatprep.subr.bf16.mxu0 %v3495_v59  ;;  %v3496_v56 = vld [vmem:[%s5251_s7 + $0x18] sm:$0xff]  }
 0x3c3   :  { %v1053_v57 = vpack.c.bf16 %v1049_v46, %v1048_v58  ;;  %3306 = vmatpush3.bf16.msra.mxu1 %v3503_v34 }
 0x3c4   :  { %3282 = vmatpush3.bf16.msra.mxu0 %v3495_v59  ;;  %3307 = vmatprep.subr.bf16.mxu1 %v3504_v15 }
 0x3c5   :  { %3274 = vmatmul.mubr.msk.bf16.gmra.mrb[20].mxu1 %vm453_vm4, %v1053_v57  ;;  %3283 = vmatprep.subr.bf16.mxu0 %v3496_v56 }
 0x3c7   :  { %3308 = vmatpush3.bf16.msra.mxu1 %v3504_v15 }
 0x3c8   :  { %3284 = vmatpush3.bf16.msra.mxu0 %v3496_v56  ;;  %3309 = vmatprep.subr.bf16.mxu1 %v3505_v9  ;;  %v4495_v56 = vld [vmem:[%s5249_s5] ss:$0 sm:$0xff] }
 0x3c9   :  { %3285 = vmatprep.subr.bf16.mxu0 %v3497_v36 }
 0x3cb   :  { %3310 = vmatpush3.bf16.msra.mxu1 %v3505_v9 }
 0x3cc   :  { %3286 = vmatpush3.bf16.msra.mxu0 %v3497_v36  ;;  %3311 = vmatprep.subr.bf16.mxu1 %v3506_v33 }
 0x3cd   :  { %3287 = vmatprep.subr.bf16.mxu0 %v3498_v29 }
 0x3cf   :  { %3312 = vmatpush3.bf16.msra.mxu1 %v3506_v33  ;;  %v3012_v33 = vld [vmem:[%s5250_s6] ss:$0 sm:$0xff] }
 0x3d0   :  { %3288 = vmatpush3.bf16.msra.mxu0 %v3498_v29  ;;  %3313 = vmatprep.subr.bf16.mxu1 %v3507_v39 }
 0x3d1   :  { %3289 = vmatprep.subr.bf16.mxu0 %v3499_v24 }
 0x3d3   :  { %3314 = vmatpush3.bf16.msra.mxu1 %v3507_v39 }
 0x3d4   :  { %3290 = vmatpush3.bf16.msra.mxu0 %v3499_v24 }
 0x3d5   :  { %3291 = vmatprep.subr.bf16.mxu0 %v3500_v53 }
 0x3d8   :  { %3292 = vmatpush3.bf16.msra.mxu0 %v3500_v53 }
 0x3d9   :  { %3325 = vmatprep.subr.bf16.mxu0 %v5293_v3 }
 0x473   :  { %v3239_v20 = vpop.f32.mrb[8].mxu1 }
 0x474   :  { %v592_v21 = vpop.f32.mrb[9].mxu1  ;;  %v630_v16 = vsel %vm624_vm13, %v3239_v20, 0.0 }
 0x475   :  { %v3240_v8 = vpop.f32.mrb[10].mxu1  ;;  %v628_v11 = vsel %vm624_vm13, %v592_v21, 0.0 }
 0x476   :  { %v595_v44 = vpop.f32.mrb[11].mxu1  ;;  %v631_v50 = vsel %vm624_vm13, %v3240_v8, 0.0 }
 0x477   :  { %v3255_v7 = vpop.f32.mrb[20].mxu0  ;;  %v629_v2 = vsel %vm624_vm13, %v595_v44, 0.0 }
 0x478   :  { %v880_v41 = vsel %vm4458_vm14, %v3255_v7, 0.0  ;;  %v842_v23 = vpop.f32.mrb[21].mxu0 }
 0x479   :  { %v888_v60 = vadd.f32 %v880_v41, %v630_v16  ;;  %v878_v54 = vsel %vm4458_vm14, %v842_v23, 0.0  ;;  %v3256_v5 = vpop.f32.mrb[22].mxu0 }
 0x47a   :  { %v886_v38 = vadd.f32 %v878_v54, %v628_v11  ;;  %v881_v1 = vsel %vm4458_vm14, %v3256_v5, 0.0  ;;  %v845_v10 = vpop.f32.mrb[23].mxu0  ;;  %v3013_v5 = vld [vmem:[%s5250_s6 + $0x1] ss:$0 sm:$0xff] }
 0x47b   :  { %v889_v52 = vadd.f32 %v881_v1, %v631_v50  ;;  %v879_v55 = vsel %vm4458_vm14, %v845_v10, 0.0 }
 0x47c   :  { %v887_v61 = vadd.f32 %v879_v55, %v629_v2 }
 0x485   :  { %v3243_v28 = vpop.f32.mrb[12].mxu1 }
 0x486   :  { %v608_v25 = vpop.f32.mrb[13].mxu1  ;;  %v634_v47 = vsel %vm624_vm13, %v3243_v28, 0.0 }
 0x487   :  { %v3244_v14 = vpop.f32.mrb[14].mxu1  ;;  %v632_v59 = vsel %vm624_vm13, %v608_v25, 0.0 }
 0x488   :  { %v611_v4 = vpop.f32.mrb[15].mxu1  ;;  %v635_v53 = vsel %vm624_vm13, %v3244_v14, 0.0 }
 0x489   :  { %v633_v9 = vsel %vm624_vm13, %v611_v4, 0.0 }
 0x48d   :  { %v3271_v18 = vpop.f32.mrb[16].mxu1 }
 0x48e   :  { %v1138_v17 = vsel %vm4480_vm2, %v3271_v18, 0.0  ;;  %v1100_v58 = vpop.f32.mrb[17].mxu1 }
 0x48f   :  { %v1146_v46 = vadd.f32 %v1138_v17, %v888_v60  ;;  %v1136_v57 = vsel %vm4480_vm2, %v1100_v58, 0.0  ;;  %v3272_v22 = vpop.f32.mrb[18].mxu1 }
 0x490   :  { %v1144_v36 = vadd.f32 %v1136_v57, %v886_v38  ;;  %v1139_v29 = vsel %vm4480_vm2, %v3272_v22, 0.0  ;;  %v1103_v24 = vpop.f32.mrb[19].mxu1 }
 0x491   :  { %v1154_v48 = vadd.f32 %v1146_v46, %v3966_v32  ;;  %v1147_v12 = vadd.f32 %v1139_v29, %v889_v52  ;;  %v1137_v34 = vsel %vm4480_vm2, %v1103_v24, 0.0  ;;  %v3259_v15 = vpop.f32.mrb[24].mxu0 }
 0x492   :  { %v1152_v39 = vadd.f32 %v1144_v36, %v3956_v27  ;;  %v1145_v0 = vadd.f32 %v1137_v34, %v887_v61  ;;  %v884_v20 = vsel %vm4458_vm14, %v3259_v15, 0.0  ;;  %v858_v21 = vpop.f32.mrb[25].mxu0 }
 0x493   :  { %v1169_v32 = vadd.f32 %v4495_v56, %v1154_v48  ;;  %v1155_v8 = vadd.f32 %v1147_v12, %v3970_v35  ;;  %v892_v44 = vadd.f32 %v884_v20, %v634_v47  ;;  %v882_v7 = vsel %vm4458_vm14, %v858_v21, 0.0  ;;  %v3260_v16 = vpop.f32.mrb[26].mxu0 }
 0x494   :  { %v1167_v41 = vadd.f32 %v4495_v56, %v1152_v39  ;;  %v1153_v23 = vadd.f32 %v1145_v0, %v3960_v30  ;;  %v890_v11 = vadd.f32 %v882_v7, %v632_v59  ;;  %v885_v27 = vsel %vm4458_vm14, %v3260_v16, 0.0  ;;  %v861_v60 = vpop.f32.mrb[27].mxu0 }
 0x495   :  { %v1182_v54 = vmul.f32 %v3012_v33, %v1169_v32  ;;  %v1170_v35 = vadd.f32 %v4495_v56, %v1155_v8  ;;  %v893_v50 = vadd.f32 %v885_v27, %v635_v53  ;;  %v883_v38 = vsel %vm4458_vm14, %v861_v60, 0.0 }
 0x496   :  { %v1180_v1 = vmul.f32 %v3012_v33, %v1167_v41  ;;  %v1168_v10 = vadd.f32 %v4495_v56, %v1153_v23  ;;  %v891_v30 = vadd.f32 %v883_v38, %v633_v9 }
 0x497   :  { %v1183_v2 = vmul.f32 %v3012_v33, %v1170_v35  ;;  %v4529_v28 = vadd.f32 %v3013_v5, %v1182_v54 }
 0x498   :  { %v1181_v52 = vmul.f32 %v3012_v33, %v1168_v10  ;;  %v3275_v55 = vpop.f32.mrb[20].mxu1  ;;  %v4527_v61 = vadd.f32 %v3013_v5, %v1180_v1 }
 0x499   :  { %v4531_v25 = vadd.f32 %v3013_v5, %v1183_v2  ;;  %v1142_v14 = vsel %vm4480_vm2, %v3275_v55, 0.0  ;;  %v1116_v4 = vpop.f32.mrb[21].mxu1  ;;  %v5286_v12 = vmax.f32 %v4529_v28, 0.0 }
 0x49a   :  { %v1150_v18 = vadd.f32 %v1142_v14, %v892_v44  ;;  %v1140_v17 = vsel %vm4480_vm2, %v1116_v4, 0.0  ;;  %v3276_v58 = vpop.f32.mrb[22].mxu1  ;;  %v4537_v46 = vadd.f32 %v3013_v5, %v1181_v52  ;;  %v5285_v36 = vmax.f32 %v4527_v61, 0.0 }
 0x49b   :  { %v5284_v57 = vmax.f32 %v4531_v25, 0.0  ;;  %v1148_v22 = vadd.f32 %v1140_v17, %v890_v11  ;;  %v1143_v47 = vsel %vm4480_vm2, %v3276_v58, 0.0  ;;  %v1119_v59 = vpop.f32.mrb[23].mxu1  ;;  %v1475_v17 = vld [vmem:[%s5253_s9] sm:$0x3] }
 0x49c   :  { %v1158_v29 = vadd.f32 %v1150_v18, %v3989_v42  ;;  %v1151_v24 = vadd.f32 %v1143_v47, %v893_v50  ;;  %v1141_v53 = vsel %vm4480_vm2, %v1119_v59, 0.0  ;;  %v5283_v48 = vmax.f32 %v4537_v46, 0.0 }
 0x49d   :  { %v1156_v34 = vadd.f32 %v1148_v22, %v3977_v37  ;;  %v1149_v15 = vadd.f32 %v1141_v53, %v891_v30  ;;  %v1210_v21 = vpack.c.bf16 %v5284_v57, %v5286_v12 }
 0x49e   :  { %v1173_v9 = vadd.f32 %v4495_v56, %v1158_v29  ;;  %v1159_v39 = vadd.f32 %v1151_v24, %v3993_v45  ;;  %v1209_v42 = vpack.c.bf16 %v5283_v48, %v5285_v36  ;;  %v5299_v29 = vmov 0  }
 0x49f   :  { %v1171_v0 = vadd.f32 %v4495_v56, %v1156_v34  ;;  %v1157_v20 = vadd.f32 %v1149_v15, %v3982_v40  ;;  %v5300_v24 = vmov 1  }
 0x4a0   :  { %v1186_v37 = vmul.f32 %v3012_v33, %v1173_v9  ;;  %v1174_v32 = vadd.f32 %v4495_v56, %v1159_v39  ;;  %3293 = vmatprep.mubr.bf16.mxu0 %v1209_v42  ;;  %v5301_v9 = vmov 2  }
 0x4a1   :  { %v1184_v8 = vmul.f32 %v3012_v33, %v1171_v0  ;;  %v1172_v45 = vadd.f32 %v4495_v56, %v1157_v20  ;;  %3294 = vmatmul.mubr.bf16.vlgmr.msra.gmra.mrb[28].mxu0 %v1210_v21 }
 0x4a2   :  { %v1187_v44 = vmul.f32 %v3012_v33, %v1174_v32  ;;  %v4565_v41 = vadd.f32 %v3013_v5, %v1186_v37 }
 0x4a3   :  { %v1185_v7 = vmul.f32 %v3012_v33, %v1172_v45  ;;  %v4563_v16 = vadd.f32 %v3013_v5, %v1184_v8 }
 0x4a4   :  { %v4567_v40 = vadd.f32 %v3013_v5, %v1187_v44  ;;  %v5282_v54 = vmax.f32 %v4565_v41, 0.0  ;;  %v5311_v26 = vmax.f32 %v4565_v41, 0.0 }
 0x4a5   :  { %v4569_v23 = vadd.f32 %v3013_v5, %v1185_v7  ;;  %v5281_v27 = vmax.f32 %v4563_v16, 0.0  ;;  %v3508_v5 = vld [vmem:[%s5252_s8 + $0x38] sm:$0xff]  }
 0x4a6   :  { %v5280_v11 = vmax.f32 %v4567_v40, 0.0  ;;  %3315 = vmatprep.subr.bf16.mxu1 %v3508_v5 }
 0x4a7   :  { %v5279_v60 = vmax.f32 %v4569_v23, 0.0  ;;  %3316 = vmatpush3.bf16.msra.mxu1 %v3508_v5  ;;  %v5314_v41 = vmax.f32 %v4569_v23, 0.0 }
 0x4a8   :  { %v1212_v33 = vpack.c.bf16 %v5280_v11, %v5282_v54 }
 0x4a9   :  { %v1211_v56 = vpack.c.bf16 %v5279_v60, %v5281_v27 }
 0x4ab   :  { %3297 = vmatprep.mubr.bf16.mxu0 %v1211_v56 }
 0x4ac   :  { %3298 = vmatmul.mubr.bf16.gmra.mrb[32].mxu0 %v1212_v33 }
 0x4ad   :  { %3333 = vmatprep.mubr.msk.bf16.mxu0 %vm3791_vm1, %v5293_v3 }
 0x574   :  { %v3295_v35 = vpop.f32.mrb[28].mxu0 }
 0x575   :  { %v1311_v50 = vpop.f32.mrb[29].mxu0 }
 0x576   :  { %v3296_v38 = vpop.f32.mrb[30].mxu0 }
 0x577   :  { %v4588_v1 = vpack.c.bf16 %v3296_v38, %v3295_v35  ;;  %v1314_v10 = vpop.f32.mrb[31].mxu0 }
 0x578   :  { %v4590_v30 = vpack.c.bf16 %v1314_v10, %v1311_v50  ;;  %v5302_v10 = vsub.s32 1, %v4030_v62 }
 0x57a   :  { %3317 = vmatprep.mubr.bf16.mxu1 %v4590_v30  ;;  %3326 = vmatpush3.bf16.xpose.msra.mxu0 %v4590_v30 }
 0x57b   :  { %3337 = vmatprep.subr.bf16.mxu1 %v4590_v30  ;;  %3318 = vmatmul.mubr.bf16.vlgmr.msra.gmra.mrb[24].mxu1 %v4588_v1 }
 0x57c   :  { %3338 = vmatpush3.bf16.msra.mxu1 %v4590_v30  ;;  %3327 = vmatprep.subr.bf16.mxu0 %v5293_v3 }
 0x57d   :  { %3339 = vmatprep.subr.bf16.mxu1 %v4588_v1 }
 0x57f   :  { %v3299_v2 = vpop.f32.mrb[32].mxu0 }
 0x580   :  { %3340 = vmatpush3.bf16.msra.mxu1 %v4588_v1  ;;  %v1327_v52 = vpop.f32.mrb[33].mxu0 }
 0x581   :  { %v3300_v55 = vpop.f32.mrb[34].mxu0 }
 0x582   :  { %v4600_v14 = vpack.c.bf16 %v3300_v55, %v3299_v2  ;;  %v1330_v4 = vpop.f32.mrb[35].mxu0  ;;  %3328 = vmatpush3.bf16.xpose.msra.mxu0 %v4588_v1 }
 0x583   :  { %v4603_v18 = vpack.c.bf16 %v1330_v4, %v1327_v52  ;;  %3329 = vmatprep.subr.bf16.mxu0 %v5293_v3 }
 0x585   :  { %3321 = vmatprep.mubr.bf16.mxu1 %v4603_v18  ;;  %3341 = vmatprep.subr.bf16.mxu1 %v4603_v18 }
 0x586   :  { %3322 = vmatmul.mubr.bf16.gmra.mrb[28].mxu1 %v4600_v14 }
 0x587   :  { %3342 = vmatpush3.bf16.msra.mxu1 %v4603_v18 }
 0x588   :  { %3343 = vmatprep.subr.bf16.mxu1 %v4600_v14 }
 0x58a   :  { %3330 = vmatpush3.bf16.xpose.msra.mxu0 %v4603_v18 }
 0x58b   :  { %3344 = vmatpush3.bf16.msra.mxu1 %v4600_v14  ;;  %3331 = vmatprep.subr.bf16.mxu0 %v5293_v3 }
 0x58c   :  { %3353 = vmatprep.subr.bf16.mxu1 %v4590_v30 }
 0x592   :  { %3332 = vmatpush3.bf16.xpose.msra.mxu0 %v4600_v14 }
 0x593   :  { %3369 = vmatprep.subr.bf16.mxu0 %v4590_v30 }
 0x599   :  { %3334 = vmatmul.mubr.bf16.vlgmr.msra.gmra.mrb[36].mxu0 %v1475_v17 }
 0x59a   :  { %3370 = vmatpush3.bf16.msra.mxu0 %v4590_v30 }
 0x59b   :  { %3371 = vmatprep.subr.bf16.mxu0 %v4588_v1 }
 0x59e   :  { %3372 = vmatpush3.bf16.msra.mxu0 %v4588_v1 }
 0x59f   :  { %3373 = vmatprep.subr.bf16.mxu0 %v4603_v18 }
 0x5a2   :  { %3374 = vmatpush3.bf16.msra.mxu0 %v4603_v18 }
 0x5a3   :  { %3375 = vmatprep.subr.bf16.mxu0 %v4600_v14 }
 0x5a6   :  { %3376 = vmatpush3.bf16.msra.mxu0 %v4600_v14 }
 0x64e   :  { %v3319_v58 = vpop.f32.mrb[24].mxu1 }
 0x64f   :  { %1778 = vperm.xlu0 %3463, %v3319_v58   ;;  %1528 = vperm.xlu1 %3462, %v3319_v58   ;;  %v1444_v22 = vpop.f32.mrb[25].mxu1 }
 0x650   :  { %v3320_v47 = vpop.f32.mrb[26].mxu1 }
 0x651   :  { %v1447_v59 = vpop.f32.mrb[27].mxu1 }
 0x653   :  { %3468 = vset.pattern.permute.xlu0 %v5299_v29  ;;  %1518 = vperm.xlu1 %3462, %v1444_v22  }
 0x654   :  { %1523 = vperm.xlu0 %3468, %v1447_v59  }
 0x657   :  { %3464 = vset.pattern.permute.xlu1 %v5300_v24 }
 0x658   :  { %1770 = vperm.xlu1 %3464, %v1444_v22   ;;  %3471 = vset.pattern.permute.xlu0 %v5300_v24 }
 0x659   :  { %v3323_v53 = vpop.f32.mrb[28].mxu1 }
 0x65a   :  { %v1460_v34 = vpop.f32.mrb[29].mxu1 }
 0x65b   :  { %1786 = vperm.xlu0 %3471, %v1460_v34   ;;  %v3324_v15 = vpop.f32.mrb[30].mxu1 }
 0x65c   :  { %3465 = vset.pattern.permute.xlu1 %v5301_v9  ;;  %v1463_v39 = vpop.f32.mrb[31].mxu1 }
 0x65d   :  { %2023 = vperm.xlu1 %3465, %v1444_v22  }
 0x65f   :  { %1798 = vperm.xlu0 %3471, %v3324_v15  }
 0x661   :  { %3466 = vset.pattern.permute.xlu1 %v5299_v29 }
 0x662   :  { %1533 = vperm.xlu1 %3466, %v3320_v47  }
 0x663   :  { %3473 = vset.pattern.permute.xlu0 %v5301_v9 }
 0x664   :  { %2027 = vperm.xlu0 %3473, %v1447_v59  }
 0x666   :  { %3467 = vset.pattern.permute.xlu1 %v5300_v24 }
 0x667   :  { %1782 = vperm.xlu1 %3467, %v3320_v47  }
 0x668   :  { %2043 = vperm.xlu0 %3473, %v1463_v39  }
 0x66b   :  { %1774 = vperm.xlu1 %3467, %v1447_v59  }
 0x66c   :  { %v4634_v42 = vpop.f32.mrb[36].mxu0  ;;  %3478 = vset.pattern.permute.xlu0 %v5299_v29 }
 0x66d   :  { %v3335_v0 = vpop.f32.mrb[37].mxu0  ;;  %v4646_v37 = vrot.slane %v4634_v42, %v4033_v63  ;;  %v4657_v2 = vrot.slane %v4634_v42, %v5302_v10  ;;  %v5303_v10 = vsub.s32 2, %v4030_v62 }
 0x66e   :  { %v1513_v20 = vpop.f32.mrb[38].mxu0 }
 0x66f   :  { %3469 = vset.pattern.permute.xlu1 %v5299_v29  ;;  %v3336_v21 = vpop.f32.mrb[39].mxu0 }
 0x670   :  { %1548 = vperm.xlu1 %3469, %v3323_v53  }
 0x674   :  { %1538 = vperm.xlu1 %3469, %v1460_v34  }
 0x678   :  { %1553 = vperm.xlu1 %3469, %v3324_v15  }
 0x67c   :  { %1543 = vperm.xlu1 %3469, %v1463_v39  }
 0x680   :  { %3470 = vset.pattern.permute.xlu1 %v5301_v9 }
 0x681   :  { %2031 = vperm.xlu1 %3470, %v3319_v58  }
 0x685   :  { %2035 = vperm.xlu1 %3470, %v3320_v47  }
 0x689   :  { %3472 = vset.pattern.permute.xlu1 %v5300_v24 }
 0x68a   :  { %1794 = vperm.xlu1 %3472, %v3323_v53  }
 0x68e   :  { %3474 = vset.pattern.permute.xlu1 %v5301_v9 }
 0x68f   :  { %2039 = vperm.xlu1 %3474, %v1460_v34  }
 0x693   :  { %2047 = vperm.xlu1 %3474, %v3323_v53  }
 0x697   :  { %3475 = vset.pattern.permute.xlu1 %v5300_v24 }
 0x698   :  { %1790 = vperm.xlu1 %3475, %v1463_v39  }
 0x69c   :  { %3476 = vset.pattern.permute.xlu1 %v5301_v9 }
 0x69d   :  { %2051 = vperm.xlu1 %3476, %v3324_v15  }
 0x6a1   :  { %3477 = vset.pattern.permute.xlu1 %v5299_v29 }
 0x6ce   :  { %v1779_v32 = vpop.permute.xlu0 %1778  ;;  %v1529_v8 = vpop.permute.xlu1 %1528 }
 0x6cf   :  { %v1562_v45 = vadd.f32 %v4646_v37, %v1529_v8 }
 0x6d1   :  { %v1570_v44 = vmul.f32 0.2, %v1562_v45 }
 0x6d2   :  { %v1519_v7 = vpop.permute.xlu1 %1518 }
 0x6d3   :  { %v1578_v56 = vmax.f32 %v1562_v45, %v1570_v44  ;;  %v1560_v33 = vadd.f32 %v4646_v37, %v1519_v7  ;;  %v1524_v5 = vpop.permute.xlu0 %1523 }
 0x6d4   :  { %v1561_v35 = vadd.f32 %v4646_v37, %v1524_v5 }
 0x6d5   :  { %v1568_v50 = vmul.f32 0.2, %v1560_v33  ;;  %v4652_v38 = vadd.f32 %v1578_v56, %v4054_v13 }
 0x6d6   :  { %v1569_v17 = vmul.f32 0.2, %v1561_v35 }
 0x6d7   :  { %v1576_v52 = vmax.f32 %v1560_v33, %v1568_v50  ;;  %v1771_v55 = vpop.permute.xlu1 %1770  ;;  %v1598_v4 = vsel %vm453_vm4, %v4652_v38, -inf }
 0x6d8   :  { %v1805_v58 = vadd.f32 %v4657_v2, %v1771_v55  ;;  %1599 = vmax.xlane.f32.xlu0 %v1598_v4  ;;  %v1577_v24 = vmax.f32 %v1561_v35, %v1569_v17  ;;  %v1807_v55 = vadd.f32 %v4657_v2, %v1779_v32 }
 0x6d9   :  { %v4663_v22 = vadd.f32 %v1576_v52, %v4058_v19  ;;  %v4687_v52 = vrot.slane %v4634_v42, %v5303_v10 }
 0x6da   :  { %v1813_v47 = vmul.f32 0.2, %v1805_v58  ;;  %v4673_v39 = vadd.f32 %v1577_v24, %v4097_v6  ;;  %v1787_v35 = vpop.permute.xlu0 %1786 }
 0x6db   :  { %v1592_v59 = vsel %vm453_vm4, %v4663_v22, -inf }
 0x6dc   :  { %v1821_v53 = vmax.f32 %v1805_v58, %v1813_v47  ;;  %v2024_v34 = vpop.permute.xlu1 %2023  ;;  %1593 = vmax.xlane.f32.xlu0 %v1592_v59  ;;  %v1595_v8 = vsel %vm453_vm4, %v4673_v39, -inf }
 0x6de   :  { %v4668_v15 = vadd.f32 %v1821_v53, %v4058_v19  ;;  %v1799_v59 = vpop.permute.xlu0 %1798  ;;  %v1815_v53 = vmul.f32 0.2, %v1807_v55 }
 0x6df   :  { %v1812_v60 = vadd.f32 %v4657_v2, %v1799_v59 }
 0x6e0   :  { %v1837_v9 = vsel %vm453_vm4, %v4668_v15, -inf }
 0x6e1   :  { %v1534_v0 = vpop.permute.xlu1 %1533  ;;  %1838 = vmax.xlane.f32.xlu1 %v1837_v9  ;;  %v2058_v9 = vadd.f32 %v4687_v52, %v2024_v34 }
 0x6e2   :  { %v1563_v20 = vadd.f32 %v4646_v37, %v1534_v0 }
 0x6e4   :  { %v1571_v21 = vmul.f32 0.2, %v1563_v20 }
 0x6e5   :  { %1596 = vmax.xlane.f32.xlu1 %v1595_v8  ;;  %v1823_v8 = vmax.f32 %v1807_v55, %v1815_v53 }
 0x6e6   :  { %v1579_v45 = vmax.f32 %v1563_v20, %v1571_v21  ;;  %v1783_v44 = vpop.permute.xlu1 %1782 }
 0x6e7   :  { %v4710_v53 = vadd.f32 %v1823_v8, %v4054_v13 }
 0x6e8   :  { %v4679_v7 = vadd.f32 %v1579_v45, %v4121_v49  ;;  %v2066_v45 = vmul.f32 0.2, %v2058_v9 }
 0x6ea   :  { %v1775_v56 = vpop.permute.xlu1 %1774  ;;  %v1601_v33 = vsel %vm453_vm4, %v4679_v7, -inf }
 0x6eb   :  { %v1806_v5 = vadd.f32 %v4657_v2, %v1775_v56  ;;  %1602 = vmax.xlane.f32.xlu0 %v1601_v33  ;;  %v2028_v33 = vpop.permute.xlu0 %2027 }
 0x6ed   :  { %v1814_v50 = vmul.f32 0.2, %v1806_v5 }
 0x6ef   :  { %v1822_v4 = vmax.f32 %v1806_v5, %v1814_v50  ;;  %v1549_v17 = vpop.permute.xlu1 %1548  ;;  %v1808_v5 = vadd.f32 %v4657_v2, %v1783_v44 }
 0x6f0   :  { %v1566_v58 = vadd.f32 %v4646_v37, %v1549_v17  ;;  %v5304_v17 = vld [vmem:[#allocation5_spill] sm:$0xff] }
 0x6f1   :  { %v4692_v47 = vadd.f32 %v1822_v4, %v4097_v6 }
 0x6f2   :  { %v1574_v24 = vmul.f32 0.2, %v1566_v58 }
 0x6f3   :  { %v1539_v0 = vpop.permute.xlu1 %1538  ;;  %v1840_v62 = vsel %vm453_vm4, %v4692_v47, -inf }
 0x6f4   :  { %v1582_v42 = vmax.f32 %v1566_v58, %v1574_v24  ;;  %v1564_v20 = vadd.f32 %v4646_v37, %v1539_v0  ;;  %1841 = vmax.xlane.f32.xlu0 %v1840_v62  ;;  %v2074_v24 = vmax.f32 %v2058_v9, %v2066_v45  ;;  %v2059_v0 = vadd.f32 %v4687_v52, %v2028_v33 }
 0x6f5   :  { %v1816_v62 = vmul.f32 0.2, %v1808_v5  ;;  %v1843_v9 = vsel %vm453_vm4, %v4710_v53, -inf }
 0x6f6   :  { %v1572_v32 = vmul.f32 0.2, %v1564_v20  ;;  %v4699_v21 = vadd.f32 %v1582_v42, %v4117_v31  ;;  %v4722_v8 = vadd.f32 %v2074_v24, %v4058_v19  ;;  %v2067_v45 = vmul.f32 0.2, %v2059_v0 }
 0x6f7   :  { %v1554_v56 = vpop.permute.xlu1 %1553  ;;  %v1824_v33 = vmax.f32 %v1808_v5, %v1816_v62 }
 0x6f8   :  { %v1580_v50 = vmax.f32 %v1564_v20, %v1572_v32  ;;  %v1567_v34 = vadd.f32 %v4646_v37, %v1554_v56  ;;  %v1610_v10 = vsel %vm453_vm4, %v4699_v21, -inf  ;;  %v1809_v32 = vadd.f32 %v4657_v2, %v1787_v35 }
 0x6f9   :  { %1611 = vmax.xlane.f32.xlu1 %v1610_v10  ;;  %v2075_v24 = vmax.f32 %v2059_v0, %v2067_v45  ;;  %v2090_v5 = vsel %vm453_vm4, %v4722_v8, -inf  ;;  %v1820_v0 = vmul.f32 0.2, %v1812_v60 }
 0x6fa   :  { %v1575_v4 = vmul.f32 0.2, %v1567_v34  ;;  %v4706_v58 = vadd.f32 %v1580_v50, %v5304_v17  ;;  %v5305_v50 = vld [vmem:[#allocation6_spill] sm:$0xff] }
 0x6fb   :  { %v1544_v55 = vpop.permute.xlu1 %1543 }
 0x6fc   :  { %v1583_v44 = vmax.f32 %v1567_v34, %v1575_v4  ;;  %v1565_v42 = vadd.f32 %v4646_v37, %v1544_v55  ;;  %v1604_v20 = vsel %vm453_vm4, %v4706_v58, -inf  ;;  %v1817_v55 = vmul.f32 0.2, %v1809_v32 }
 0x6fd   :  { %1605 = vmax.xlane.f32.xlu1 %v1604_v20 }
 0x6fe   :  { %v1573_v56 = vmul.f32 0.2, %v1565_v42  ;;  %v4717_v10 = vadd.f32 %v1583_v44, %v5305_v50  ;;  %v5306_v44 = vld [vmem:[#allocation7_spill] sm:$0xff] }
 0x700   :  { %v1581_v34 = vmax.f32 %v1565_v42, %v1573_v56  ;;  %v2032_v37 = vpop.permute.xlu1 %2031  ;;  %v1613_v4 = vsel %vm453_vm4, %v4717_v10, -inf  ;;  %v4736_v42 = vadd.f32 %v1824_v33, %v4121_v49  ;;  %v1825_v56 = vmax.f32 %v1809_v32, %v1817_v55 }
 0x701   :  { %v2060_v35 = vadd.f32 %v4687_v52, %v2032_v37  ;;  %1614 = vmax.xlane.f32.xlu0 %v1613_v4  ;;  %1844 = vmax.xlane.f32.xlu1 %v1843_v9  ;;  %v4745_v4 = vadd.f32 %v2075_v24, %v4097_v6  ;;  %v1828_v55 = vmax.f32 %v1812_v60, %v1820_v0 }
 0x702   :  { %v4728_v20 = vadd.f32 %v1581_v34, %v5306_v44  ;;  %v1846_v45 = vsel %vm453_vm4, %v4736_v42, -inf }
 0x703   :  { %v2068_v11 = vmul.f32 0.2, %v2060_v35  ;;  %v4767_v0 = vadd.f32 %v1828_v55, %v5305_v50 }
 0x704   :  { %v2036_v27 = vpop.permute.xlu1 %2035  ;;  %v1607_v62 = vsel %vm453_vm4, %v4728_v20, -inf }
 0x705   :  { %v2076_v37 = vmax.f32 %v2060_v35, %v2068_v11  ;;  %v2061_v9 = vadd.f32 %v4687_v52, %v2036_v27  ;;  %2091 = vmax.xlane.f32.xlu1 %v2090_v5  ;;  %1608 = vmax.xlane.f32.xlu0 %v1607_v62  ;;  %v4750_v27 = vadd.f32 %v1825_v56, %v5304_v17  ;;  %v2093_v5 = vsel %vm453_vm4, %v4745_v4, -inf }
 0x707   :  { %v2069_v34 = vmul.f32 0.2, %v2061_v9  ;;  %v4740_v59 = vadd.f32 %v2076_v37, %v4054_v13  ;;  %v1849_v62 = vsel %vm453_vm4, %v4750_v27, -inf }
 0x709   :  { %v2077_v54 = vmax.f32 %v2061_v9, %v2069_v34  ;;  %1847 = vmax.xlane.f32.xlu0 %v1846_v45  ;;  %v1795_v33 = vpop.permute.xlu1 %1794  ;;  %v2096_v11 = vsel %vm453_vm4, %v4740_v59, -inf }
 0x70a   :  { %v1811_v32 = vadd.f32 %v4657_v2, %v1795_v33  ;;  %2097 = vmax.xlane.f32.xlu1 %v2096_v11 }
 0x70b   :  { %v4756_v24 = vadd.f32 %v2077_v54, %v4121_v49  ;;  %v2044_v54 = vpop.permute.xlu0 %2043 }
 0x70c   :  { %v1819_v35 = vmul.f32 0.2, %v1811_v32 }
 0x70d   :  { %2094 = vmax.xlane.f32.xlu0 %v2093_v5  ;;  %v2099_v34 = vsel %vm453_vm4, %v4756_v24, -inf  ;;  %v2063_v5 = vadd.f32 %v4687_v52, %v2044_v54 }
 0x70e   :  { %v1827_v37 = vmax.f32 %v1811_v32, %v1819_v35  ;;  %1850 = vmax.xlane.f32.xlu1 %v1849_v62  ;;  %v2040_v9 = vpop.permute.xlu1 %2039  ;;  %v1858_v62 = vsel %vm453_vm4, %v4767_v0, -inf }
 0x70f   :  { %v2062_v56 = vadd.f32 %v4687_v52, %v2040_v9  ;;  %v2071_v57 = vmul.f32 0.2, %v2063_v5 }
 0x710   :  { %v4764_v60 = vadd.f32 %v1827_v37, %v4117_v31 }
 0x711   :  { %v2070_v45 = vmul.f32 0.2, %v2062_v56  ;;  %2100 = vmax.xlane.f32.xlu0 %v2099_v34 }
 0x712   :  { %v2048_v33 = vpop.permute.xlu1 %2047  ;;  %v1855_v11 = vsel %vm453_vm4, %v4764_v60, -inf }
 0x713   :  { %v2078_v32 = vmax.f32 %v2062_v56, %v2070_v45  ;;  %v2064_v35 = vadd.f32 %v4687_v52, %v2048_v33  ;;  %1856 = vmax.xlane.f32.xlu1 %v1855_v11  ;;  %v2079_v11 = vmax.f32 %v2063_v5, %v2071_v57 }
 0x715   :  { %v2072_v37 = vmul.f32 0.2, %v2064_v35  ;;  %1859 = vmax.xlane.f32.xlu0 %v1858_v62  ;;  %v4776_v55 = vadd.f32 %v2078_v32, %v5304_v17 }
 0x717   :  { %v2080_v9 = vmax.f32 %v2064_v35, %v2072_v37  ;;  %v1791_v34 = vpop.permute.xlu1 %1790  ;;  %v2102_v48 = vsel %vm453_vm4, %v4776_v55, -inf }
 0x718   :  { %v1810_v56 = vadd.f32 %v4657_v2, %v1791_v34  ;;  %2103 = vmax.xlane.f32.xlu1 %v2102_v48  ;;  %v4793_v2 = vadd.f32 %v2079_v11, %v5306_v44 }
 0x719   :  { %v4782_v45 = vadd.f32 %v2080_v9, %v4117_v31 }
 0x71a   :  { %v1818_v54 = vmul.f32 0.2, %v1810_v56  ;;  %v2105_v57 = vsel %vm453_vm4, %v4793_v2, -inf }
 0x71b   :  { %v2108_v33 = vsel %vm453_vm4, %v4782_v45, -inf }
 0x71c   :  { %v1826_v62 = vmax.f32 %v1810_v56, %v1818_v54  ;;  %2109 = vmax.xlane.f32.xlu1 %v2108_v33  ;;  %v2052_v32 = vpop.permute.xlu1 %2051 }
 0x71d   :  { %v2065_v35 = vadd.f32 %v4687_v52, %v2052_v32 }
 0x71e   :  { %v4788_v37 = vadd.f32 %v1826_v62, %v5306_v44 }
 0x71f   :  { %v2073_v36 = vmul.f32 0.2, %v2065_v35 }
 0x720   :  { %v1852_v48 = vsel %vm453_vm4, %v4788_v37, -inf }
 0x721   :  { %v2081_v9 = vmax.f32 %v2065_v35, %v2073_v36  ;;  %1853 = vmax.xlane.f32.xlu0 %v1852_v48 }
 0x723   :  { %v4798_v5 = vadd.f32 %v2081_v9, %v5305_v50 }
 0x725   :  { %2106 = vmax.xlane.f32.xlu0 %v2105_v57  ;;  %v2111_v52 = vsel %vm453_vm4, %v4798_v5, -inf }
 0x729   :  { %2112 = vmax.xlane.f32.xlu0 %v2111_v52 }
 0x765   :  { %v1600_v34 = vpop.xlane.xlu0 %1599 }
 0x766   :  { %v1618_v56 = vsub.f32 %v4652_v38, %v1600_v34 }
 0x768   :  { %v1628_v54 = vmul.f32 1.442695, %v1618_v56 }
 0x769   :  { %v1594_v33 = vpop.xlane.xlu0 %1593 }
 0x76a   :  { %3637 = vpow2.f32 %v1628_v54  ;;  %v1616_v36 = vsub.f32 %v4663_v22, %v1594_v33 }
 0x76c   :  { %v1624_v11 = vmul.f32 1.442695, %v1616_v36 }
 0x76e   :  { %3639 = vpow2.f32 %v1624_v11  ;;  %v1839_v62 = vpop.xlane.xlu1 %1838 }
 0x76f   :  { %v1861_v32 = vsub.f32 %v4668_v15, %v1839_v62 }
 0x771   :  { %v1869_v35 = vmul.f32 1.442695, %v1861_v32 }
 0x772   :  { %v1597_v9 = vpop.xlane.xlu1 %1596 }
 0x773   :  { %3641 = vpow2.f32 %v1869_v35  ;;  %v1617_v38 = vsub.f32 %v4673_v39, %v1597_v9 }
 0x774   :  { %v4805_v48 = vpop.eup %3637 }
 0x775   :  { %v1646_v57 = vsel %vm453_vm4, %v4805_v48, 0.0  ;;  %v1626_v15 = vmul.f32 1.442695, %v1617_v38 }
 0x776   :  { %1647 = vadd.xlane.f32.xlu1 %v1646_v57 }
 0x778   :  { %v4810_v52 = vpop.eup %3639  ;;  %v1603_v34 = vpop.xlane.xlu0 %1602 }
 0x779   :  { %v1619_v22 = vsub.f32 %v4679_v7, %v1603_v34  ;;  %v1640_v56 = vsel %vm453_vm4, %v4810_v52, 0.0 }
 0x77a   :  { %1641 = vadd.xlane.f32.xlu1 %v1640_v56 }
 0x77b   :  { %v1630_v54 = vmul.f32 1.442695, %v1619_v22 }
 0x77d   :  { %v4815_v33 = vpop.eup %3641  ;;  %3643 = vpow2.f32 %v1630_v54 }
 0x77e   :  { %v1885_v36 = vsel %vm453_vm4, %v4815_v33, 0.0  ;;  %3645 = vpow2.f32 %v1626_v15 }
 0x77f   :  { %1886 = vadd.xlane.f32.xlu1 %v1885_v36 }
 0x781   :  { %v1842_v39 = vpop.xlane.xlu0 %1841 }
 0x782   :  { %v1862_v11 = vsub.f32 %v4692_v47, %v1842_v39 }
 0x784   :  { %v1871_v62 = vmul.f32 1.442695, %v1862_v11 }
 0x786   :  { %3647 = vpow2.f32 %v1871_v62  ;;  %v1612_v7 = vpop.xlane.xlu1 %1611 }
 0x787   :  { %v4820_v32 = vpop.eup %3643  ;;  %v1622_v35 = vsub.f32 %v4699_v21, %v1612_v7 }
 0x788   :  { %v1649_v9 = vsel %vm453_vm4, %v4820_v32, 0.0  ;;  %v4825_v57 = vpop.eup %3645 }
 0x789   :  { %v1636_v38 = vmul.f32 1.442695, %v1622_v35  ;;  %1650 = vadd.xlane.f32.xlu0 %v1649_v9  ;;  %v1643_v47 = vsel %vm453_vm4, %v4825_v57, 0.0 }
 0x78a   :  { %v1606_v34 = vpop.xlane.xlu1 %1605 }
 0x78b   :  { %3649 = vpow2.f32 %v1636_v38  ;;  %v1620_v22 = vsub.f32 %v4706_v58, %v1606_v34 }
 0x78d   :  { %v1632_v56 = vmul.f32 1.442695, %v1620_v22  ;;  %1644 = vadd.xlane.f32.xlu0 %v1643_v47 }
 0x78e   :  { %v1615_v15 = vpop.xlane.xlu0 %1614  ;;  %v1845_v54 = vpop.xlane.xlu1 %1844 }
 0x78f   :  { %3651 = vpow2.f32 %v1632_v56  ;;  %v1623_v21 = vsub.f32 %v4717_v10, %v1615_v15  ;;  %v1863_v36 = vsub.f32 %v4710_v53, %v1845_v54 }
 0x790   :  { %v4832_v39 = vpop.eup %3647 }
 0x791   :  { %v1638_v11 = vmul.f32 1.442695, %v1623_v21  ;;  %v1873_v62 = vmul.f32 1.442695, %v1863_v36  ;;  %v1888_v7 = vsel %vm453_vm4, %v4832_v39, 0.0 }
 0x792   :  { %v1609_v58 = vpop.xlane.xlu0 %1608  ;;  %1889 = vadd.xlane.f32.xlu0 %v1888_v7  ;;  %v2092_v35 = vpop.xlane.xlu1 %2091 }
 0x793   :  { %3653 = vpow2.f32 %v1638_v11  ;;  %v1621_v9 = vsub.f32 %v4728_v20, %v1609_v58  ;;  %v2114_v38 = vsub.f32 %v4722_v8, %v2092_v35 }
 0x794   :  { %3655 = vpow2.f32 %v1873_v62 }
 0x795   :  { %v4838_v34 = vpop.eup %3649  ;;  %v1634_v10 = vmul.f32 1.442695, %v1621_v9  ;;  %v2122_v53 = vmul.f32 1.442695, %v2114_v38 }
 0x796   :  { %v1848_v22 = vpop.xlane.xlu0 %1847  ;;  %v1658_v47 = vsel %vm453_vm4, %v4838_v34, 0.0 }
 0x797   :  { %3657 = vpow2.f32 %v1634_v10  ;;  %v1864_v56 = vsub.f32 %v4736_v42, %v1848_v22  ;;  %1659 = vadd.xlane.f32.xlu1 %v1658_v47  ;;  %v2098_v15 = vpop.xlane.xlu1 %2097 }
 0x798   :  { %3659 = vpow2.f32 %v2122_v53  ;;  %v2116_v54 = vsub.f32 %v4740_v59, %v2098_v15 }
 0x799   :  { %v4844_v20 = vpop.eup %3651  ;;  %v1875_v8 = vmul.f32 1.442695, %v1864_v56 }
 0x79a   :  { %v2126_v21 = vmul.f32 1.442695, %v2116_v54  ;;  %v2095_v36 = vpop.xlane.xlu0 %2094  ;;  %v1652_v11 = vsel %vm453_vm4, %v4844_v20, 0.0 }
 0x79b   :  { %3661 = vpow2.f32 %v1875_v8  ;;  %v2115_v62 = vsub.f32 %v4745_v4, %v2095_v36  ;;  %1653 = vadd.xlane.f32.xlu1 %v1652_v11  ;;  %v1851_v7 = vpop.xlane.xlu1 %1850 }
 0x79c   :  { %3663 = vpow2.f32 %v2126_v21  ;;  %v1865_v42 = vsub.f32 %v4750_v27, %v1851_v7 }
 0x79d   :  { %v4850_v58 = vpop.eup %3653  ;;  %v2124_v35 = vmul.f32 1.442695, %v2115_v62 }
 0x79e   :  { %v4852_v59 = vpop.eup %3655  ;;  %v1877_v9 = vmul.f32 1.442695, %v1865_v42  ;;  %v2101_v38 = vpop.xlane.xlu0 %2100  ;;  %v1661_v10 = vsel %vm453_vm4, %v4850_v58, 0.0 }
 0x79f   :  { %3665 = vpow2.f32 %v2124_v35  ;;  %v2117_v53 = vsub.f32 %v4756_v24, %v2101_v38  ;;  %1662 = vadd.xlane.f32.xlu0 %v1661_v10  ;;  %v1891_v4 = vsel %vm453_vm4, %v4852_v59, 0.0 }
 0x7a0   :  { %3667 = vpow2.f32 %v1877_v9  ;;  %1892 = vadd.xlane.f32.xlu1 %v1891_v4  ;;  %v1857_v27 = vpop.xlane.xlu1 %1856 }
 0x7a1   :  { %v4859_v22 = vpop.eup %3657  ;;  %v2128_v47 = vmul.f32 1.442695, %v2117_v53  ;;  %v1867_v56 = vsub.f32 %v4764_v60, %v1857_v27 }
 0x7a2   :  { %v4862_v15 = vpop.eup %3659  ;;  %v1860_v54 = vpop.xlane.xlu0 %1859  ;;  %v1655_v8 = vsel %vm453_vm4, %v4859_v22, 0.0 }
 0x7a3   :  { %3669 = vpow2.f32 %v2128_v47  ;;  %v1881_v24 = vmul.f32 1.442695, %v1867_v56  ;;  %v1868_v21 = vsub.f32 %v4767_v0, %v1860_v54  ;;  %1656 = vadd.xlane.f32.xlu0 %v1655_v8  ;;  %v2138_v36 = vsel %vm453_vm4, %v4862_v15, 0.0 }
 0x7a4   :  { %2139 = vadd.xlane.f32.xlu1 %v2138_v36 }
 0x7a5   :  { %v4869_v11 = vpop.eup %3661  ;;  %3671 = vpow2.f32 %v1881_v24  ;;  %v1883_v62 = vmul.f32 1.442695, %v1868_v21  ;;  %v2104_v60 = vpop.xlane.xlu1 %2103 }
 0x7a6   :  { %v4871_v7 = vpop.eup %3663  ;;  %v2118_v42 = vsub.f32 %v4776_v55, %v2104_v60  ;;  %v1894_v35 = vsel %vm453_vm4, %v4869_v11, 0.0 }
 0x7a7   :  { %3673 = vpow2.f32 %v1883_v62  ;;  %1895 = vadd.xlane.f32.xlu0 %v1894_v35  ;;  %v2144_v0 = vsel %vm453_vm4, %v4871_v7, 0.0 }
 0x7a8   :  { %v2130_v9 = vmul.f32 1.442695, %v2118_v42  ;;  %2145 = vadd.xlane.f32.xlu1 %v2144_v0 }
 0x7a9   :  { %v4878_v38 = vpop.eup %3665  ;;  %v2110_v10 = vpop.xlane.xlu1 %2109 }
 0x7aa   :  { %v4880_v53 = vpop.eup %3667  ;;  %3675 = vpow2.f32 %v2130_v9  ;;  %v2120_v4 = vsub.f32 %v4782_v45, %v2110_v10  ;;  %v2141_v55 = vsel %vm453_vm4, %v4878_v38, 0.0 }
 0x7ab   :  { %2142 = vadd.xlane.f32.xlu0 %v2141_v55  ;;  %v1897_v27 = vsel %vm453_vm4, %v4880_v53, 0.0 }
 0x7ac   :  { %v2134_v47 = vmul.f32 1.442695, %v2120_v4  ;;  %1898 = vadd.xlane.f32.xlu1 %v1897_v27 }
 0x7ad   :  { %v4887_v56 = vpop.eup %3669 }
 0x7ae   :  { %3677 = vpow2.f32 %v2134_v47  ;;  %v1854_v54 = vpop.xlane.xlu0 %1853  ;;  %v2147_v8 = vsel %vm453_vm4, %v4887_v56, 0.0 }
 0x7af   :  { %v4891_v24 = vpop.eup %3671  ;;  %v1866_v45 = vsub.f32 %v4788_v37, %v1854_v54  ;;  %2148 = vadd.xlane.f32.xlu0 %v2147_v8 }
 0x7b0   :  { %v1903_v21 = vsel %vm453_vm4, %v4891_v24, 0.0 }
 0x7b1   :  { %v4896_v36 = vpop.eup %3673  ;;  %v1879_v62 = vmul.f32 1.442695, %v1866_v45  ;;  %1904 = vadd.xlane.f32.xlu1 %v1903_v21 }
 0x7b2   :  { %v2107_v60 = vpop.xlane.xlu0 %2106  ;;  %v1906_v42 = vsel %vm453_vm4, %v4896_v36, 0.0 }
 0x7b3   :  { %3679 = vpow2.f32 %v1879_v62  ;;  %v2119_v35 = vsub.f32 %v4793_v2, %v2107_v60  ;;  %1907 = vadd.xlane.f32.xlu0 %v1906_v42 }
 0x7b4   :  { %v4901_v0 = vpop.eup %3675 }
 0x7b5   :  { %v2132_v9 = vmul.f32 1.442695, %v2119_v35  ;;  %v2150_v37 = vsel %vm453_vm4, %v4901_v0, 0.0 }
 0x7b6   :  { %v2113_v10 = vpop.xlane.xlu0 %2112  ;;  %2151 = vadd.xlane.f32.xlu1 %v2150_v37 }
 0x7b7   :  { %3681 = vpow2.f32 %v2132_v9  ;;  %v2121_v4 = vsub.f32 %v4798_v5, %v2113_v10 }
 0x7b8   :  { %v4906_v55 = vpop.eup %3677 }
 0x7b9   :  { %v2136_v27 = vmul.f32 1.442695, %v2121_v4  ;;  %v2156_v47 = vsel %vm453_vm4, %v4906_v55, 0.0 }
 0x7ba   :  { %2157 = vadd.xlane.f32.xlu1 %v2156_v47 }
 0x7bb   :  { %3683 = vpow2.f32 %v2136_v27 }
 0x7bd   :  { %v4910_v2 = vpop.eup %3679 }
 0x7be   :  { %v1900_v54 = vsel %vm453_vm4, %v4910_v2, 0.0 }
 0x7bf   :  { %1901 = vadd.xlane.f32.xlu0 %v1900_v54 }
 0x7c1   :  { %v4914_v8 = vpop.eup %3681 }
 0x7c2   :  { %v2153_v45 = vsel %vm453_vm4, %v4914_v8, 0.0 }
 0x7c3   :  { %2154 = vadd.xlane.f32.xlu0 %v2153_v45 }
 0x7c5   :  { %v4918_v5 = vpop.eup %3683 }
 0x7c6   :  { %v2159_v21 = vsel %vm453_vm4, %v4918_v5, 0.0 }
 0x7c7   :  { %2160 = vadd.xlane.f32.xlu0 %v2159_v21 }
 0x803   :  { %v1648_v62 = vpop.xlane.xlu1 %1647 }
 0x807   :  { %v1642_v60 = vpop.xlane.xlu1 %1641 }
 0x80c   :  { %v1887_v9 = vpop.xlane.xlu1 %1886 }
 0x816   :  { %v1651_v42 = vpop.xlane.xlu0 %1650 }
 0x817   :  { %3685 = vrcp.f32 %v1651_v42 }
 0x818   :  { %3687 = vrcp.f32 %v1642_v60 }
 0x819   :  { %3689 = vrcp.f32 %v1648_v62 }
 0x81a   :  { %v1645_v35 = vpop.xlane.xlu0 %1644 }
 0x81b   :  { %3691 = vrcp.f32 %v1645_v35 }
 0x81c   :  { %3693 = vrcp.f32 %v1887_v9 }
 0x81f   :  { %v1890_v50 = vpop.xlane.xlu0 %1889 }
 0x820   :  { %3695 = vrcp.f32 %v1890_v50 }
 0x821   :  { %v3686_v37 = vpop.eup %3685 }
 0x822   :  { %v3688_v10 = vpop.eup %3687  ;;  %v1675_v54 = vmul.f32 %v3686_v37, %v4820_v32 }
 0x823   :  { %v3690_v4 = vpop.eup %3689  ;;  %v1672_v45 = vmul.f32 %v3688_v10, %v4810_v52 }
 0x824   :  { %v1660_v27 = vpop.xlane.xlu1 %1659  ;;  %v1674_v12 = vmul.f32 %v3690_v4, %v4805_v48 }
 0x825   :  { %v3692_v47 = vpop.eup %3691 }
 0x826   :  { %v1673_v21 = vmul.f32 %v3692_v47, %v4825_v57  ;;  %v1681_v62 = vpack.c.bf16 %v1675_v54, %v1674_v12 }
 0x828   :  { %v1654_v42 = vpop.xlane.xlu1 %1653  ;;  %v1680_v60 = vpack.c.bf16 %v1673_v21, %v1672_v45 }
 0x82a   :  { %3345 = vmatprep.mubr.msk.bf16.mxu1 %vm453_vm4, %v1680_v60 }
 0x82b   :  { %3346 = vmatmul.mubr.msk.bf16.vlgmr.msra.gmra.mrb[32].mxu1 %vm453_vm4, %v1681_v62 }
 0x82c   :  { %3354 = vmatpush3.bf16.msra.mxu1 %v4590_v30  ;;  %v1663_v35 = vpop.xlane.xlu0 %1662  ;;  %v3694_v30 = vpop.eup %3693 }
 0x82d   :  { %3355 = vmatprep.subr.bf16.mxu1 %v4588_v1  ;;  %v1893_v52 = vpop.xlane.xlu1 %1892  ;;  %3697 = vrcp.f32 %v1663_v35  ;;  %v3696_v50 = vpop.eup %3695  ;;  %v1917_v60 = vmul.f32 %v3694_v30, %v4815_v33 }
 0x82e   :  { %3699 = vrcp.f32 %v1654_v42  ;;  %v1918_v45 = vmul.f32 %v3696_v50, %v4832_v39 }
 0x82f   :  { %3701 = vrcp.f32 %v1660_v27 }
 0x830   :  { %3356 = vmatpush3.bf16.msra.mxu1 %v4588_v1  ;;  %v1657_v48 = vpop.xlane.xlu0 %1656 }
 0x831   :  { %3703 = vrcp.f32 %v1657_v48  ;;  %3357 = vmatprep.subr.bf16.mxu1 %v4603_v18  ;;  %v2140_v12 = vpop.xlane.xlu1 %2139 }
 0x834   :  { %3358 = vmatpush3.bf16.msra.mxu1 %v4603_v18  ;;  %v1896_v32 = vpop.xlane.xlu0 %1895 }
 0x835   :  { %3359 = vmatprep.subr.bf16.mxu1 %v4600_v14  ;;  %3705 = vrcp.f32 %v1896_v32  ;;  %v2146_v9 = vpop.xlane.xlu1 %2145 }
 0x836   :  { %3707 = vrcp.f32 %v2140_v12 }
 0x837   :  { %v3698_v57 = vpop.eup %3697  ;;  %3709 = vrcp.f32 %v1893_v52  ;;  %v1925_v52 = vpack.c.bf16 %v1918_v45, %v1917_v60 }
 0x838   :  { %3360 = vmatpush3.bf16.msra.mxu1 %v4600_v14  ;;  %v2143_v1 = vpop.xlane.xlu0 %2142  ;;  %v3700_v37 = vpop.eup %3699  ;;  %v1679_v18 = vmul.f32 %v3698_v57, %v4850_v58 }
 0x839   :  { %3711 = vrcp.f32 %v2143_v1  ;;  %v3702_v10 = vpop.eup %3701  ;;  %v1676_v47 = vmul.f32 %v3700_v37, %v4844_v20  ;;  %v1899_v42 = vpop.xlane.xlu1 %1898 }
 0x83a   :  { %3713 = vrcp.f32 %v2146_v9  ;;  %v1678_v21 = vmul.f32 %v3702_v10, %v4838_v34 }
 0x83b   :  { %v3704_v4 = vpop.eup %3703 }
 0x83c   :  { %v2149_v27 = vpop.xlane.xlu0 %2148  ;;  %v1677_v54 = vmul.f32 %v3704_v4, %v4859_v22  ;;  %v1683_v62 = vpack.c.bf16 %v1679_v18, %v1678_v21 }
 0x83d   :  { %3715 = vrcp.f32 %v2149_v27 }
 0x83e   :  { %v1682_v14 = vpack.c.bf16 %v1677_v54, %v1676_v47  ;;  %v1905_v48 = vpop.xlane.xlu1 %1904 }
 0x83f   :  { %v3706_v35 = vpop.eup %3705 }
 0x840   :  { %3349 = vmatprep.mubr.msk.bf16.mxu1 %vm453_vm4, %v1682_v14  ;;  %v3708_v58 = vpop.eup %3707  ;;  %v1920_v39 = vmul.f32 %v3706_v35, %v4869_v11  ;;  %v1908_v9 = vpop.xlane.xlu0 %1907 }
 0x841   :  { %3350 = vmatmul.mubr.msk.bf16.gmra.mrb[36].mxu1 %vm453_vm4, %v1683_v62  ;;  %v3710_v20 = vpop.eup %3709  ;;  %v2170_v34 = vmul.f32 %v3708_v58, %v4862_v15  ;;  %3717 = vrcp.f32 %v1908_v9  ;;  %v3532_v9 = vld [vmem:[%s5256_s12 + $0x74] ss:$8 sps:$4 sm:$0xff]  }
 0x842   :  { %3361 = vmatprep.mubr.msk.bf16.mxu1 %vm453_vm4, %v1925_v52  ;;  %v1919_v32 = vmul.f32 %v3710_v20, %v4852_v59  ;;  %3719 = vrcp.f32 %v1899_v42 }
 0x843   :  { %v3712_v22 = vpop.eup %3711  ;;  %v2152_v11 = vpop.xlane.xlu1 %2151  ;;  %3721 = vrcp.f32 %v1905_v48  ;;  %v3520_v48 = vld [vmem:[%s5256_s12 + $0x34] ss:$8 sps:$4 sm:$0xff]  }
 0x844   :  { %v2171_v12 = vmul.f32 %v3712_v22, %v4878_v38  ;;  %v3714_v33 = vpop.eup %3713  ;;  %v1926_v57 = vpack.c.bf16 %v1920_v39, %v1919_v32  ;;  %v3514_v22 = vld [vmem:[%s5256_s12 + $0x14] ss:$8 sps:$4 sm:$0xff]   ;;  %v3517_v39 = vld [vmem:[%s5256_s12 + $0x24] ss:$8 sps:$4 sm:$0xff]  }
 0x845   :  { %v2172_v1 = vmul.f32 %v3714_v33, %v4871_v7  ;;  %v3521_v33 = vld [vmem:[%s5256_s12 + $0x40] ss:$8 sps:$4 sm:$0xff]   ;;  %v3526_v32 = vld [vmem:[%s5256_s12 + $0x54] ss:$8 sps:$4 sm:$0xff]  }
 0x846   :  { %v2178_v30 = vpack.c.bf16 %v2171_v12, %v2170_v34  ;;  %v3518_v34 = vld [vmem:[%s5256_s12 + $0x30] ss:$8 sps:$4 sm:$0xff]   ;;  %v3523_v12 = vld [vmem:[%s5256_s12 + $0x44] ss:$8 sps:$4 sm:$0xff]  }
 0x847   :  { %v3716_v50 = vpop.eup %3715  ;;  %v2158_v59 = vpop.xlane.xlu1 %2157 }
 0x848   :  { %v2173_v37 = vmul.f32 %v3716_v50, %v4887_v56  ;;  %3377 = vmatprep.mubr.msk.bf16.mxu0 %vm453_vm4, %v2178_v30  ;;  %v3524_v30 = vld [vmem:[%s5256_s12 + $0x50] ss:$8 sps:$4 sm:$0xff]   ;;  %v3529_v50 = vld [vmem:[%s5256_s12 + $0x64] ss:$8 sps:$4 sm:$0xff]  }
 0x849   :  { %3362 = vmatmul.mubr.msk.bf16.vlgmr.msra.gmra.mrb[40].mxu1 %vm453_vm4, %v1926_v57  ;;  %v3527_v57 = vld [vmem:[%s5256_s12 + $0x60] ss:$8 sps:$4 sm:$0xff]  }
 0x84a   :  { %v2179_v15 = vpack.c.bf16 %v2173_v37, %v2172_v1  ;;  %v3530_v1 = vld [vmem:[%s5256_s12 + $0x70] ss:$8 sps:$4 sm:$0xff]   ;;  %v3533_v37 = vld [vmem:[%s5257_s13] sm:$0xff]  }
 0x84b   :  { %v3718_v7 = vpop.eup %3717  ;;  %3385 = vmatprep.subr.bf16.mxu0 %v3533_v37 }
 0x84c   :  { %v1902_v38 = vpop.xlane.xlu0 %1901  ;;  %3378 = vmatmul.mubr.msk.bf16.vlgmr.msra.gmra.mrb[40].mxu0 %vm453_vm4, %v2179_v15  ;;  %v3720_v4 = vpop.eup %3719  ;;  %v1924_v47 = vmul.f32 %v3718_v7, %v4896_v36  ;;  %v3535_v15 = vld [vmem:[%s5257_s13 + $0x10] sm:$0xff]  }
 0x84d   :  { %3723 = vrcp.f32 %v1902_v38  ;;  %v3722_v18 = vpop.eup %3721  ;;  %v1921_v54 = vmul.f32 %v3720_v4, %v4880_v53  ;;  %3386 = vmatpush3.bf16.msra.mxu0 %v3533_v37  ;;  %v3536_v38 = vld [vmem:[%s5257_s13 + $0x18] sm:$0xff]   ;;  %v3539_v7 = vld [vmem:[%s5257_s13 + $0x30] sm:$0xff]  }
 0x84e   :  { %3725 = vrcp.f32 %v2152_v11  ;;  %v1923_v42 = vmul.f32 %v3722_v18, %v4891_v24  ;;  %v3534_v11 = vld [vmem:[%s5257_s13 + $0x8] sm:$0xff]  }
 0x84f   :  { %3387 = vmatprep.subr.bf16.mxu0 %v3534_v11 }
 0x850   :  { %v2155_v10 = vpop.xlane.xlu0 %2154  ;;  %v1928_v62 = vpack.c.bf16 %v1924_v47, %v1923_v42 }
 0x851   :  { %3727 = vrcp.f32 %v2155_v10  ;;  %3388 = vmatpush3.bf16.msra.mxu0 %v3534_v11  ;;  %v3538_v10 = vld [vmem:[%s5257_s13 + $0x28] sm:$0xff]  }
 0x852   :  { %3729 = vrcp.f32 %v2158_v59  ;;  %3389 = vmatprep.subr.bf16.mxu0 %v3535_v15  ;;  %v3537_v59 = vld [vmem:[%s5257_s13 + $0x20] sm:$0xff]  }
 0x854   :  { %v2161_v56 = vpop.xlane.xlu0 %2160 }
 0x855   :  { %3731 = vrcp.f32 %v2161_v56  ;;  %3390 = vmatpush3.bf16.msra.mxu0 %v3535_v15  ;;  %v5074_v15 = vld [vmem:[%s5255_s11] ss:$0 sm:$0xff] }
 0x856   :  { %3391 = vmatprep.subr.bf16.mxu0 %v3536_v38 }
 0x857   :  { %v3724_v27 = vpop.eup %3723 }
 0x858   :  { %v1922_v45 = vmul.f32 %v3724_v27, %v4910_v2  ;;  %v3726_v21 = vpop.eup %3725 }
 0x859   :  { %v2174_v35 = vmul.f32 %v3726_v21, %v4901_v0  ;;  %v3509_v0 = vld [vmem:[%s5256_s12] ss:$8 sps:$4 sm:$0xff]   ;;  %3392 = vmatpush3.bf16.msra.mxu0 %v3536_v38  ;;  %v5308_v38 = vmax.f32 %v4527_v61, 0.0 }
 0x85a   :  { %v1927_v14 = vpack.c.bf16 %v1922_v45, %v1921_v54  ;;  %3393 = vmatprep.subr.bf16.mxu0 %v3537_v59 }
 0x85b   :  { %v3728_v60 = vpop.eup %3727 }
 0x85c   :  { %3365 = vmatprep.mubr.msk.bf16.mxu1 %vm453_vm4, %v1927_v14  ;;  %v2175_v52 = vmul.f32 %v3728_v60, %v4914_v8  ;;  %v3730_v58 = vpop.eup %3729  ;;  %v3511_v8 = vld [vmem:[%s5256_s12 + $0x4] ss:$8 sps:$4 sm:$0xff]  }
 0x85d   :  { %3366 = vmatmul.mubr.msk.bf16.gmra.mrb[44].mxu1 %vm453_vm4, %v1928_v62  ;;  %v2176_v24 = vmul.f32 %v3730_v58, %v4906_v55  ;;  %2432 = vmatprep.subr.bf16.mxu1 %v3511_v8  ;;  %v3512_v55 = vld [vmem:[%s5256_s12 + $0x10] ss:$8 sps:$4 sm:$0xff]  }
 0x85e   :  { %v2180_v36 = vpack.c.bf16 %v2175_v52, %v2174_v35  ;;  %2464 = vmatprep.mubr.bf16.mxu1 %v5299_v29  ;;  %2433 = vmatpush1.bf16.msra.mxu1 %v3509_v0 }
 0x85f   :  { %v3732_v53 = vpop.eup %3731  ;;  %2434 = vmatprep.subr.bf16.mxu1 %v3514_v22  ;;  %3394 = vmatpush3.bf16.msra.mxu0 %v3537_v59 }
 0x860   :  { %3381 = vmatprep.mubr.msk.bf16.mxu0 %vm453_vm4, %v2180_v36  ;;  %v2177_v2 = vmul.f32 %v3732_v53, %v4918_v5  ;;  %v3515_v5 = vld [vmem:[%s5256_s12 + $0x20] ss:$8 sps:$4 sm:$0xff]   ;;  %3395 = vmatprep.subr.bf16.mxu0 %v3538_v10 }
 0x862   :  { %v2181_v20 = vpack.c.bf16 %v2177_v2, %v2176_v24  ;;  %2435 = vmatpush1.bf16.msra.mxu1 %v3512_v55 }
 0x863   :  { %2436 = vmatprep.subr.bf16.mxu1 %v3517_v39  ;;  %3396 = vmatpush3.bf16.msra.mxu0 %v3538_v10 }
 0x864   :  { %3382 = vmatmul.mubr.msk.bf16.gmra.mrb[44].mxu0 %vm453_vm4, %v2181_v20  ;;  %3397 = vmatprep.subr.bf16.mxu0 %v3539_v7 }
 0x866   :  { %2437 = vmatpush1.bf16.msra.mxu1 %v3515_v5 }
 0x867   :  { %2438 = vmatprep.subr.bf16.mxu1 %v3520_v48  ;;  %3398 = vmatpush3.bf16.msra.mxu0 %v3539_v7 }
 0x86a   :  { %2439 = vmatpush1.bf16.msra.mxu1 %v3518_v34 }
 0x86b   :  { %2440 = vmatprep.subr.bf16.mxu1 %v3523_v12 }
 0x86e   :  { %2441 = vmatpush1.bf16.msra.mxu1 %v3521_v33 }
 0x86f   :  { %2442 = vmatprep.subr.bf16.mxu1 %v3526_v32  ;;  %v5063_v32 = vld [vmem:[%s5254_s10] ss:$0 sm:$0xff] }
 0x872   :  { %2443 = vmatpush1.bf16.msra.mxu1 %v3524_v30 }
 0x873   :  { %2444 = vmatprep.subr.bf16.mxu1 %v3529_v50 }
 0x876   :  { %2445 = vmatpush1.bf16.msra.mxu1 %v3527_v57 }
 0x877   :  { %2446 = vmatprep.subr.bf16.mxu1 %v3532_v9  ;;  %v5307_v9 = vmax.f32 %v4529_v28, 0.0 }
 0x87a   :  { %2447 = vmatpush1.bf16.msra.mxu1 %v3530_v1 }
 0x87b   :  { %3409 = vmatprep.subr.bf16.mxu1 %v5293_v3 }
 0x8fe   :  { %v3347_v56 = vpop.f32.mrb[32].mxu1 }
 0x8ff   :  { %v1730_v4 = vpop.f32.mrb[33].mxu1  ;;  %v1763_v14 = vsel %vm624_vm13, %v3347_v56, 0.0  ;;  %v5309_v56 = vmax.f32 %v4531_v25, 0.0 }
 0x900   :  { %v3348_v18 = vpop.f32.mrb[34].mxu1  ;;  %v1761_v35 = vsel %vm624_vm13, %v1730_v4, 0.0 }
 0x901   :  { %v1733_v27 = vpop.f32.mrb[35].mxu1  ;;  %v1764_v53 = vsel %vm624_vm13, %v3348_v18, 0.0  ;;  %v5085_v18 = vld [vmem:[%s5255_s11 + $0x1] ss:$0 sm:$0xff] }
 0x902   :  { %v1762_v8 = vsel %vm624_vm13, %v1733_v27, 0.0  ;;  %v5310_v27 = vmax.f32 %v4537_v46, 0.0 }
 0x914   :  { %v3351_v47 = vpop.f32.mrb[36].mxu1 }
 0x915   :  { %v1746_v54 = vpop.f32.mrb[37].mxu1 }
 0x916   :  { %v5036_v45 = vpop.f32.mrb[38].mxu1 }
 0x917   :  { %v5038_v21 = vpop.f32.mrb[39].mxu1 }
 0x91c   :  { %v3363_v42 = vpop.f32.mrb[40].mxu1 }
 0x91d   :  { %v2008_v60 = vsel %vm4458_vm14, %v3363_v42, 0.0  ;;  %v1975_v62 = vpop.f32.mrb[41].mxu1 }
 0x91e   :  { %v2016_v52 = vadd.f32 %v2008_v60, %v1763_v14  ;;  %v2006_v58 = vsel %vm4458_vm14, %v1975_v62, 0.0  ;;  %v3364_v36 = vpop.f32.mrb[42].mxu1 }
 0x91f   :  { %v2014_v24 = vadd.f32 %v2006_v58, %v1761_v35  ;;  %v2009_v2 = vsel %vm4458_vm14, %v3364_v36, 0.0  ;;  %v1978_v20 = vpop.f32.mrb[43].mxu1  ;;  %v3379_v0 = vpop.f32.mrb[40].mxu0 }
 0x920   :  { %v2017_v22 = vadd.f32 %v2009_v2, %v1764_v53  ;;  %v2007_v55 = vsel %vm4458_vm14, %v1978_v20, 0.0  ;;  %v2261_v5 = vsel %vm4480_vm2, %v3379_v0, 0.0  ;;  %v2228_v39 = vpop.f32.mrb[41].mxu0 }
 0x921   :  { %v2015_v48 = vadd.f32 %v2007_v55, %v1762_v8  ;;  %v2269_v34 = vadd.f32 %v2261_v5, %v2016_v52  ;;  %v2259_v12 = vsel %vm4480_vm2, %v2228_v39, 0.0  ;;  %v3380_v33 = vpop.f32.mrb[42].mxu0  ;;  %v1767_v55 = vsel %vm624_vm13, %v3351_v47, 0.0 }
 0x922   :  { %v2267_v30 = vadd.f32 %v2259_v12, %v2014_v24  ;;  %v2262_v50 = vsel %vm4480_vm2, %v3380_v33, 0.0  ;;  %v2231_v57 = vpop.f32.mrb[43].mxu0 }
 0x923   :  { %v2277_v1 = vadd.f32 %v2269_v34, %v5307_v9  ;;  %v2270_v37 = vadd.f32 %v2262_v50, %v2017_v22  ;;  %v2260_v11 = vsel %vm4480_vm2, %v2231_v57, 0.0 }
 0x924   :  { %v2275_v59 = vadd.f32 %v2267_v30, %v5308_v38  ;;  %v2268_v10 = vadd.f32 %v2260_v11, %v2015_v48  ;;  %v1765_v48 = vsel %vm624_vm13, %v1746_v54, 0.0  ;;  %v1768_v30 = vsel %vm624_vm13, %v5036_v45, 0.0 }
 0x925   :  { %v2292_v7 = vadd.f32 %v5063_v32, %v2277_v1  ;;  %v2278_v4 = vadd.f32 %v2270_v37, %v5309_v56  ;;  %v1766_v54 = vsel %vm624_vm13, %v5038_v21, 0.0 }
 0x926   :  { %v2290_v28 = vadd.f32 %v5063_v32, %v2275_v59  ;;  %v2276_v42 = vadd.f32 %v2268_v10, %v5310_v27 }
 0x927   :  { %v2305_v14 = vmul.f32 %v5074_v15, %v2292_v7  ;;  %v2293_v61 = vadd.f32 %v5063_v32, %v2278_v4 }
 0x928   :  { %v2303_v60 = vmul.f32 %v5074_v15, %v2290_v28  ;;  %v2291_v62 = vadd.f32 %v5063_v32, %v2276_v42 }
 0x929   :  { %v2306_v25 = vmul.f32 %v5074_v15, %v2293_v61  ;;  %v2318_v35 = vadd.f32 %v5085_v18, %v2305_v14  ;;  %v5312_v14 = vmax.f32 %v4563_v16, 0.0 }
 0x92a   :  { %v2316_v52 = vadd.f32 %v5085_v18, %v2303_v60  ;;  %v2304_v58 = vmul.f32 %v5074_v15, %v2291_v62 }
 0x92b   :  { %v2319_v36 = vadd.f32 %v5085_v18, %v2306_v25  ;;  %v2326_v53 = vmax.f32 %v2318_v35, 0.0  ;;  %v5313_v25 = vmax.f32 %v4567_v40, 0.0 }
 0x92c   :  { %v2317_v46 = vadd.f32 %v5085_v18, %v2304_v58  ;;  %v2324_v2 = vmax.f32 %v2316_v52, 0.0 }
 0x92d   :  { %v2327_v24 = vmax.f32 %v2319_v36, 0.0 }
 0x92e   :  { %v2325_v20 = vmax.f32 %v2317_v46, 0.0 }
 0x92f   :  { %v2333_v0 = vpack.c.bf16 %v2327_v24, %v2326_v53 }
 0x930   :  { %v3367_v8 = vpop.f32.mrb[44].mxu1  ;;  %v2332_v22 = vpack.c.bf16 %v2325_v20, %v2324_v2 }
 0x931   :  { %v2012_v5 = vsel %vm4458_vm14, %v3367_v8, 0.0  ;;  %v1991_v39 = vpop.f32.mrb[45].mxu1 }
 0x932   :  { %v2020_v34 = vadd.f32 %v2012_v5, %v1767_v55  ;;  %v2010_v12 = vsel %vm4458_vm14, %v1991_v39, 0.0  ;;  %v3368_v33 = vpop.f32.mrb[46].mxu1  ;;  %2465 = vmatmul.mubr.bf16.vlgmr.msra.gmra.mrb[48].mxu1 %v2332_v22 }
 0x933   :  { %v2018_v50 = vadd.f32 %v2010_v12, %v1765_v48  ;;  %v2013_v47 = vsel %vm4458_vm14, %v3368_v33, 0.0  ;;  %v1994_v57 = vpop.f32.mrb[47].mxu1  ;;  %2474 = vmatprep.mubr.bf16.mxu1 %v5299_v29 }
 0x934   :  { %v2021_v9 = vadd.f32 %v2013_v47, %v1768_v30  ;;  %v2011_v1 = vsel %vm4458_vm14, %v1994_v57, 0.0 }
 0x935   :  { %v2019_v37 = vadd.f32 %v2011_v1, %v1766_v54 }
 0x937   :  { %v3383_v11 = vpop.f32.mrb[44].mxu0 }
 0x938   :  { %v2265_v45 = vsel %vm4480_vm2, %v3383_v11, 0.0  ;;  %v2244_v38 = vpop.f32.mrb[45].mxu0 }
 0x939   :  { %v2273_v59 = vadd.f32 %v2265_v45, %v2020_v34  ;;  %v2263_v10 = vsel %vm4480_vm2, %v2244_v38, 0.0  ;;  %v3384_v7 = vpop.f32.mrb[46].mxu0 }
 0x93a   :  { %v2271_v56 = vadd.f32 %v2263_v10, %v2018_v50  ;;  %v2266_v4 = vsel %vm4480_vm2, %v3384_v7, 0.0  ;;  %v2247_v21 = vpop.f32.mrb[47].mxu0  ;;  %2475 = vmatmul.mubr.bf16.gmra.mrb[52].mxu1 %v2333_v0  ;;  %v2638_v7 = vld [vmem:[%s5258_s14] sm:$0x1] }
 0x93b   :  { %v2281_v28 = vadd.f32 %v2273_v59, %v5311_v26  ;;  %v2274_v27 = vadd.f32 %v2266_v4, %v2021_v9  ;;  %v2264_v42 = vsel %vm4480_vm2, %v2247_v21, 0.0  ;;  %2484 = vmatprep.mubr.bf16.mxu1 %v5299_v29 }
 0x93c   :  { %v2279_v61 = vadd.f32 %v2271_v56, %v5312_v14  ;;  %v2272_v60 = vadd.f32 %v2264_v42, %v2019_v37 }
 0x93d   :  { %v2296_v62 = vadd.f32 %v5063_v32, %v2281_v28  ;;  %v2282_v35 = vadd.f32 %v2274_v27, %v5313_v25 }
 0x93e   :  { %v2294_v52 = vadd.f32 %v5063_v32, %v2279_v61  ;;  %v2280_v58 = vadd.f32 %v2272_v60, %v5314_v41 }
 0x93f   :  { %v2309_v36 = vmul.f32 %v5074_v15, %v2296_v62  ;;  %v2297_v51 = vadd.f32 %v5063_v32, %v2282_v35 }
 0x940   :  { %v2307_v46 = vmul.f32 %v5074_v15, %v2294_v52  ;;  %v2295_v16 = vadd.f32 %v5063_v32, %v2280_v58  ;;  %v3540_v32 = vld [vmem:[%s5257_s13 + $0x38] sm:$0xff]  }
 0x941   :  { %v2310_v53 = vmul.f32 %v5074_v15, %v2297_v51  ;;  %v2322_v24 = vadd.f32 %v5085_v18, %v2309_v36  ;;  %3399 = vmatprep.subr.bf16.mxu0 %v3540_v32 }
 0x942   :  { %v2308_v40 = vmul.f32 %v5074_v15, %v2295_v16  ;;  %v2320_v2 = vadd.f32 %v5085_v18, %v2307_v46  ;;  %3400 = vmatpush3.bf16.msra.mxu0 %v3540_v32 }
 0x943   :  { %v2323_v20 = vadd.f32 %v5085_v18, %v2310_v53  ;;  %v2330_v0 = vmax.f32 %v2322_v24, 0.0 }
 0x944   :  { %v2321_v23 = vadd.f32 %v5085_v18, %v2308_v40  ;;  %v2328_v22 = vmax.f32 %v2320_v2, 0.0 }
 0x945   :  { %v2331_v8 = vmax.f32 %v2323_v20, 0.0 }
 0x946   :  { %v2329_v55 = vmax.f32 %v2321_v23, 0.0 }
 0x947   :  { %v2335_v5 = vpack.c.bf16 %v2331_v8, %v2330_v0 }
 0x948   :  { %v2334_v39 = vpack.c.bf16 %v2329_v55, %v2328_v22 }
 0x94a   :  { %2485 = vmatmul.mubr.bf16.gmra.mrb[56].mxu1 %v2334_v39 }
 0x94b   :  { %2494 = vmatprep.mubr.bf16.mxu1 %v5299_v29 }
 0x952   :  { %2495 = vmatmul.mubr.bf16.gmra.mrb[60].mxu1 %v2335_v5 }
 0x953   :  { %3417 = vmatprep.mubr.msk.bf16.mxu1 %vm3791_vm1, %v5293_v3  ;;  %vm2924_vm1 = vcmp.lt.s32.totalorder %v4453_v43, 8 }
 0xa05   :  { %v2466_v15 = vpop.f32.mrb[48].mxu1 }
 0xa06   :  { %v5153_v18 = vpop.f32.mrb[49].mxu1 }
 0xa07   :  { %v2470_v48 = vpop.f32.mrb[50].mxu1 }
 0xa08   :  { %v2505_v34 = vpack.c.bf16 %v2470_v48, %v2466_v15  ;;  %v5155_v12 = vpop.f32.mrb[51].mxu1 }
 0xa0a   :  { %3401 = vmatprep.mubr.bf16.mxu0 %v2505_v34  ;;  %3410 = vmatpush3.bf16.xpose.msra.mxu1 %v2505_v34 }
 0xa0b   :  { %3421 = vmatprep.subr.bf16.mxu0 %v2505_v34  ;;  %3411 = vmatprep.subr.bf16.mxu1 %v5293_v3 }
 0xa0d   :  { %v2476_v29 = vpop.f32.mrb[52].mxu1 }
 0xa0e   :  { %v5158_v33 = vpop.f32.mrb[53].mxu1 }
 0xa0f   :  { %v2480_v30 = vpop.f32.mrb[54].mxu1 }
 0xa10   :  { %v2506_v50 = vpack.c.bf16 %v2480_v30, %v2476_v29  ;;  %v5160_v47 = vpop.f32.mrb[55].mxu1 }
 0xa12   :  { %3402 = vmatmul.mubr.bf16.vlgmr.msra.gmra.mrb[48].mxu0 %v2506_v50  ;;  %3412 = vmatpush3.bf16.xpose.msra.mxu1 %v2506_v50 }
 0xa13   :  { %3422 = vmatpush3.bf16.msra.mxu0 %v2505_v34  ;;  %3413 = vmatprep.subr.bf16.mxu1 %v5293_v3 }
 0xa14   :  { %3423 = vmatprep.subr.bf16.mxu0 %v2506_v50 }
 0xa17   :  { %3424 = vmatpush3.bf16.msra.mxu0 %v2506_v50 }
 0xa1d   :  { %v2486_v57 = vpop.f32.mrb[56].mxu1 }
 0xa1e   :  { %v5163_v54 = vpop.f32.mrb[57].mxu1 }
 0xa1f   :  { %v2490_v9 = vpop.f32.mrb[58].mxu1 }
 0xa20   :  { %v2507_v1 = vpack.c.bf16 %v2490_v9, %v2486_v57  ;;  %v5165_v37 = vpop.f32.mrb[59].mxu1 }
 0xa22   :  { %3405 = vmatprep.mubr.bf16.mxu0 %v2507_v1  ;;  %3414 = vmatpush3.bf16.xpose.msra.mxu1 %v2507_v1 }
 0xa23   :  { %3425 = vmatprep.subr.bf16.mxu0 %v2507_v1  ;;  %3415 = vmatprep.subr.bf16.mxu1 %v5293_v3 }
 0xa24   :  { %3426 = vmatpush3.bf16.msra.mxu0 %v2507_v1 }
 0xa25   :  { %v2496_v11 = vpop.f32.mrb[60].mxu1 }
 0xa26   :  { %v5168_v45 = vpop.f32.mrb[61].mxu1 }
 0xa27   :  { %v2500_v38 = vpop.f32.mrb[62].mxu1 }
 0xa28   :  { %v2508_v59 = vpack.c.bf16 %v2500_v38, %v2496_v11  ;;  %v5170_v10 = vpop.f32.mrb[63].mxu1 }
 0xa2a   :  { %3406 = vmatmul.mubr.bf16.gmra.mrb[52].mxu0 %v2508_v59  ;;  %3416 = vmatpush3.bf16.xpose.msra.mxu1 %v2508_v59 }
 0xa2b   :  { %3427 = vmatprep.subr.bf16.mxu0 %v2508_v59 }
 0xa2c   :  { %3428 = vmatpush3.bf16.msra.mxu0 %v2508_v59 }
 0xa31   :  { %3418 = vmatmul.mubr.bf16.vlgmr.msra.gmra.mrb[64].mxu1 %v2638_v7 }
 0xae5   :  { %v3403_v56 = vpop.f32.mrb[48].mxu0 }
 0xae6   :  { %v2607_v4 = vpop.f32.mrb[49].mxu0 }
 0xae7   :  { %2681 = vperm.xlu1 %3477, %v2607_v4   ;;  %v3404_v3 = vpop.f32.mrb[50].mxu0 }
 0xae8   :  { %v2610_v21 = vpop.f32.mrb[51].mxu0 }
 0xae9   :  { %2686 = vperm.xlu0 %3478, %v2610_v21  }
 0xaeb   :  { %2691 = vperm.xlu1 %3477, %v3403_v56  }
 0xaef   :  { %2696 = vperm.xlu1 %3477, %v3404_v3  }
 0xafd   :  { %v3407_v26 = vpop.f32.mrb[52].mxu0 }
 0xafe   :  { %2711 = vperm.xlu1 %3477, %v3407_v26   ;;  %v2623_v28 = vpop.f32.mrb[53].mxu0 }
 0xaff   :  { %v3408_v27 = vpop.f32.mrb[54].mxu0 }
 0xb00   :  { %v2626_v42 = vpop.f32.mrb[55].mxu0 }
 0xb02   :  { %2701 = vperm.xlu1 %3477, %v2623_v28  }
 0xb04   :  { %v2673_v14 = vpop.f32.mrb[64].mxu1 }
 0xb05   :  { %v3419_v61 = vpop.f32.mrb[65].mxu1  ;;  %v2722_v25 = vrot.slane %v2673_v14, %v4033_v63 }
 0xb06   :  { %2706 = vperm.xlu1 %3477, %v2626_v42   ;;  %v2676_v60 = vpop.f32.mrb[66].mxu1  ;;  %v5315_v42 = vld [vmem:[#allocation6_spill] sm:$0xff] }
 0xb07   :  { %v3420_v62 = vpop.f32.mrb[67].mxu1 }
 0xb0a   :  { %2716 = vperm.xlu1 %3477, %v3408_v27  }
 0xb66   :  { %v2682_v35 = vpop.permute.xlu1 %2681 }
 0xb67   :  { %v2723_v52 = vadd.f32 %v2722_v25, %v2682_v35 }
 0xb68   :  { %v2687_v41 = vpop.permute.xlu0 %2686 }
 0xb69   :  { %v2731_v58 = vmul.f32 0.2, %v2723_v52  ;;  %v2724_v36 = vadd.f32 %v2722_v25, %v2687_v41 }
 0xb6a   :  { %v2692_v51 = vpop.permute.xlu1 %2691 }
 0xb6b   :  { %v2739_v46 = vmax.f32 %v2723_v52, %v2731_v58  ;;  %v2732_v16 = vmul.f32 0.2, %v2724_v36  ;;  %v2725_v53 = vadd.f32 %v2722_v25, %v2692_v51 }
 0xb6d   :  { %v2740_v24 = vmax.f32 %v2724_v36, %v2732_v16  ;;  %v2733_v40 = vmul.f32 0.2, %v2725_v53  ;;  %v2747_v2 = vadd.f32 %v2739_v46, %v4058_v19 }
 0xb6e   :  { %v2697_v20 = vpop.permute.xlu1 %2696 }
 0xb6f   :  { %v2741_v23 = vmax.f32 %v2725_v53, %v2733_v40  ;;  %v2726_v0 = vadd.f32 %v2722_v25, %v2697_v20  ;;  %v2755_v8 = vsel %vm453_vm4, %v2747_v2, -inf  ;;  %v2748_v63 = vadd.f32 %v2740_v24, %v4097_v6 }
 0xb70   :  { %2756 = vmax.xlane.f32.xlu1 %v2755_v8 }
 0xb71   :  { %v2734_v22 = vmul.f32 0.2, %v2726_v0  ;;  %v2758_v55 = vsel %vm453_vm4, %v2748_v63, -inf  ;;  %v2749_v5 = vadd.f32 %v2741_v23, %v4054_v13 }
 0xb72   :  { %2759 = vmax.xlane.f32.xlu0 %v2758_v55 }
 0xb73   :  { %v2742_v39 = vmax.f32 %v2726_v0, %v2734_v22  ;;  %v2761_v32 = vsel %vm453_vm4, %v2749_v5, -inf }
 0xb75   :  { %v2750_v15 = vadd.f32 %v2742_v39, %v4121_v49 }
 0xb76   :  { %2762 = vmax.xlane.f32.xlu0 %v2761_v32 }
 0xb77   :  { %v2764_v19 = vsel %vm453_vm4, %v2750_v15, -inf }
 0xb78   :  { %2765 = vmax.xlane.f32.xlu1 %v2764_v19 }
 0xb7d   :  { %v2712_v48 = vpop.permute.xlu1 %2711 }
 0xb7e   :  { %v2729_v34 = vadd.f32 %v2722_v25, %v2712_v48 }
 0xb80   :  { %v2737_v6 = vmul.f32 0.2, %v2729_v34 }
 0xb81   :  { %v2702_v29 = vpop.permute.xlu1 %2701 }
 0xb82   :  { %v2727_v30 = vadd.f32 %v2722_v25, %v2702_v29  ;;  %v2745_v9 = vmax.f32 %v2729_v34, %v2737_v6 }
 0xb84   :  { %v2735_v50 = vmul.f32 0.2, %v2727_v30  ;;  %v2753_v4 = vadd.f32 %v2745_v9, %v4117_v31 }
 0xb85   :  { %v2707_v57 = vpop.permute.xlu1 %2706 }
 0xb86   :  { %v2743_v1 = vmax.f32 %v2727_v30, %v2735_v50  ;;  %v2728_v13 = vadd.f32 %v2722_v25, %v2707_v57  ;;  %v2773_v28 = vsel %vm453_vm4, %v2753_v4, -inf }
 0xb88   :  { %v2736_v11 = vmul.f32 0.2, %v2728_v13  ;;  %v2751_v38 = vadd.f32 %v2743_v1, %v5304_v17 }
 0xb89   :  { %v2717_v59 = vpop.permute.xlu1 %2716 }
 0xb8a   :  { %v2744_v7 = vmax.f32 %v2728_v13, %v2736_v11  ;;  %v2730_v49 = vadd.f32 %v2722_v25, %v2717_v59  ;;  %v2767_v56 = vsel %vm453_vm4, %v2751_v38, -inf }
 0xb8b   :  { %2768 = vmax.xlane.f32.xlu0 %v2767_v56 }
 0xb8c   :  { %v2738_v3 = vmul.f32 0.2, %v2730_v49  ;;  %v2752_v21 = vadd.f32 %v2744_v7, %v5306_v44 }
 0xb8e   :  { %v2746_v26 = vmax.f32 %v2730_v49, %v2738_v3  ;;  %v2770_v27 = vsel %vm453_vm4, %v2752_v21, -inf }
 0xb8f   :  { %2774 = vmax.xlane.f32.xlu0 %v2773_v28  ;;  %2771 = vmax.xlane.f32.xlu1 %v2770_v27 }
 0xb90   :  { %v2754_v17 = vadd.f32 %v2746_v26, %v5315_v42 }
 0xb92   :  { %v2776_v14 = vsel %vm453_vm4, %v2754_v17, -inf }
 0xb93   :  { %2777 = vmax.xlane.f32.xlu1 %v2776_v14 }
 0xbfd   :  { %v2757_v61 = vpop.xlane.xlu1 %2756 }
 0xbfe   :  { %v2779_v60 = vsub.f32 %v2747_v2, %v2757_v61 }
 0xbff   :  { %v2760_v62 = vpop.xlane.xlu0 %2759 }
 0xc00   :  { %v2787_v31 = vmul.f32 1.442695, %v2779_v60  ;;  %v2780_v25 = vsub.f32 %v2748_v63, %v2760_v62 }
 0xc02   :  { %3733 = vpow2.f32 %v2787_v31  ;;  %v2789_v35 = vmul.f32 1.442695, %v2780_v25 }
 0xc03   :  { %v2763_v44 = vpop.xlane.xlu0 %2762 }
 0xc04   :  { %3735 = vpow2.f32 %v2789_v35  ;;  %v2781_v52 = vsub.f32 %v2749_v5, %v2763_v44 }
 0xc05   :  { %v2766_v41 = vpop.xlane.xlu1 %2765 }
 0xc06   :  { %v2791_v58 = vmul.f32 1.442695, %v2781_v52  ;;  %v2782_v36 = vsub.f32 %v2750_v15, %v2766_v41 }
 0xc08   :  { %3737 = vpow2.f32 %v2791_v58  ;;  %v2793_v51 = vmul.f32 1.442695, %v2782_v36 }
 0xc0a   :  { %3739 = vpow2.f32 %v2793_v51 }
 0xc0c   :  { %v3734_v46 = vpop.eup %3733 }
 0xc0d   :  { %v2803_v16 = vsel %vm453_vm4, %v3734_v46, 0.0 }
 0xc0e   :  { %v3736_v53 = vpop.eup %3735  ;;  %2804 = vadd.xlane.f32.xlu0 %v2803_v16 }
 0xc0f   :  { %v2806_v24 = vsel %vm453_vm4, %v3736_v53, 0.0 }
 0xc10   :  { %2807 = vadd.xlane.f32.xlu1 %v2806_v24  ;;  %v3073_v24 = vld [vmem:[%s5259_s15] ss:$0 sm:$0xff]  ;;  %s3795_s15 = smov [#allocation2]  }
 0xc11   :  { %s2972_s4 = sshll.u32 %s3795_s15, 4  ;;  %s2973_s4 = int_to_ptr.vmem [resolvable:$true] %s2972_s4 }
 0xc12   :  { %v3738_v40 = vpop.eup %3737  ;;  %s3765_s7 = scalar_lea.vmem %s2973_s4, 1024  ;;  %p3770_p1 = scmp.lt.s32.totalorder %s2973_s4, %s2973_s4 }
 0xc13   :  { %v2809_v2 = vsel %vm453_vm4, %v3738_v40, 0.0  ;;  %p3766_p0 = scmp.ne.s32.totalorder %s2973_s4, %s3765_s7  ;;  %p3771_p2 = scmp.lt.s32.totalorder %s3765_s7, %s3765_s7 }
 0xc14   :  { %v3740_v20 = vpop.eup %3739  ;;  %2810 = vadd.xlane.f32.xlu0 %v2809_v2 }
 0xc15   :  { %v2812_v23 = vsel %vm453_vm4, %v3740_v20, 0.0  ;;  %p3772_p3 = por %p3771_p2, %p3770_p1 }
 0xc16   :  { %2813 = vadd.xlane.f32.xlu1 %v2812_v23 }
 0xc17   :  { %p3773_p4 = pnand %p3772_p3, %p3766_p0 }
 0xc18   :  { %v2769_v0 = vpop.xlane.xlu0 %2768 }
 0xc19   :  { %v2783_v8 = vsub.f32 %v2751_v38, %v2769_v0 }
 0xc1b   :  { %v2795_v63 = vmul.f32 1.442695, %v2783_v8 }
 0xc1c   :  { %v2775_v22 = vpop.xlane.xlu0 %2774  ;;  %v2772_v55 = vpop.xlane.xlu1 %2771 }
 0xc1d   :  { %3741 = vpow2.f32 %v2795_v63  ;;  %v2785_v5 = vsub.f32 %v2753_v4, %v2775_v22  ;;  %v2784_v39 = vsub.f32 %v2752_v21, %v2772_v55 }
 0xc1f   :  { %v2799_v32 = vmul.f32 1.442695, %v2785_v5  ;;  %v2797_v15 = vmul.f32 1.442695, %v2784_v39 }
 0xc20   :  { %v2778_v19 = vpop.xlane.xlu1 %2777 }
 0xc21   :  { %3743 = vpow2.f32 %v2799_v32  ;;  %v2786_v48 = vsub.f32 %v2754_v17, %v2778_v19 }
 0xc22   :  { %3745 = vpow2.f32 %v2797_v15 }
 0xc23   :  { %v2801_v34 = vmul.f32 1.442695, %v2786_v48 }
 0xc25   :  { %3747 = vpow2.f32 %v2801_v34 }
 0xc27   :  { %v3742_v29 = vpop.eup %3741 }
 0xc28   :  { %v2815_v6 = vsel %vm453_vm4, %v3742_v29, 0.0 }
 0xc29   :  { %2816 = vadd.xlane.f32.xlu0 %v2815_v6 }
 0xc2b   :  { %v3744_v30 = vpop.eup %3743 }
 0xc2c   :  { %v3746_v50 = vpop.eup %3745  ;;  %v2821_v57 = vsel %vm453_vm4, %v3744_v30, 0.0 }
 0xc2d   :  { %2822 = vadd.xlane.f32.xlu0 %v2821_v57  ;;  %v2818_v9 = vsel %vm453_vm4, %v3746_v50, 0.0 }
 0xc2e   :  { %2819 = vadd.xlane.f32.xlu1 %v2818_v9 }
 0xc2f   :  { %v3748_v1 = vpop.eup %3747 }
 0xc30   :  { %v2824_v13 = vsel %vm453_vm4, %v3748_v1, 0.0 }
 0xc32   :  { %2825 = vadd.xlane.f32.xlu1 %v2824_v13 }
 0xc9b   :  { %v2805_v11 = vpop.xlane.xlu0 %2804 }
 0xc9c   :  { %3749 = vrcp.f32 %v2805_v11 }
 0xc9d   :  { %v2808_v38 = vpop.xlane.xlu1 %2807 }
 0xc9e   :  { %3751 = vrcp.f32 %v2808_v38 }
 0xca1   :  { %v2811_v59 = vpop.xlane.xlu0 %2810 }
 0xca2   :  { %3753 = vrcp.f32 %v2811_v59 }
 0xca3   :  { %v2814_v7 = vpop.xlane.xlu1 %2813 }
 0xca4   :  { %3755 = vrcp.f32 %v2814_v7 }
 0xca6   :  { %v3750_v49 = vpop.eup %3749 }
 0xca7   :  { %v2835_v4 = vmul.f32 %v3750_v49, %v3734_v46 }
 0xca8   :  { %v3752_v56 = vpop.eup %3751 }
 0xca9   :  { %v2836_v3 = vmul.f32 %v3752_v56, %v3736_v53 }
 0xcab   :  { %v2843_v21 = vpack.c.bf16 %v2836_v3, %v2835_v4 }
 0xcac   :  { %v3754_v26 = vpop.eup %3753 }
 0xcad   :  { %3429 = vmatprep.mubr.msk.bf16.mxu0 %vm453_vm4, %v2843_v21  ;;  %v2837_v27 = vmul.f32 %v3754_v26, %v3738_v40 }
 0xcae   :  { %v3756_v28 = vpop.eup %3755 }
 0xcaf   :  { %v2838_v42 = vmul.f32 %v3756_v28, %v3740_v20 }
 0xcb1   :  { %v2844_v17 = vpack.c.bf16 %v2838_v42, %v2837_v27 }
 0xcb3   :  { %3430 = vmatmul.mubr.msk.bf16.vlgmr.msra.gmra.mrb[56].mxu0 %vm453_vm4, %v2844_v17 }
 0xcb6   :  { %v2817_v14 = vpop.xlane.xlu0 %2816 }
 0xcb7   :  { %3757 = vrcp.f32 %v2817_v14 }
 0xcba   :  { %v2823_v61 = vpop.xlane.xlu0 %2822 }
 0xcbb   :  { %v2820_v60 = vpop.xlane.xlu1 %2819 }
 0xcbc   :  { %3759 = vrcp.f32 %v2820_v60 }
 0xcbd   :  { %3761 = vrcp.f32 %v2823_v61 }
 0xcbf   :  { %v2826_v62 = vpop.xlane.xlu1 %2825 }
 0xcc0   :  { %3763 = vrcp.f32 %v2826_v62 }
 0xcc1   :  { %v3758_v31 = vpop.eup %3757 }
 0xcc2   :  { %v2839_v35 = vmul.f32 %v3758_v31, %v3742_v29 }
 0xcc6   :  { %v3760_v25 = vpop.eup %3759 }
 0xcc7   :  { %v2840_v44 = vmul.f32 %v3760_v25, %v3746_v50  ;;  %v3762_v52 = vpop.eup %3761 }
 0xcc8   :  { %v2841_v36 = vmul.f32 %v3762_v52, %v3744_v30 }
 0xcc9   :  { %v2845_v41 = vpack.c.bf16 %v2840_v44, %v2839_v35 }
 0xcca   :  { %v3764_v58 = vpop.eup %3763 }
 0xccb   :  { %3433 = vmatprep.mubr.msk.bf16.mxu0 %vm453_vm4, %v2845_v41  ;;  %v2842_v51 = vmul.f32 %v3764_v58, %v3748_v1 }
 0xccd   :  { %v2846_v46 = vpack.c.bf16 %v2842_v51, %v2841_v36 }
 0xccf   :  { %3434 = vmatmul.mubr.msk.bf16.gmra.mrb[60].mxu0 %vm453_vm4, %v2846_v46 }
 0xd86   :  { %v3431_v16 = vpop.f32.mrb[56].mxu0 }
 0xd87   :  { %v2930_v53 = vsel %vm2924_vm1, %v3431_v16, 0.0  ;;  %v2893_v40 = vpop.f32.mrb[57].mxu0 }
 0xd88   :  { %v2938_v2 = vadd.f32 %v2930_v53, %v5158_v33  ;;  %v2928_v20 = vsel %vm2924_vm1, %v2893_v40, 0.0  ;;  %v3432_v23 = vpop.f32.mrb[58].mxu0 }
 0xd89   :  { %v2936_v0 = vadd.f32 %v2928_v20, %v5153_v18  ;;  %v2931_v8 = vsel %vm2924_vm1, %v3432_v23, 0.0  ;;  %v2896_v63 = vpop.f32.mrb[59].mxu0 }
 0xd8a   :  { %v2953_v22 = vadd.f32 %v3073_v24, %v2938_v2  ;;  %v2939_v55 = vadd.f32 %v2931_v8, %v5160_v47  ;;  %v2929_v5 = vsel %vm2924_vm1, %v2896_v63, 0.0 }
 0xd8b   :  { %v2951_v39 = vadd.f32 %v3073_v24, %v2936_v0  ;;  %v2937_v32 = vadd.f32 %v2929_v5, %v5155_v12 }
 0xd8c   :  { %2961 = vst [vmem:[#allocation2 + $0x10] sm:$0xff] %v2953_v22  ;;  %v2954_v33 = vadd.f32 %v3073_v24, %v2939_v55 }
 0xd8d   :  { %2959 = vst [vmem:[#allocation2] sm:$0xff] %v2951_v39  ;;  %v2952_v15 = vadd.f32 %v3073_v24, %v2937_v32 }
 0xd8e   :  { %2962 = vst [vmem:[#allocation2 + $0x18] sm:$0xff] %v2954_v33 }
 0xd8f   :  { %2960 = vst [vmem:[#allocation2 + $0x8] sm:$0xff] %v2952_v15 }
 0xda2   :  { %v3435_v18 = vpop.f32.mrb[60].mxu0 }
 0xda3   :  { %v2934_v19 = vsel %vm2924_vm1, %v3435_v18, 0.0  ;;  %v2909_v48 = vpop.f32.mrb[61].mxu0 }
 0xda4   :  { %v2942_v34 = vadd.f32 %v2934_v19, %v5168_v45  ;;  %v2932_v47 = vsel %vm2924_vm1, %v2909_v48, 0.0  ;;  %v3436_v29 = vpop.f32.mrb[62].mxu0 }
 0xda5   :  { %v2940_v6 = vadd.f32 %v2932_v47, %v5163_v54  ;;  %v2935_v12 = vsel %vm2924_vm1, %v3436_v29, 0.0  ;;  %v2912_v30 = vpop.f32.mrb[63].mxu0 }
 0xda6   :  { %v2957_v50 = vadd.f32 %v3073_v24, %v2942_v34  ;;  %v2943_v57 = vadd.f32 %v2935_v12, %v5170_v10  ;;  %v2933_v9 = vsel %vm2924_vm1, %v2912_v30, 0.0 }
 0xda7   :  { %v2955_v1 = vadd.f32 %v3073_v24, %v2940_v6  ;;  %v2941_v45 = vadd.f32 %v2933_v9, %v5165_v37 }
 0xda8   :  { %2965 = vst [vmem:[#allocation2 + $0x30] sm:$0xff] %v2957_v50  ;;  %v2958_v13 = vadd.f32 %v3073_v24, %v2943_v57 }
 0xda9   :  { %2963 = vst [vmem:[#allocation2 + $0x20] sm:$0xff] %v2955_v1  ;;  %v2956_v54 = vadd.f32 %v3073_v24, %v2941_v45 }
 0xdaa   :  { %2966 = vst [vmem:[#allocation2 + $0x38] sm:$0xff] %v2958_v13 }
 0xdab   :  { %2964 = vst [vmem:[#allocation2 + $0x28] sm:$0xff] %v2956_v54 }
 0xdac   :  { %3776 = shalt.err (!%p3773_p4)
}
 0xdad   :  { %s3777_s0 = scalar_lea.hbm %s5260_s16, 1024 }
 0xdae   :  { %p3778_p5 = scmp.ne.s32.totalorder %s5260_s16, %s3777_s0  ;;  %p3781_p6 = scmp.lt.u32.totalorder %s3777_s0, %s5260_s16 }
 0xdb0   :  { %p3783_p7 = pnand %p3781_p6, %p3778_p5 }
 0xdb2   :  { %3786 = shalt.err (!%p3783_p7)
}
 0xdb3   :  { %s3796_s12 = smov 128   ;;  %s3797_s21 = smov 8  }
 0xdb4   :  { %2978 = dma.vmem_to_hbm [thread:$0]  %s2973_s4, 1024, %s5260_s16, [#allocation3], %s3796_s12, %s3796_s12, %s3797_s21  }
 0xdb5   :  { %3787 = dma.done.wait [#allocation3], 1024  }
 0xdb6   :  { %3788 = vsyncadd [#allocation3], 4294966272 }
 0xdb7   :  { %2982 = vsyncpa [#allocation3], 1 }

</bundles_post_ra>
